<compile_context>
chip_gen: v5e
topology: v5e:2x2
jax: 0.10.0
libtpu: 0.0.40
codegen_flags: <defaults>
</compile_context>

<pallas_src>
import jax
import jax.numpy as jnp
from jax.experimental import pallas as pl
from jax.experimental.pallas import tpu as pltpu


# ------------------------------- fused kernel -------------------------------

def _convnet_kernel(x_ref,
                    w1_ref, b1_ref, r1_ref, s1_ref,
                    w2_ref, b2_ref, r2_ref, s2_ref,
                    fw1_ref, fb1_ref, fw2_ref, fb2_ref, fw3_ref, fb3_ref,
                    o_ref, feat_ref):
    """Whole ConvNet forward for one batch tile of TB samples.

    Per-sample layouts ("transposed": channel*height is the lane dim):
      x_ref   : (TB, W=32, C*H=96)   f32   activation, cols ordered (c, h)
      wN_ref  : (KW, C*H, OC*OH)     bf16  per-tap Toeplitz conv weights
      bN_ref  : (1, OC*OH)           f32   bias repeated over output height
      rN_ref  : (OWp, OW-1)          bf16  0/1 width-pool decimation
      sN_ref  : (OC*OH-1, OC*OHp)    bf16  0/1 height-pool decimation
      fw1_ref : (5, 80, 120)         bf16  fc1 weight (permuted to our layout)
      fw2/fw3 : (120, 84) / (84, 10) bf16
      fbN_ref : (1, out)             f32
      o_ref   : (TB, 10)             f32   logits
      feat_ref: (TB, 5, 80)          bf16  VMEM scratch (pooled conv2 features)
    """
    tb = x_ref.shape[0]

    def conv_relu_pool(xt, w_ref, b_ref, r_ref, s_ref):
        ow = r_ref.shape[1] + 1                  # conv output width
        kw = w_ref.shape[0]
        # Implicit im2col: one (OW, C*H) @ (C*H, OC*OH) MXU matmul per kw tap;
        # each tap is just a sublane-shifted slice of the activation tile.
        acc = jnp.dot(xt[0:ow, :], w_ref[0], preferred_element_type=jnp.float32)
        for k in range(1, kw):
            acc += jnp.dot(xt[k:k + ow, :], w_ref[k],
                           preferred_element_type=jnp.float32)
        acc = jnp.maximum(acc + b_ref[...], 0.0)        # bias + ReLU in f32
        # Fused 2x2/2 maxpool: neighbor maxima, then exact 0/1 selection
        # matmuls with bf16 operands (values get bf16-rounded here, matching
        # the bf16 operand convention of the next matmul).
        hmax = jnp.maximum(acc[:-1, :], acc[1:, :])
        vmax = jnp.maximum(hmax[:, :-1], hmax[:, 1:]).astype(jnp.bfloat16)
        rows = jnp.dot(r_ref[...], vmax,
                       preferred_element_type=jnp.float32).astype(jnp.bfloat16)
        return jnp.dot(rows, s_ref[...],
                       preferred_element_type=jnp.float32).astype(jnp.bfloat16)

    # Conv tower, statically unrolled over the batch tile.
    for b in range(tb):
        xt = x_ref[b].astype(jnp.bfloat16)                       # (32, 96)
        p1 = conv_relu_pool(xt, w1_ref, b1_ref, r1_ref, s1_ref)   # (14, 84)
        p2 = conv_relu_pool(p1, w2_ref, b2_ref, r2_ref, s2_ref)   # (5, 80)
        feat_ref[b] = p2

    # FC stack on the whole batch tile (weights resident in VMEM).
    feat = feat_ref[...]                                          # (TB, 5, 80)
    z = fb1_ref[...]                                              # (1, 120)
    for w in range(feat.shape[1]):        # fc1 as 5 matmuls -> no in-kernel reshape
        z = z + jnp.dot(feat[:, w, :], fw1_ref[w],
                        preferred_element_type=jnp.float32)
    z = jnp.maximum(z, 0.0).astype(jnp.bfloat16)                  # (TB, 120)
    z = jnp.dot(z, fw2_ref[...], preferred_element_type=jnp.float32) + fb2_ref[...]
    z = jnp.maximum(z, 0.0).astype(jnp.bfloat16)                  # (TB, 84)
    o_ref[...] = jnp.dot(z, fw3_ref[...],
                         preferred_element_type=jnp.float32) + fb3_ref[...]


# ------------------------------ Pallas wrapper -------------------------------

def _pick_batch_tile(n):
    """Whole batch for tiny n, else a multiple of 8 keeping >=2 parallel steps
    (v7x has two TensorCores that only get work via parallel grid steps)."""
    if n <= 8:
        return max(n, 1)
    return 16 if n >= 128 else 8


def _fused_forward(xt, packed, tb):
    n = xt.shape[0]
    c1, c2 = packed["conv1"], packed["conv2"]
    args = (xt,
            c1["w"], c1["b"], c1["r"], c1["s"],
            c2["w"], c2["b"], c2["r"], c2["s"],
            packed["fc1_w"], packed["fc1_b"],
            packed["fc2_w"], packed["fc2_b"],
            packed["fc3_w"], packed["fc3_b"])

    def resident(a):                      # constant block index -> stays in VMEM
        return pl.BlockSpec(a.shape, lambda i, _nd=a.ndim: (0,) * _nd)

    in_specs = [pl.BlockSpec((tb, xt.shape[1], xt.shape[2]), lambda i: (i, 0, 0))]
    in_specs += [resident(a) for a in args[1:]]

    return pl.pallas_call(
        _convnet_kernel,
        out_shape=jax.ShapeDtypeStruct((n, 10), jnp.float32),
        grid=(n // tb,),
        in_specs=in_specs,
        out_specs=pl.BlockSpec((tb, 10), lambda i: (i, 0)),
        scratch_shapes=[pltpu.VMEM((tb, 5, 80), jnp.bfloat16)],
        compiler_params=pltpu.CompilerParams(
            dimension_semantics=("parallel",)),
    )(*args)


# --------------------------- one-time weight packing -------------------------

def _pack_conv_layer(weight, bias, h, w):
    """Torch (OC,C,KH,KW) conv weight -> transposed per-tap Toeplitz matrices
    plus 0/1 maxpool decimation matrices.

    wtap[t, c*H+hh, oc*OH+oh] = weight[oc, c, hh-oh, t] (0 if out of range), so
      conv_T[ow, oc*OH+oh] = sum_t (x_T[t:t+OW, :] @ wtap[t])[ow, oc*OH+oh]
    equals torch's valid conv output at (oc, oh, ow).
    """
    oc, c, kh, kw = weight.shape
    oh, ow = h - kh + 1, w - kw + 1
    ohp, owp = oh // 2, ow // 2

    oh_idx = jnp.arange(oh)[:, None]                       # (OH, 1)
    hh_idx = jnp.arange(h)[None, :]                        # (1, H)
    kh_idx = hh_idx - oh_idx                               # (OH, H)
    valid = (kh_idx >= 0) & (kh_idx < kh)
    wt = jnp.transpose(weight, (3, 0, 1, 2))               # (KW, OC, C, KH)
    g = wt[:, :, :, jnp.clip(kh_idx, 0, kh - 1)]           # (KW, OC, C, OH, H)
    g = jnp.where(valid[None, None, None, :, :], g, 0.0)
    wtap = jnp.transpose(g, (0, 2, 4, 1, 3)).reshape(kw, c * h, oc * oh)

    b_cols = jnp.repeat(bias, oh).reshape(1, oc * oh)
    # 2x2/2 maxpool as exact 0/1 selections (OH, OW even here: 28/24 -> 28, 10).
    rmat = (jnp.arange(ow - 1)[None, :] ==
            2 * jnp.arange(owp)[:, None]).astype(jnp.bfloat16)
    smat = (jnp.arange(oc * oh - 1)[:, None] ==
            2 * jnp.arange(oc * ohp)[None, :]).astype(jnp.bfloat16)
    return {"w": wtap.astype(jnp.bfloat16), "b": b_cols.astype(jnp.float32),
            "r": rmat, "s": smat}


def pack_params(params):
    """One-time repack of torch-layout parameters into TPU-friendly layouts."""
    # fc1 rows permuted from torch's flatten order (oc, oh, ow) to our pooled
    # conv2 layout (ow, oc, oh), split per ow so the kernel needs no reshape.
    fw1 = params["fc1_w"].reshape(16, 5, 5, 120)                 # (oc, oh, ow, 120)
    fw1 = jnp.transpose(fw1, (2, 0, 1, 3)).reshape(5, 80, 120)   # (ow, oc*5+oh, 120)
    return {
        "conv1": _pack_conv_layer(params["conv1_w"], params["conv1_b"], 32, 32),
        "conv2": _pack_conv_layer(params["conv2_w"], params["conv2_b"], 14, 14),
        "fc1_w": fw1.astype(jnp.bfloat16),
        "fc1_b": params["fc1_b"].reshape(1, -1).astype(jnp.float32),
        "fc2_w": params["fc2_w"].astype(jnp.bfloat16),
        "fc2_b": params["fc2_b"].reshape(1, -1).astype(jnp.float32),
        "fc3_w": params["fc3_w"].astype(jnp.bfloat16),
        "fc3_b": params["fc3_b"].reshape(1, -1).astype(jnp.float32),
    }


# ------------------------------- the network --------------------------------

def init_params(key):
    ks = jax.random.split(key, 10)

    def u(k, shape, fan_in):
        bound = 1.0 / (fan_in ** 0.5)
        return jax.random.uniform(k, shape, jnp.float32, -bound, bound)

    return {
        "conv1_w": u(ks[0], (6, 3, 5, 5), 3 * 25),
        "conv1_b": u(ks[1], (6,), 3 * 25),
        "conv2_w": u(ks[2], (16, 6, 5, 5), 6 * 25),
        "conv2_b": u(ks[3], (16,), 6 * 25),
        "fc1_w":   u(ks[4], (16 * 5 * 5, 120), 16 * 5 * 5),
        "fc1_b":   u(ks[5], (120,), 16 * 5 * 5),
        "fc2_w":   u(ks[6], (120, 84), 120),
        "fc2_b":   u(ks[7], (84,), 120),
        "fc3_w":   u(ks[8], (84, 10), 84),
        "fc3_b":   u(ks[9], (10,), 84),
    }


@jax.jit
def convnet_forward(packed, x):
    # x: (N, 3, 32, 32) f32 (NCHW, like the torch module)
    n = x.shape[0]
    tb = _pick_batch_tile(n)
    n_pad = ((n + tb - 1) // tb) * tb
    if n_pad != n:
        x = jnp.pad(x, ((0, n_pad - n), (0, 0), (0, 0), (0, 0)))
    # NCHW -> (N, W, C*H): width on sublanes, (channel, height) on lanes.
    xt = jnp.transpose(x, (0, 3, 1, 2)).reshape(n_pad, 32, 3 * 32)
    logits = _fused_forward(xt, packed, tb)
    return logits[:n]


# ------------------------------ pure-JAX reference ---------------------------

def reference_forward(params, x):
    """bf16-operand / f32-accumulate reference matching the kernel numerics."""
    def bf(v):
        return v.astype(jnp.bfloat16).astype(jnp.float32)

    def conv(x, w, b):
        y = jax.lax.conv_general_dilated(
            bf(x), bf(w), window_strides=(1, 1), padding="VALID",
            dimension_numbers=("NCHW", "OIHW", "NCHW"))
        return jax.nn.relu(y + b[None, :, None, None])

    def pool(x):
        return jnp.maximum(
            jnp.maximum(x[:, :, 0::2, 0::2], x[:, :, 0::2, 1::2]),
            jnp.maximum(x[:, :, 1::2, 0::2], x[:, :, 1::2, 1::2]))

    x = pool(conv(x, params["conv1_w"], params["conv1_b"]))
    x = pool(conv(x, params["conv2_w"], params["conv2_b"]))
    x = x.reshape(x.shape[0], -1)
    x = jax.nn.relu(bf(x) @ bf(params["fc1_w"]) + params["fc1_b"])
    x = jax.nn.relu(bf(x) @ bf(params["fc2_w"]) + params["fc2_b"])
    return bf(x) @ bf(params["fc3_w"]) + params["fc3_b"]


if __name__ == "__main__":
    key = jax.random.PRNGKey(0)
    pkey, xkey = jax.random.split(key)
    params = init_params(pkey)
    packed = pack_params(params)               # one-time repack (Toeplitz + bf16)
    x = jax.random.normal(xkey, (2, 3, 32, 32), dtype=jnp.float32)

    out = convnet_forward(packed, x)
    out = jax.block_until_ready(out)
    assert out.shape == (2, 10), out.shape
    assert bool(jnp.all(jnp.isfinite(out)))

    ref = reference_forward(params, x)
    assert bool(jnp.allclose(out, ref, rtol=2e-2, atol=2e-2)), (
        float(jnp.max(jnp.abs(out - ref))))

    print("KERNEL_OK")
</pallas_src>

<mosaic_0001>
module attributes {stable_mosaic.version = 11 : i64} {
  func.func @_convnet_kernel(%arg0: i32, %arg1: memref<2x32x96xf32, #tpu.memory_space<vmem>>, %arg2: memref<5x96x168xbf16, #tpu.memory_space<vmem>>, %arg3: memref<1x168xf32, #tpu.memory_space<vmem>>, %arg4: memref<14x27xbf16, #tpu.memory_space<vmem>>, %arg5: memref<167x84xbf16, #tpu.memory_space<vmem>>, %arg6: memref<5x84x160xbf16, #tpu.memory_space<vmem>>, %arg7: memref<1x160xf32, #tpu.memory_space<vmem>>, %arg8: memref<5x9xbf16, #tpu.memory_space<vmem>>, %arg9: memref<159x80xbf16, #tpu.memory_space<vmem>>, %arg10: memref<5x80x120xbf16, #tpu.memory_space<vmem>>, %arg11: memref<1x120xf32, #tpu.memory_space<vmem>>, %arg12: memref<120x84xbf16, #tpu.memory_space<vmem>>, %arg13: memref<1x84xf32, #tpu.memory_space<vmem>>, %arg14: memref<84x10xbf16, #tpu.memory_space<vmem>>, %arg15: memref<1x10xf32, #tpu.memory_space<vmem>>, %arg16: memref<2x10xf32, #tpu.memory_space<vmem>>, %arg17: memref<2x5x80xbf16, #tpu.memory_space<vmem>>) attributes {dimension_semantics = [#tpu.dimension_semantics<parallel>], iteration_bounds = array<i64: 1>, scalar_prefetch = 0 : i64, scratch_operands = 1 : i64, tpu.core_type = #tpu.core_type<tc>, window_params = [{transform_indices = @transform_0, window_bounds = array<i64: 2, 32, 96>}, {pipeline_mode = #tpu.pipeline_mode<synchronous>, transform_indices = @transform_1, window_bounds = array<i64: 5, 96, 168>}, {pipeline_mode = #tpu.pipeline_mode<synchronous>, transform_indices = @transform_2, window_bounds = array<i64: 1, 168>}, {pipeline_mode = #tpu.pipeline_mode<synchronous>, transform_indices = @transform_3, window_bounds = array<i64: 14, 27>}, {pipeline_mode = #tpu.pipeline_mode<synchronous>, transform_indices = @transform_4, window_bounds = array<i64: 167, 84>}, {pipeline_mode = #tpu.pipeline_mode<synchronous>, transform_indices = @transform_5, window_bounds = array<i64: 5, 84, 160>}, {pipeline_mode = #tpu.pipeline_mode<synchronous>, transform_indices = @transform_6, window_bounds = array<i64: 1, 160>}, {pipeline_mode = #tpu.pipeline_mode<synchronous>, transform_indices = @transform_7, window_bounds = array<i64: 5, 9>}, {pipeline_mode = #tpu.pipeline_mode<synchronous>, transform_indices = @transform_8, window_bounds = array<i64: 159, 80>}, {pipeline_mode = #tpu.pipeline_mode<synchronous>, transform_indices = @transform_9, window_bounds = array<i64: 5, 80, 120>}, {pipeline_mode = #tpu.pipeline_mode<synchronous>, transform_indices = @transform_10, window_bounds = array<i64: 1, 120>}, {pipeline_mode = #tpu.pipeline_mode<synchronous>, transform_indices = @transform_11, window_bounds = array<i64: 120, 84>}, {pipeline_mode = #tpu.pipeline_mode<synchronous>, transform_indices = @transform_12, window_bounds = array<i64: 1, 84>}, {pipeline_mode = #tpu.pipeline_mode<synchronous>, transform_indices = @transform_13, window_bounds = array<i64: 84, 10>}, {pipeline_mode = #tpu.pipeline_mode<synchronous>, transform_indices = @transform_14, window_bounds = array<i64: 1, 10>}, {transform_indices = @transform_15, window_bounds = array<i64: 2, 10>}]} {
    %c0 = arith.constant 0 : index
    %c0_0 = arith.constant 0 : index
    %c0_1 = arith.constant 0 : index
    %0 = vector.load %arg1[%c0, %c0_0, %c0_1] : memref<2x32x96xf32, #tpu.memory_space<vmem>>, vector<1x32x96xf32>
    %1 = vector.shape_cast %0 : vector<1x32x96xf32> to vector<32x96xf32>
    %2 = arith.truncf %1 : vector<32x96xf32> to vector<32x96xbf16>
    %3 = vector.extract_strided_slice %2 {offsets = [0, 0], sizes = [28, 96], strides = [1, 1]} : vector<32x96xbf16> to vector<28x96xbf16>
    %c0_2 = arith.constant 0 : index
    %c0_3 = arith.constant 0 : index
    %c0_4 = arith.constant 0 : index
    %4 = vector.load %arg2[%c0_2, %c0_3, %c0_4] : memref<5x96x168xbf16, #tpu.memory_space<vmem>>, vector<1x96x168xbf16>
    %5 = vector.shape_cast %4 : vector<1x96x168xbf16> to vector<96x168xbf16>
    %cst = arith.constant dense<0.000000e+00> : vector<28x168xf32>
    %6 = tpu.matmul %3, %5, %cst {dimension_numbers = #tpu.dot_dimension_numbers<[1], [0], [0], [1], [0, 0, 1, 1], [], []>} : vector<28x96xbf16>, vector<96x168xbf16>, vector<28x168xf32> -> vector<28x168xf32>
    %7 = vector.extract_strided_slice %2 {offsets = [1, 0], sizes = [28, 96], strides = [1, 1]} : vector<32x96xbf16> to vector<28x96xbf16>
    %c1 = arith.constant 1 : index
    %c0_5 = arith.constant 0 : index
    %c0_6 = arith.constant 0 : index
    %8 = vector.load %arg2[%c1, %c0_5, %c0_6] : memref<5x96x168xbf16, #tpu.memory_space<vmem>>, vector<1x96x168xbf16>
    %9 = vector.shape_cast %8 : vector<1x96x168xbf16> to vector<96x168xbf16>
    %cst_7 = arith.constant dense<0.000000e+00> : vector<28x168xf32>
    %10 = tpu.matmul %7, %9, %cst_7 {dimension_numbers = #tpu.dot_dimension_numbers<[1], [0], [0], [1], [0, 0, 1, 1], [], []>} : vector<28x96xbf16>, vector<96x168xbf16>, vector<28x168xf32> -> vector<28x168xf32>
    %11 = arith.addf %6, %10 : vector<28x168xf32>
    %12 = vector.extract_strided_slice %2 {offsets = [2, 0], sizes = [28, 96], strides = [1, 1]} : vector<32x96xbf16> to vector<28x96xbf16>
    %c2 = arith.constant 2 : index
    %c0_8 = arith.constant 0 : index
    %c0_9 = arith.constant 0 : index
    %13 = vector.load %arg2[%c2, %c0_8, %c0_9] : memref<5x96x168xbf16, #tpu.memory_space<vmem>>, vector<1x96x168xbf16>
    %14 = vector.shape_cast %13 : vector<1x96x168xbf16> to vector<96x168xbf16>
    %cst_10 = arith.constant dense<0.000000e+00> : vector<28x168xf32>
    %15 = tpu.matmul %12, %14, %cst_10 {dimension_numbers = #tpu.dot_dimension_numbers<[1], [0], [0], [1], [0, 0, 1, 1], [], []>} : vector<28x96xbf16>, vector<96x168xbf16>, vector<28x168xf32> -> vector<28x168xf32>
    %16 = arith.addf %11, %15 : vector<28x168xf32>
    %17 = vector.extract_strided_slice %2 {offsets = [3, 0], sizes = [28, 96], strides = [1, 1]} : vector<32x96xbf16> to vector<28x96xbf16>
    %c3 = arith.constant 3 : index
    %c0_11 = arith.constant 0 : index
    %c0_12 = arith.constant 0 : index
    %18 = vector.load %arg2[%c3, %c0_11, %c0_12] : memref<5x96x168xbf16, #tpu.memory_space<vmem>>, vector<1x96x168xbf16>
    %19 = vector.shape_cast %18 : vector<1x96x168xbf16> to vector<96x168xbf16>
    %cst_13 = arith.constant dense<0.000000e+00> : vector<28x168xf32>
    %20 = tpu.matmul %17, %19, %cst_13 {dimension_numbers = #tpu.dot_dimension_numbers<[1], [0], [0], [1], [0, 0, 1, 1], [], []>} : vector<28x96xbf16>, vector<96x168xbf16>, vector<28x168xf32> -> vector<28x168xf32>
    %21 = arith.addf %16, %20 : vector<28x168xf32>
    %22 = vector.extract_strided_slice %2 {offsets = [4, 0], sizes = [28, 96], strides = [1, 1]} : vector<32x96xbf16> to vector<28x96xbf16>
    %c4 = arith.constant 4 : index
    %c0_14 = arith.constant 0 : index
    %c0_15 = arith.constant 0 : index
    %23 = vector.load %arg2[%c4, %c0_14, %c0_15] : memref<5x96x168xbf16, #tpu.memory_space<vmem>>, vector<1x96x168xbf16>
    %24 = vector.shape_cast %23 : vector<1x96x168xbf16> to vector<96x168xbf16>
    %cst_16 = arith.constant dense<0.000000e+00> : vector<28x168xf32>
    %25 = tpu.matmul %22, %24, %cst_16 {dimension_numbers = #tpu.dot_dimension_numbers<[1], [0], [0], [1], [0, 0, 1, 1], [], []>} : vector<28x96xbf16>, vector<96x168xbf16>, vector<28x168xf32> -> vector<28x168xf32>
    %26 = arith.addf %21, %25 : vector<28x168xf32>
    %c0_17 = arith.constant 0 : index
    %c0_18 = arith.constant 0 : index
    %27 = vector.load %arg3[%c0_17, %c0_18] : memref<1x168xf32, #tpu.memory_space<vmem>>, vector<1x168xf32>
    %28 = vector.broadcast %27 : vector<1x168xf32> to vector<28x168xf32>
    %29 = arith.addf %26, %28 : vector<28x168xf32>
    %cst_19 = arith.constant 0.000000e+00 : f32
    %30 = vector.broadcast %cst_19 : f32 to vector<28x168xf32>
    %31 = arith.maximumf %29, %30 : vector<28x168xf32>
    %32 = vector.extract_strided_slice %31 {offsets = [0, 0], sizes = [27, 168], strides = [1, 1]} : vector<28x168xf32> to vector<27x168xf32>
    %33 = vector.extract_strided_slice %31 {offsets = [1, 0], sizes = [27, 168], strides = [1, 1]} : vector<28x168xf32> to vector<27x168xf32>
    %34 = arith.maximumf %32, %33 : vector<27x168xf32>
    %35 = vector.extract_strided_slice %34 {offsets = [0, 0], sizes = [27, 167], strides = [1, 1]} : vector<27x168xf32> to vector<27x167xf32>
    %36 = vector.extract_strided_slice %34 {offsets = [0, 1], sizes = [27, 167], strides = [1, 1]} : vector<27x168xf32> to vector<27x167xf32>
    %37 = arith.maximumf %35, %36 : vector<27x167xf32>
    %38 = arith.truncf %37 : vector<27x167xf32> to vector<27x167xbf16>
    %c0_20 = arith.constant 0 : index
    %c0_21 = arith.constant 0 : index
    %39 = vector.load %arg4[%c0_20, %c0_21] : memref<14x27xbf16, #tpu.memory_space<vmem>>, vector<14x27xbf16>
    %cst_22 = arith.constant dense<0.000000e+00> : vector<14x167xf32>
    %40 = tpu.matmul %39, %38, %cst_22 {dimension_numbers = #tpu.dot_dimension_numbers<[1], [0], [0], [1], [0, 0, 1, 1], [], []>} : vector<14x27xbf16>, vector<27x167xbf16>, vector<14x167xf32> -> vector<14x167xf32>
    %41 = arith.truncf %40 : vector<14x167xf32> to vector<14x167xbf16>
    %c0_23 = arith.constant 0 : index
    %c0_24 = arith.constant 0 : index
    %42 = vector.load %arg5[%c0_23, %c0_24] : memref<167x84xbf16, #tpu.memory_space<vmem>>, vector<167x84xbf16>
    %cst_25 = arith.constant dense<0.000000e+00> : vector<14x84xf32>
    %43 = tpu.matmul %41, %42, %cst_25 {dimension_numbers = #tpu.dot_dimension_numbers<[1], [0], [0], [1], [0, 0, 1, 1], [], []>} : vector<14x167xbf16>, vector<167x84xbf16>, vector<14x84xf32> -> vector<14x84xf32>
    %44 = arith.truncf %43 : vector<14x84xf32> to vector<14x84xbf16>
    %45 = vector.extract_strided_slice %44 {offsets = [0, 0], sizes = [10, 84], strides = [1, 1]} : vector<14x84xbf16> to vector<10x84xbf16>
    %c0_26 = arith.constant 0 : index
    %c0_27 = arith.constant 0 : index
    %c0_28 = arith.constant 0 : index
    %46 = vector.load %arg6[%c0_26, %c0_27, %c0_28] : memref<5x84x160xbf16, #tpu.memory_space<vmem>>, vector<1x84x160xbf16>
    %47 = vector.shape_cast %46 : vector<1x84x160xbf16> to vector<84x160xbf16>
    %cst_29 = arith.constant dense<0.000000e+00> : vector<10x160xf32>
    %48 = tpu.matmul %45, %47, %cst_29 {dimension_numbers = #tpu.dot_dimension_numbers<[1], [0], [0], [1], [0, 0, 1, 1], [], []>} : vector<10x84xbf16>, vector<84x160xbf16>, vector<10x160xf32> -> vector<10x160xf32>
    %49 = vector.extract_strided_slice %44 {offsets = [1, 0], sizes = [10, 84], strides = [1, 1]} : vector<14x84xbf16> to vector<10x84xbf16>
    %c1_30 = arith.constant 1 : index
    %c0_31 = arith.constant 0 : index
    %c0_32 = arith.constant 0 : index
    %50 = vector.load %arg6[%c1_30, %c0_31, %c0_32] : memref<5x84x160xbf16, #tpu.memory_space<vmem>>, vector<1x84x160xbf16>
    %51 = vector.shape_cast %50 : vector<1x84x160xbf16> to vector<84x160xbf16>
    %cst_33 = arith.constant dense<0.000000e+00> : vector<10x160xf32>
    %52 = tpu.matmul %49, %51, %cst_33 {dimension_numbers = #tpu.dot_dimension_numbers<[1], [0], [0], [1], [0, 0, 1, 1], [], []>} : vector<10x84xbf16>, vector<84x160xbf16>, vector<10x160xf32> -> vector<10x160xf32>
    %53 = arith.addf %48, %52 : vector<10x160xf32>
    %54 = vector.extract_strided_slice %44 {offsets = [2, 0], sizes = [10, 84], strides = [1, 1]} : vector<14x84xbf16> to vector<10x84xbf16>
    %c2_34 = arith.constant 2 : index
    %c0_35 = arith.constant 0 : index
    %c0_36 = arith.constant 0 : index
    %55 = vector.load %arg6[%c2_34, %c0_35, %c0_36] : memref<5x84x160xbf16, #tpu.memory_space<vmem>>, vector<1x84x160xbf16>
    %56 = vector.shape_cast %55 : vector<1x84x160xbf16> to vector<84x160xbf16>
    %cst_37 = arith.constant dense<0.000000e+00> : vector<10x160xf32>
    %57 = tpu.matmul %54, %56, %cst_37 {dimension_numbers = #tpu.dot_dimension_numbers<[1], [0], [0], [1], [0, 0, 1, 1], [], []>} : vector<10x84xbf16>, vector<84x160xbf16>, vector<10x160xf32> -> vector<10x160xf32>
    %58 = arith.addf %53, %57 : vector<10x160xf32>
    %59 = vector.extract_strided_slice %44 {offsets = [3, 0], sizes = [10, 84], strides = [1, 1]} : vector<14x84xbf16> to vector<10x84xbf16>
    %c3_38 = arith.constant 3 : index
    %c0_39 = arith.constant 0 : index
    %c0_40 = arith.constant 0 : index
    %60 = vector.load %arg6[%c3_38, %c0_39, %c0_40] : memref<5x84x160xbf16, #tpu.memory_space<vmem>>, vector<1x84x160xbf16>
    %61 = vector.shape_cast %60 : vector<1x84x160xbf16> to vector<84x160xbf16>
    %cst_41 = arith.constant dense<0.000000e+00> : vector<10x160xf32>
    %62 = tpu.matmul %59, %61, %cst_41 {dimension_numbers = #tpu.dot_dimension_numbers<[1], [0], [0], [1], [0, 0, 1, 1], [], []>} : vector<10x84xbf16>, vector<84x160xbf16>, vector<10x160xf32> -> vector<10x160xf32>
    %63 = arith.addf %58, %62 : vector<10x160xf32>
    %64 = vector.extract_strided_slice %44 {offsets = [4, 0], sizes = [10, 84], strides = [1, 1]} : vector<14x84xbf16> to vector<10x84xbf16>
    %c4_42 = arith.constant 4 : index
    %c0_43 = arith.constant 0 : index
    %c0_44 = arith.constant 0 : index
    %65 = vector.load %arg6[%c4_42, %c0_43, %c0_44] : memref<5x84x160xbf16, #tpu.memory_space<vmem>>, vector<1x84x160xbf16>
    %66 = vector.shape_cast %65 : vector<1x84x160xbf16> to vector<84x160xbf16>
    %cst_45 = arith.constant dense<0.000000e+00> : vector<10x160xf32>
    %67 = tpu.matmul %64, %66, %cst_45 {dimension_numbers = #tpu.dot_dimension_numbers<[1], [0], [0], [1], [0, 0, 1, 1], [], []>} : vector<10x84xbf16>, vector<84x160xbf16>, vector<10x160xf32> -> vector<10x160xf32>
    %68 = arith.addf %63, %67 : vector<10x160xf32>
    %c0_46 = arith.constant 0 : index
    %c0_47 = arith.constant 0 : index
    %69 = vector.load %arg7[%c0_46, %c0_47] : memref<1x160xf32, #tpu.memory_space<vmem>>, vector<1x160xf32>
    %70 = vector.broadcast %69 : vector<1x160xf32> to vector<10x160xf32>
    %71 = arith.addf %68, %70 : vector<10x160xf32>
    %cst_48 = arith.constant 0.000000e+00 : f32
    %72 = vector.broadcast %cst_48 : f32 to vector<10x160xf32>
    %73 = arith.maximumf %71, %72 : vector<10x160xf32>
    %74 = vector.extract_strided_slice %73 {offsets = [0, 0], sizes = [9, 160], strides = [1, 1]} : vector<10x160xf32> to vector<9x160xf32>
    %75 = vector.extract_strided_slice %73 {offsets = [1, 0], sizes = [9, 160], strides = [1, 1]} : vector<10x160xf32> to vector<9x160xf32>
    %76 = arith.maximumf %74, %75 : vector<9x160xf32>
    %77 = vector.extract_strided_slice %76 {offsets = [0, 0], sizes = [9, 159], strides = [1, 1]} : vector<9x160xf32> to vector<9x159xf32>
    %78 = vector.extract_strided_slice %76 {offsets = [0, 1], sizes = [9, 159], strides = [1, 1]} : vector<9x160xf32> to vector<9x159xf32>
    %79 = arith.maximumf %77, %78 : vector<9x159xf32>
    %80 = arith.truncf %79 : vector<9x159xf32> to vector<9x159xbf16>
    %c0_49 = arith.constant 0 : index
    %c0_50 = arith.constant 0 : index
    %81 = vector.load %arg8[%c0_49, %c0_50] : memref<5x9xbf16, #tpu.memory_space<vmem>>, vector<5x9xbf16>
    %cst_51 = arith.constant dense<0.000000e+00> : vector<5x159xf32>
    %82 = tpu.matmul %81, %80, %cst_51 {dimension_numbers = #tpu.dot_dimension_numbers<[1], [0], [0], [1], [0, 0, 1, 1], [], []>} : vector<5x9xbf16>, vector<9x159xbf16>, vector<5x159xf32> -> vector<5x159xf32>
    %83 = arith.truncf %82 : vector<5x159xf32> to vector<5x159xbf16>
    %c0_52 = arith.constant 0 : index
    %c0_53 = arith.constant 0 : index
    %84 = vector.load %arg9[%c0_52, %c0_53] : memref<159x80xbf16, #tpu.memory_space<vmem>>, vector<159x80xbf16>
    %cst_54 = arith.constant dense<0.000000e+00> : vector<5x80xf32>
    %85 = tpu.matmul %83, %84, %cst_54 {dimension_numbers = #tpu.dot_dimension_numbers<[1], [0], [0], [1], [0, 0, 1, 1], [], []>} : vector<5x159xbf16>, vector<159x80xbf16>, vector<5x80xf32> -> vector<5x80xf32>
    %86 = arith.truncf %85 : vector<5x80xf32> to vector<5x80xbf16>
    %c0_55 = arith.constant 0 : index
    %c0_56 = arith.constant 0 : index
    %c0_57 = arith.constant 0 : index
    %87 = vector.load %arg17[%c0_55, %c0_56, %c0_57] : memref<2x5x80xbf16, #tpu.memory_space<vmem>>, vector<1x5x80xbf16>
    %88 = vector.shape_cast %87 : vector<1x5x80xbf16> to vector<5x80xbf16>
    %89 = vector.shape_cast %86 : vector<5x80xbf16> to vector<1x5x80xbf16>
    tpu.vector_store %arg17[%c0_55, %c0_56, %c0_57], %89 {strides = array<i32>} : memref<2x5x80xbf16, #tpu.memory_space<vmem>>, vector<1x5x80xbf16>,
    %c1_58 = arith.constant 1 : index
    %c0_59 = arith.constant 0 : index
    %c0_60 = arith.constant 0 : index
    %90 = vector.load %arg1[%c1_58, %c0_59, %c0_60] : memref<2x32x96xf32, #tpu.memory_space<vmem>>, vector<1x32x96xf32>
    %91 = vector.shape_cast %90 : vector<1x32x96xf32> to vector<32x96xf32>
    %92 = arith.truncf %91 : vector<32x96xf32> to vector<32x96xbf16>
    %93 = vector.extract_strided_slice %92 {offsets = [0, 0], sizes = [28, 96], strides = [1, 1]} : vector<32x96xbf16> to vector<28x96xbf16>
    %c0_61 = arith.constant 0 : index
    %c0_62 = arith.constant 0 : index
    %c0_63 = arith.constant 0 : index
    %94 = vector.load %arg2[%c0_61, %c0_62, %c0_63] : memref<5x96x168xbf16, #tpu.memory_space<vmem>>, vector<1x96x168xbf16>
    %95 = vector.shape_cast %94 : vector<1x96x168xbf16> to vector<96x168xbf16>
    %cst_64 = arith.constant dense<0.000000e+00> : vector<28x168xf32>
    %96 = tpu.matmul %93, %95, %cst_64 {dimension_numbers = #tpu.dot_dimension_numbers<[1], [0], [0], [1], [0, 0, 1, 1], [], []>} : vector<28x96xbf16>, vector<96x168xbf16>, vector<28x168xf32> -> vector<28x168xf32>
    %97 = vector.extract_strided_slice %92 {offsets = [1, 0], sizes = [28, 96], strides = [1, 1]} : vector<32x96xbf16> to vector<28x96xbf16>
    %c1_65 = arith.constant 1 : index
    %c0_66 = arith.constant 0 : index
    %c0_67 = arith.constant 0 : index
    %98 = vector.load %arg2[%c1_65, %c0_66, %c0_67] : memref<5x96x168xbf16, #tpu.memory_space<vmem>>, vector<1x96x168xbf16>
    %99 = vector.shape_cast %98 : vector<1x96x168xbf16> to vector<96x168xbf16>
    %cst_68 = arith.constant dense<0.000000e+00> : vector<28x168xf32>
    %100 = tpu.matmul %97, %99, %cst_68 {dimension_numbers = #tpu.dot_dimension_numbers<[1], [0], [0], [1], [0, 0, 1, 1], [], []>} : vector<28x96xbf16>, vector<96x168xbf16>, vector<28x168xf32> -> vector<28x168xf32>
    %101 = arith.addf %96, %100 : vector<28x168xf32>
    %102 = vector.extract_strided_slice %92 {offsets = [2, 0], sizes = [28, 96], strides = [1, 1]} : vector<32x96xbf16> to vector<28x96xbf16>
    %c2_69 = arith.constant 2 : index
    %c0_70 = arith.constant 0 : index
    %c0_71 = arith.constant 0 : index
    %103 = vector.load %arg2[%c2_69, %c0_70, %c0_71] : memref<5x96x168xbf16, #tpu.memory_space<vmem>>, vector<1x96x168xbf16>
    %104 = vector.shape_cast %103 : vector<1x96x168xbf16> to vector<96x168xbf16>
    %cst_72 = arith.constant dense<0.000000e+00> : vector<28x168xf32>
    %105 = tpu.matmul %102, %104, %cst_72 {dimension_numbers = #tpu.dot_dimension_numbers<[1], [0], [0], [1], [0, 0, 1, 1], [], []>} : vector<28x96xbf16>, vector<96x168xbf16>, vector<28x168xf32> -> vector<28x168xf32>
    %106 = arith.addf %101, %105 : vector<28x168xf32>
    %107 = vector.extract_strided_slice %92 {offsets = [3, 0], sizes = [28, 96], strides = [1, 1]} : vector<32x96xbf16> to vector<28x96xbf16>
    %c3_73 = arith.constant 3 : index
    %c0_74 = arith.constant 0 : index
    %c0_75 = arith.constant 0 : index
    %108 = vector.load %arg2[%c3_73, %c0_74, %c0_75] : memref<5x96x168xbf16, #tpu.memory_space<vmem>>, vector<1x96x168xbf16>
    %109 = vector.shape_cast %108 : vector<1x96x168xbf16> to vector<96x168xbf16>
    %cst_76 = arith.constant dense<0.000000e+00> : vector<28x168xf32>
    %110 = tpu.matmul %107, %109, %cst_76 {dimension_numbers = #tpu.dot_dimension_numbers<[1], [0], [0], [1], [0, 0, 1, 1], [], []>} : vector<28x96xbf16>, vector<96x168xbf16>, vector<28x168xf32> -> vector<28x168xf32>
    %111 = arith.addf %106, %110 : vector<28x168xf32>
    %112 = vector.extract_strided_slice %92 {offsets = [4, 0], sizes = [28, 96], strides = [1, 1]} : vector<32x96xbf16> to vector<28x96xbf16>
    %c4_77 = arith.constant 4 : index
    %c0_78 = arith.constant 0 : index
    %c0_79 = arith.constant 0 : index
    %113 = vector.load %arg2[%c4_77, %c0_78, %c0_79] : memref<5x96x168xbf16, #tpu.memory_space<vmem>>, vector<1x96x168xbf16>
    %114 = vector.shape_cast %113 : vector<1x96x168xbf16> to vector<96x168xbf16>
    %cst_80 = arith.constant dense<0.000000e+00> : vector<28x168xf32>
    %115 = tpu.matmul %112, %114, %cst_80 {dimension_numbers = #tpu.dot_dimension_numbers<[1], [0], [0], [1], [0, 0, 1, 1], [], []>} : vector<28x96xbf16>, vector<96x168xbf16>, vector<28x168xf32> -> vector<28x168xf32>
    %116 = arith.addf %111, %115 : vector<28x168xf32>
    %c0_81 = arith.constant 0 : index
    %c0_82 = arith.constant 0 : index
    %117 = vector.load %arg3[%c0_81, %c0_82] : memref<1x168xf32, #tpu.memory_space<vmem>>, vector<1x168xf32>
    %118 = vector.broadcast %117 : vector<1x168xf32> to vector<28x168xf32>
    %119 = arith.addf %116, %118 : vector<28x168xf32>
    %cst_83 = arith.constant 0.000000e+00 : f32
    %120 = vector.broadcast %cst_83 : f32 to vector<28x168xf32>
    %121 = arith.maximumf %119, %120 : vector<28x168xf32>
    %122 = vector.extract_strided_slice %121 {offsets = [0, 0], sizes = [27, 168], strides = [1, 1]} : vector<28x168xf32> to vector<27x168xf32>
    %123 = vector.extract_strided_slice %121 {offsets = [1, 0], sizes = [27, 168], strides = [1, 1]} : vector<28x168xf32> to vector<27x168xf32>
    %124 = arith.maximumf %122, %123 : vector<27x168xf32>
    %125 = vector.extract_strided_slice %124 {offsets = [0, 0], sizes = [27, 167], strides = [1, 1]} : vector<27x168xf32> to vector<27x167xf32>
    %126 = vector.extract_strided_slice %124 {offsets = [0, 1], sizes = [27, 167], strides = [1, 1]} : vector<27x168xf32> to vector<27x167xf32>
    %127 = arith.maximumf %125, %126 : vector<27x167xf32>
    %128 = arith.truncf %127 : vector<27x167xf32> to vector<27x167xbf16>
    %c0_84 = arith.constant 0 : index
    %c0_85 = arith.constant 0 : index
    %129 = vector.load %arg4[%c0_84, %c0_85] : memref<14x27xbf16, #tpu.memory_space<vmem>>, vector<14x27xbf16>
    %cst_86 = arith.constant dense<0.000000e+00> : vector<14x167xf32>
    %130 = tpu.matmul %129, %128, %cst_86 {dimension_numbers = #tpu.dot_dimension_numbers<[1], [0], [0], [1], [0, 0, 1, 1], [], []>} : vector<14x27xbf16>, vector<27x167xbf16>, vector<14x167xf32> -> vector<14x167xf32>
    %131 = arith.truncf %130 : vector<14x167xf32> to vector<14x167xbf16>
    %c0_87 = arith.constant 0 : index
    %c0_88 = arith.constant 0 : index
    %132 = vector.load %arg5[%c0_87, %c0_88] : memref<167x84xbf16, #tpu.memory_space<vmem>>, vector<167x84xbf16>
    %cst_89 = arith.constant dense<0.000000e+00> : vector<14x84xf32>
    %133 = tpu.matmul %131, %132, %cst_89 {dimension_numbers = #tpu.dot_dimension_numbers<[1], [0], [0], [1], [0, 0, 1, 1], [], []>} : vector<14x167xbf16>, vector<167x84xbf16>, vector<14x84xf32> -> vector<14x84xf32>
    %134 = arith.truncf %133 : vector<14x84xf32> to vector<14x84xbf16>
    %135 = vector.extract_strided_slice %134 {offsets = [0, 0], sizes = [10, 84], strides = [1, 1]} : vector<14x84xbf16> to vector<10x84xbf16>
    %c0_90 = arith.constant 0 : index
    %c0_91 = arith.constant 0 : index
    %c0_92 = arith.constant 0 : index
    %136 = vector.load %arg6[%c0_90, %c0_91, %c0_92] : memref<5x84x160xbf16, #tpu.memory_space<vmem>>, vector<1x84x160xbf16>
    %137 = vector.shape_cast %136 : vector<1x84x160xbf16> to vector<84x160xbf16>
    %cst_93 = arith.constant dense<0.000000e+00> : vector<10x160xf32>
    %138 = tpu.matmul %135, %137, %cst_93 {dimension_numbers = #tpu.dot_dimension_numbers<[1], [0], [0], [1], [0, 0, 1, 1], [], []>} : vector<10x84xbf16>, vector<84x160xbf16>, vector<10x160xf32> -> vector<10x160xf32>
    %139 = vector.extract_strided_slice %134 {offsets = [1, 0], sizes = [10, 84], strides = [1, 1]} : vector<14x84xbf16> to vector<10x84xbf16>
    %c1_94 = arith.constant 1 : index
    %c0_95 = arith.constant 0 : index
    %c0_96 = arith.constant 0 : index
    %140 = vector.load %arg6[%c1_94, %c0_95, %c0_96] : memref<5x84x160xbf16, #tpu.memory_space<vmem>>, vector<1x84x160xbf16>
    %141 = vector.shape_cast %140 : vector<1x84x160xbf16> to vector<84x160xbf16>
    %cst_97 = arith.constant dense<0.000000e+00> : vector<10x160xf32>
    %142 = tpu.matmul %139, %141, %cst_97 {dimension_numbers = #tpu.dot_dimension_numbers<[1], [0], [0], [1], [0, 0, 1, 1], [], []>} : vector<10x84xbf16>, vector<84x160xbf16>, vector<10x160xf32> -> vector<10x160xf32>
    %143 = arith.addf %138, %142 : vector<10x160xf32>
    %144 = vector.extract_strided_slice %134 {offsets = [2, 0], sizes = [10, 84], strides = [1, 1]} : vector<14x84xbf16> to vector<10x84xbf16>
    %c2_98 = arith.constant 2 : index
    %c0_99 = arith.constant 0 : index
    %c0_100 = arith.constant 0 : index
    %145 = vector.load %arg6[%c2_98, %c0_99, %c0_100] : memref<5x84x160xbf16, #tpu.memory_space<vmem>>, vector<1x84x160xbf16>
    %146 = vector.shape_cast %145 : vector<1x84x160xbf16> to vector<84x160xbf16>
    %cst_101 = arith.constant dense<0.000000e+00> : vector<10x160xf32>
    %147 = tpu.matmul %144, %146, %cst_101 {dimension_numbers = #tpu.dot_dimension_numbers<[1], [0], [0], [1], [0, 0, 1, 1], [], []>} : vector<10x84xbf16>, vector<84x160xbf16>, vector<10x160xf32> -> vector<10x160xf32>
    %148 = arith.addf %143, %147 : vector<10x160xf32>
    %149 = vector.extract_strided_slice %134 {offsets = [3, 0], sizes = [10, 84], strides = [1, 1]} : vector<14x84xbf16> to vector<10x84xbf16>
    %c3_102 = arith.constant 3 : index
    %c0_103 = arith.constant 0 : index
    %c0_104 = arith.constant 0 : index
    %150 = vector.load %arg6[%c3_102, %c0_103, %c0_104] : memref<5x84x160xbf16, #tpu.memory_space<vmem>>, vector<1x84x160xbf16>
    %151 = vector.shape_cast %150 : vector<1x84x160xbf16> to vector<84x160xbf16>
    %cst_105 = arith.constant dense<0.000000e+00> : vector<10x160xf32>
    %152 = tpu.matmul %149, %151, %cst_105 {dimension_numbers = #tpu.dot_dimension_numbers<[1], [0], [0], [1], [0, 0, 1, 1], [], []>} : vector<10x84xbf16>, vector<84x160xbf16>, vector<10x160xf32> -> vector<10x160xf32>
    %153 = arith.addf %148, %152 : vector<10x160xf32>
    %154 = vector.extract_strided_slice %134 {offsets = [4, 0], sizes = [10, 84], strides = [1, 1]} : vector<14x84xbf16> to vector<10x84xbf16>
    %c4_106 = arith.constant 4 : index
    %c0_107 = arith.constant 0 : index
    %c0_108 = arith.constant 0 : index
    %155 = vector.load %arg6[%c4_106, %c0_107, %c0_108] : memref<5x84x160xbf16, #tpu.memory_space<vmem>>, vector<1x84x160xbf16>
    %156 = vector.shape_cast %155 : vector<1x84x160xbf16> to vector<84x160xbf16>
    %cst_109 = arith.constant dense<0.000000e+00> : vector<10x160xf32>
    %157 = tpu.matmul %154, %156, %cst_109 {dimension_numbers = #tpu.dot_dimension_numbers<[1], [0], [0], [1], [0, 0, 1, 1], [], []>} : vector<10x84xbf16>, vector<84x160xbf16>, vector<10x160xf32> -> vector<10x160xf32>
    %158 = arith.addf %153, %157 : vector<10x160xf32>
    %c0_110 = arith.constant 0 : index
    %c0_111 = arith.constant 0 : index
    %159 = vector.load %arg7[%c0_110, %c0_111] : memref<1x160xf32, #tpu.memory_space<vmem>>, vector<1x160xf32>
    %160 = vector.broadcast %159 : vector<1x160xf32> to vector<10x160xf32>
    %161 = arith.addf %158, %160 : vector<10x160xf32>
    %cst_112 = arith.constant 0.000000e+00 : f32
    %162 = vector.broadcast %cst_112 : f32 to vector<10x160xf32>
    %163 = arith.maximumf %161, %162 : vector<10x160xf32>
    %164 = vector.extract_strided_slice %163 {offsets = [0, 0], sizes = [9, 160], strides = [1, 1]} : vector<10x160xf32> to vector<9x160xf32>
    %165 = vector.extract_strided_slice %163 {offsets = [1, 0], sizes = [9, 160], strides = [1, 1]} : vector<10x160xf32> to vector<9x160xf32>
    %166 = arith.maximumf %164, %165 : vector<9x160xf32>
    %167 = vector.extract_strided_slice %166 {offsets = [0, 0], sizes = [9, 159], strides = [1, 1]} : vector<9x160xf32> to vector<9x159xf32>
    %168 = vector.extract_strided_slice %166 {offsets = [0, 1], sizes = [9, 159], strides = [1, 1]} : vector<9x160xf32> to vector<9x159xf32>
    %169 = arith.maximumf %167, %168 : vector<9x159xf32>
    %170 = arith.truncf %169 : vector<9x159xf32> to vector<9x159xbf16>
    %c0_113 = arith.constant 0 : index
    %c0_114 = arith.constant 0 : index
    %171 = vector.load %arg8[%c0_113, %c0_114] : memref<5x9xbf16, #tpu.memory_space<vmem>>, vector<5x9xbf16>
    %cst_115 = arith.constant dense<0.000000e+00> : vector<5x159xf32>
    %172 = tpu.matmul %171, %170, %cst_115 {dimension_numbers = #tpu.dot_dimension_numbers<[1], [0], [0], [1], [0, 0, 1, 1], [], []>} : vector<5x9xbf16>, vector<9x159xbf16>, vector<5x159xf32> -> vector<5x159xf32>
    %173 = arith.truncf %172 : vector<5x159xf32> to vector<5x159xbf16>
    %c0_116 = arith.constant 0 : index
    %c0_117 = arith.constant 0 : index
    %174 = vector.load %arg9[%c0_116, %c0_117] : memref<159x80xbf16, #tpu.memory_space<vmem>>, vector<159x80xbf16>
    %cst_118 = arith.constant dense<0.000000e+00> : vector<5x80xf32>
    %175 = tpu.matmul %173, %174, %cst_118 {dimension_numbers = #tpu.dot_dimension_numbers<[1], [0], [0], [1], [0, 0, 1, 1], [], []>} : vector<5x159xbf16>, vector<159x80xbf16>, vector<5x80xf32> -> vector<5x80xf32>
    %176 = arith.truncf %175 : vector<5x80xf32> to vector<5x80xbf16>
    %c1_119 = arith.constant 1 : index
    %c0_120 = arith.constant 0 : index
    %c0_121 = arith.constant 0 : index
    %177 = vector.load %arg17[%c1_119, %c0_120, %c0_121] : memref<2x5x80xbf16, #tpu.memory_space<vmem>>, vector<1x5x80xbf16>
    %178 = vector.shape_cast %177 : vector<1x5x80xbf16> to vector<5x80xbf16>
    %179 = vector.shape_cast %176 : vector<5x80xbf16> to vector<1x5x80xbf16>
    tpu.vector_store %arg17[%c1_119, %c0_120, %c0_121], %179 {strides = array<i32>} : memref<2x5x80xbf16, #tpu.memory_space<vmem>>, vector<1x5x80xbf16>,
    %c0_122 = arith.constant 0 : index
    %c0_123 = arith.constant 0 : index
    %c0_124 = arith.constant 0 : index
    %180 = vector.load %arg17[%c0_122, %c0_123, %c0_124] : memref<2x5x80xbf16, #tpu.memory_space<vmem>>, vector<2x5x80xbf16>
    %c0_125 = arith.constant 0 : index
    %c0_126 = arith.constant 0 : index
    %181 = vector.load %arg11[%c0_125, %c0_126] : memref<1x120xf32, #tpu.memory_space<vmem>>, vector<1x120xf32>
    %182 = vector.extract_strided_slice %180 {offsets = [0, 0, 0], sizes = [2, 1, 80], strides = [1, 1, 1]} : vector<2x5x80xbf16> to vector<2x1x80xbf16>
    %183 = vector.shape_cast %182 : vector<2x1x80xbf16> to vector<2x80xbf16>
    %c0_127 = arith.constant 0 : index
    %c0_128 = arith.constant 0 : index
    %c0_129 = arith.constant 0 : index
    %184 = vector.load %arg10[%c0_127, %c0_128, %c0_129] : memref<5x80x120xbf16, #tpu.memory_space<vmem>>, vector<1x80x120xbf16>
    %185 = vector.shape_cast %184 : vector<1x80x120xbf16> to vector<80x120xbf16>
    %cst_130 = arith.constant dense<0.000000e+00> : vector<2x120xf32>
    %186 = tpu.matmul %183, %185, %cst_130 {dimension_numbers = #tpu.dot_dimension_numbers<[1], [0], [0], [1], [0, 0, 1, 1], [], []>} : vector<2x80xbf16>, vector<80x120xbf16>, vector<2x120xf32> -> vector<2x120xf32>
    %187 = vector.broadcast %181 : vector<1x120xf32> to vector<2x120xf32>
    %188 = arith.addf %187, %186 : vector<2x120xf32>
    %189 = vector.extract_strided_slice %180 {offsets = [0, 1, 0], sizes = [2, 1, 80], strides = [1, 1, 1]} : vector<2x5x80xbf16> to vector<2x1x80xbf16>
    %190 = vector.shape_cast %189 : vector<2x1x80xbf16> to vector<2x80xbf16>
    %c1_131 = arith.constant 1 : index
    %c0_132 = arith.constant 0 : index
    %c0_133 = arith.constant 0 : index
    %191 = vector.load %arg10[%c1_131, %c0_132, %c0_133] : memref<5x80x120xbf16, #tpu.memory_space<vmem>>, vector<1x80x120xbf16>
    %192 = vector.shape_cast %191 : vector<1x80x120xbf16> to vector<80x120xbf16>
    %cst_134 = arith.constant dense<0.000000e+00> : vector<2x120xf32>
    %193 = tpu.matmul %190, %192, %cst_134 {dimension_numbers = #tpu.dot_dimension_numbers<[1], [0], [0], [1], [0, 0, 1, 1], [], []>} : vector<2x80xbf16>, vector<80x120xbf16>, vector<2x120xf32> -> vector<2x120xf32>
    %194 = arith.addf %188, %193 : vector<2x120xf32>
    %195 = vector.extract_strided_slice %180 {offsets = [0, 2, 0], sizes = [2, 1, 80], strides = [1, 1, 1]} : vector<2x5x80xbf16> to vector<2x1x80xbf16>
    %196 = vector.shape_cast %195 : vector<2x1x80xbf16> to vector<2x80xbf16>
    %c2_135 = arith.constant 2 : index
    %c0_136 = arith.constant 0 : index
    %c0_137 = arith.constant 0 : index
    %197 = vector.load %arg10[%c2_135, %c0_136, %c0_137] : memref<5x80x120xbf16, #tpu.memory_space<vmem>>, vector<1x80x120xbf16>
    %198 = vector.shape_cast %197 : vector<1x80x120xbf16> to vector<80x120xbf16>
    %cst_138 = arith.constant dense<0.000000e+00> : vector<2x120xf32>
    %199 = tpu.matmul %196, %198, %cst_138 {dimension_numbers = #tpu.dot_dimension_numbers<[1], [0], [0], [1], [0, 0, 1, 1], [], []>} : vector<2x80xbf16>, vector<80x120xbf16>, vector<2x120xf32> -> vector<2x120xf32>
    %200 = arith.addf %194, %199 : vector<2x120xf32>
    %201 = vector.extract_strided_slice %180 {offsets = [0, 3, 0], sizes = [2, 1, 80], strides = [1, 1, 1]} : vector<2x5x80xbf16> to vector<2x1x80xbf16>
    %202 = vector.shape_cast %201 : vector<2x1x80xbf16> to vector<2x80xbf16>
    %c3_139 = arith.constant 3 : index
    %c0_140 = arith.constant 0 : index
    %c0_141 = arith.constant 0 : index
    %203 = vector.load %arg10[%c3_139, %c0_140, %c0_141] : memref<5x80x120xbf16, #tpu.memory_space<vmem>>, vector<1x80x120xbf16>
    %204 = vector.shape_cast %203 : vector<1x80x120xbf16> to vector<80x120xbf16>
    %cst_142 = arith.constant dense<0.000000e+00> : vector<2x120xf32>
    %205 = tpu.matmul %202, %204, %cst_142 {dimension_numbers = #tpu.dot_dimension_numbers<[1], [0], [0], [1], [0, 0, 1, 1], [], []>} : vector<2x80xbf16>, vector<80x120xbf16>, vector<2x120xf32> -> vector<2x120xf32>
    %206 = arith.addf %200, %205 : vector<2x120xf32>
    %207 = vector.extract_strided_slice %180 {offsets = [0, 4, 0], sizes = [2, 1, 80], strides = [1, 1, 1]} : vector<2x5x80xbf16> to vector<2x1x80xbf16>
    %208 = vector.shape_cast %207 : vector<2x1x80xbf16> to vector<2x80xbf16>
    %c4_143 = arith.constant 4 : index
    %c0_144 = arith.constant 0 : index
    %c0_145 = arith.constant 0 : index
    %209 = vector.load %arg10[%c4_143, %c0_144, %c0_145] : memref<5x80x120xbf16, #tpu.memory_space<vmem>>, vector<1x80x120xbf16>
    %210 = vector.shape_cast %209 : vector<1x80x120xbf16> to vector<80x120xbf16>
    %cst_146 = arith.constant dense<0.000000e+00> : vector<2x120xf32>
    %211 = tpu.matmul %208, %210, %cst_146 {dimension_numbers = #tpu.dot_dimension_numbers<[1], [0], [0], [1], [0, 0, 1, 1], [], []>} : vector<2x80xbf16>, vector<80x120xbf16>, vector<2x120xf32> -> vector<2x120xf32>
    %212 = arith.addf %206, %211 : vector<2x120xf32>
    %cst_147 = arith.constant 0.000000e+00 : f32
    %213 = vector.broadcast %cst_147 : f32 to vector<2x120xf32>
    %214 = arith.maximumf %212, %213 : vector<2x120xf32>
    %215 = arith.truncf %214 : vector<2x120xf32> to vector<2x120xbf16>
    %c0_148 = arith.constant 0 : index
    %c0_149 = arith.constant 0 : index
    %216 = vector.load %arg12[%c0_148, %c0_149] : memref<120x84xbf16, #tpu.memory_space<vmem>>, vector<120x84xbf16>
    %cst_150 = arith.constant dense<0.000000e+00> : vector<2x84xf32>
    %217 = tpu.matmul %215, %216, %cst_150 {dimension_numbers = #tpu.dot_dimension_numbers<[1], [0], [0], [1], [0, 0, 1, 1], [], []>} : vector<2x120xbf16>, vector<120x84xbf16>, vector<2x84xf32> -> vector<2x84xf32>
    %c0_151 = arith.constant 0 : index
    %c0_152 = arith.constant 0 : index
    %218 = vector.load %arg13[%c0_151, %c0_152] : memref<1x84xf32, #tpu.memory_space<vmem>>, vector<1x84xf32>
    %219 = vector.broadcast %218 : vector<1x84xf32> to vector<2x84xf32>
    %220 = arith.addf %217, %219 : vector<2x84xf32>
    %cst_153 = arith.constant 0.000000e+00 : f32
    %221 = vector.broadcast %cst_153 : f32 to vector<2x84xf32>
    %222 = arith.maximumf %220, %221 : vector<2x84xf32>
    %223 = arith.truncf %222 : vector<2x84xf32> to vector<2x84xbf16>
    %c0_154 = arith.constant 0 : index
    %c0_155 = arith.constant 0 : index
    %224 = vector.load %arg14[%c0_154, %c0_155] : memref<84x10xbf16, #tpu.memory_space<vmem>>, vector<84x10xbf16>
    %cst_156 = arith.constant dense<0.000000e+00> : vector<2x10xf32>
    %225 = tpu.matmul %223, %224, %cst_156 {dimension_numbers = #tpu.dot_dimension_numbers<[1], [0], [0], [1], [0, 0, 1, 1], [], []>} : vector<2x84xbf16>, vector<84x10xbf16>, vector<2x10xf32> -> vector<2x10xf32>
    %c0_157 = arith.constant 0 : index
    %c0_158 = arith.constant 0 : index
    %226 = vector.load %arg15[%c0_157, %c0_158] : memref<1x10xf32, #tpu.memory_space<vmem>>, vector<1x10xf32>
    %227 = vector.broadcast %226 : vector<1x10xf32> to vector<2x10xf32>
    %228 = arith.addf %225, %227 : vector<2x10xf32>
    %c0_159 = arith.constant 0 : index
    %c0_160 = arith.constant 0 : index
    %229 = vector.load %arg16[%c0_159, %c0_160] : memref<2x10xf32, #tpu.memory_space<vmem>>, vector<2x10xf32>
    tpu.vector_store %arg16[%c0_159, %c0_160], %228 {strides = array<i32>} : memref<2x10xf32, #tpu.memory_space<vmem>>, vector<2x10xf32>,
    return
  }
  func.func @transform_0(%arg0: i32) -> (i32, i32, i32) {
    %c0_i32 = arith.constant 0 : i32
    %c0_i32_0 = arith.constant 0 : i32
    %c0_i32_1 = arith.constant 0 : i32
    return %arg0, %c0_i32, %c0_i32_0 : i32, i32, i32
  }
  func.func @transform_1(%arg0: i32) -> (i32, i32, i32) {
    %c0_i32 = arith.constant 0 : i32
    %c0_i32_0 = arith.constant 0 : i32
    %c0_i32_1 = arith.constant 0 : i32
    %c0_i32_2 = arith.constant 0 : i32
    return %c0_i32, %c0_i32_0, %c0_i32_1 : i32, i32, i32
  }
  func.func @transform_2(%arg0: i32) -> (i32, i32) {
    %c0_i32 = arith.constant 0 : i32
    %c0_i32_0 = arith.constant 0 : i32
    %c0_i32_1 = arith.constant 0 : i32
    return %c0_i32, %c0_i32_0 : i32, i32
  }
  func.func @transform_3(%arg0: i32) -> (i32, i32) {
    %c0_i32 = arith.constant 0 : i32
    %c0_i32_0 = arith.constant 0 : i32
    %c0_i32_1 = arith.constant 0 : i32
    return %c0_i32, %c0_i32_0 : i32, i32
  }
  func.func @transform_4(%arg0: i32) -> (i32, i32) {
    %c0_i32 = arith.constant 0 : i32
    %c0_i32_0 = arith.constant 0 : i32
    %c0_i32_1 = arith.constant 0 : i32
    return %c0_i32, %c0_i32_0 : i32, i32
  }
  func.func @transform_5(%arg0: i32) -> (i32, i32, i32) {
    %c0_i32 = arith.constant 0 : i32
    %c0_i32_0 = arith.constant 0 : i32
    %c0_i32_1 = arith.constant 0 : i32
    %c0_i32_2 = arith.constant 0 : i32
    return %c0_i32, %c0_i32_0, %c0_i32_1 : i32, i32, i32
  }
  func.func @transform_6(%arg0: i32) -> (i32, i32) {
    %c0_i32 = arith.constant 0 : i32
    %c0_i32_0 = arith.constant 0 : i32
    %c0_i32_1 = arith.constant 0 : i32
    return %c0_i32, %c0_i32_0 : i32, i32
  }
  func.func @transform_7(%arg0: i32) -> (i32, i32) {
    %c0_i32 = arith.constant 0 : i32
    %c0_i32_0 = arith.constant 0 : i32
    %c0_i32_1 = arith.constant 0 : i32
    return %c0_i32, %c0_i32_0 : i32, i32
  }
  func.func @transform_8(%arg0: i32) -> (i32, i32) {
    %c0_i32 = arith.constant 0 : i32
    %c0_i32_0 = arith.constant 0 : i32
    %c0_i32_1 = arith.constant 0 : i32
    return %c0_i32, %c0_i32_0 : i32, i32
  }
  func.func @transform_9(%arg0: i32) -> (i32, i32, i32) {
    %c0_i32 = arith.constant 0 : i32
    %c0_i32_0 = arith.constant 0 : i32
    %c0_i32_1 = arith.constant 0 : i32
    %c0_i32_2 = arith.constant 0 : i32
    return %c0_i32, %c0_i32_0, %c0_i32_1 : i32, i32, i32
  }
  func.func @transform_10(%arg0: i32) -> (i32, i32) {
    %c0_i32 = arith.constant 0 : i32
    %c0_i32_0 = arith.constant 0 : i32
    %c0_i32_1 = arith.constant 0 : i32
    return %c0_i32, %c0_i32_0 : i32, i32
  }
  func.func @transform_11(%arg0: i32) -> (i32, i32) {
    %c0_i32 = arith.constant 0 : i32
    %c0_i32_0 = arith.constant 0 : i32
    %c0_i32_1 = arith.constant 0 : i32
    return %c0_i32, %c0_i32_0 : i32, i32
  }
  func.func @transform_12(%arg0: i32) -> (i32, i32) {
    %c0_i32 = arith.constant 0 : i32
    %c0_i32_0 = arith.constant 0 : i32
    %c0_i32_1 = arith.constant 0 : i32
    return %c0_i32, %c0_i32_0 : i32, i32
  }
  func.func @transform_13(%arg0: i32) -> (i32, i32) {
    %c0_i32 = arith.constant 0 : i32
    %c0_i32_0 = arith.constant 0 : i32
    %c0_i32_1 = arith.constant 0 : i32
    return %c0_i32, %c0_i32_0 : i32, i32
  }
  func.func @transform_14(%arg0: i32) -> (i32, i32) {
    %c0_i32 = arith.constant 0 : i32
    %c0_i32_0 = arith.constant 0 : i32
    %c0_i32_1 = arith.constant 0 : i32
    return %c0_i32, %c0_i32_0 : i32, i32
  }
  func.func @transform_15(%arg0: i32) -> (i32, i32) {
    %c0_i32 = arith.constant 0 : i32
    %c0_i32_0 = arith.constant 0 : i32
    return %arg0, %c0_i32 : i32, i32
  }
}

</mosaic_0001>

<bundles_post_ra>
// kernel: convnet_forward.1
= control target key start
LH: loop header
LB: loop body
LE: loop exit
PB: predicated region body
PF: predicated region fallthrough
CT: control target
= control target key end

     0   :  { %vm95_vm0 = vsmask.f32 7424  ;;  %vm171_vm1 = vcmask 785408   ;;  %s7883_s0 = inlined_call_operand.vmem [shape: f32[2,32,96], index: 0, kind: input, shape index: {}]   ;;  %s7884_s1 = inlined_call_operand.vmem [shape: bf16[5,96,168], index: 1, kind: input, shape index: {}]   ;;  %s7885_s2 = inlined_call_operand.vmem [shape: f32[1,168], index: 2, kind: input, shape index: {}]   ;;  %s7886_s3 = inlined_call_operand.vmem [shape: bf16[14,27], index: 3, kind: input, shape index: {}]   ;;  %s7887_s4 = inlined_call_operand.vmem [shape: bf16[167,84], index: 4, kind: input, shape index: {}]   ;;  %s7888_s5 = inlined_call_operand.vmem [shape: bf16[5,84,160], index: 5, kind: input, shape index: {}]   ;;  %s7889_s6 = inlined_call_operand.vmem [shape: f32[1,160], index: 6, kind: input, shape index: {}]   ;;  %s7890_s7 = inlined_call_operand.vmem [shape: bf16[5,9], index: 7, kind: input, shape index: {}]   ;;  %s7891_s8 = inlined_call_operand.vmem [shape: bf16[159,80], index: 8, kind: input, shape index: {}]   ;;  %s7892_s9 = inlined_call_operand.vmem [shape: bf16[5,80,120], index: 9, kind: input, shape index: {}]   ;;  %s7893_s10 = inlined_call_operand.vmem [shape: f32[1,120], index: 10, kind: input, shape index: {}]   ;;  %s7894_s11 = inlined_call_operand.vmem [shape: bf16[120,84], index: 11, kind: input, shape index: {}]   ;;  %s7895_s12 = inlined_call_operand.vmem [shape: f32[1,84], index: 12, kind: input, shape index: {}]   ;;  %s7896_s13 = inlined_call_operand.vmem [shape: bf16[84,10], index: 13, kind: input, shape index: {}]   ;;  %s7897_s14 = inlined_call_operand.vmem [shape: f32[1,10], index: 14, kind: input, shape index: {}]   ;;  %s7898_s15 = inlined_call_operand.hbm [shape: f32[2,10], index: 15, kind: output, shape index: {}]  }
   0x1   :  { %v3989_v0 = vld [vmem:[%s7884_s1 + $0xb0] sm:$0xf]  ;;  %v5463_v1 = vld [vmem:[%s7884_s1 + $0xb4] sm:$0xf0]  ;;  %v5462_v2 = vld [vmem:[%s7884_s1 + $0xb4] sm:$0xf] }
   0x2   :  { %v3990_v3 = vor.u32 %v5463_v1, %v3989_v0  ;;  %v3991_v4 = vld [vmem:[%s7884_s1 + $0xb8] sm:$0xf0]  ;;  %v4041_v5 = vld [vmem:[%s7884_s1 + $0x50] sm:$0xf]  ;;  %v5451_v6 = vld [vmem:[%s7884_s1 + $0x54] sm:$0xf0] }
   0x3   :  { %v3994_v7 = vor.u32 %v5462_v2, %v3991_v4  ;;  %v4042_v8 = vor.u32 %v5451_v6, %v4041_v5  ;;  %v5450_v9 = vld [vmem:[%s7884_s1 + $0x54] sm:$0xf]  ;;  %v4043_v10 = vld [vmem:[%s7884_s1 + $0x58] sm:$0xf0]  ;;  %v3981_v11 = vld [vmem:[%s7884_s1 + $0xa0] sm:$0xf] }
   0x4   :  { %180 = vmatpush.bf16.msra.mxu0 %v3990_v3  ;;  %v4046_v12 = vor.u32 %v5450_v9, %v4043_v10  ;;  %v5461_v13 = vld [vmem:[%s7884_s1 + $0xa4] sm:$0xf0]  ;;  %v5460_v14 = vld [vmem:[%s7884_s1 + $0xa4] sm:$0xf]  ;;  %v3983_v15 = vld [vmem:[%s7884_s1 + $0xa8] sm:$0xf0] }
   0x5   :  { %199 = vmatpush.bf16.msra.mxu1 %v3994_v7  ;;  %282 = vmatpush.bf16.msra.mxu2 %v4042_v8  ;;  %v3982_v16 = vor.u32 %v5461_v13, %v3981_v11  ;;  %v3986_v17 = vor.u32 %v5460_v14, %v3983_v15  ;;  %v4033_v18 = vld [vmem:[%s7884_s1 + $0x40] sm:$0xf]  ;;  %v5449_v19 = vld [vmem:[%s7884_s1 + $0x44] sm:$0xf0]  ;;  %v5448_v20 = vld [vmem:[%s7884_s1 + $0x44] sm:$0xf] }
   0x6   :  { %301 = vmatpush.bf16.msra.mxu3 %v4046_v12  ;;  %v4034_v21 = vor.u32 %v5449_v19, %v4033_v18  ;;  %v4035_v22 = vld [vmem:[%s7884_s1 + $0x48] sm:$0xf0]  ;;  %v3973_v23 = vld [vmem:[%s7884_s1 + $0x90] sm:$0xf]  ;;  %v5459_v24 = vld [vmem:[%s7884_s1 + $0x94] sm:$0xf0] }
   0x7   :  { %v4038_v25 = vor.u32 %v5448_v20, %v4035_v22  ;;  %v5458_v26 = vld [vmem:[%s7884_s1 + $0x94] sm:$0xf]  ;;  %v3975_v27 = vld [vmem:[%s7884_s1 + $0x98] sm:$0xf0]  ;;  %v4025_v28 = vld [vmem:[%s7884_s1 + $0x30] sm:$0xf]  ;;  %v3974_v29 = vor.u32 %v5459_v24, %v3973_v23 }
   0x8   :  { %181 = vmatpush.bf16.msra.mxu0 %v3982_v16  ;;  %v5447_v30 = vld [vmem:[%s7884_s1 + $0x34] sm:$0xf0]  ;;  %v5446_v31 = vld [vmem:[%s7884_s1 + $0x34] sm:$0xf]  ;;  %v4027_v32 = vld [vmem:[%s7884_s1 + $0x38] sm:$0xf0]  ;;  %v3978_v33 = vor.u32 %v5458_v26, %v3975_v27 }
   0x9   :  { %200 = vmatpush.bf16.msra.mxu1 %v3986_v17  ;;  %283 = vmatpush.bf16.msra.mxu2 %v4034_v21  ;;  %v4026_v34 = vor.u32 %v5447_v30, %v4025_v28  ;;  %v3965_v35 = vld [vmem:[%s7884_s1 + $0x80] sm:$0xf]  ;;  %v5457_v36 = vld [vmem:[%s7884_s1 + $0x84] sm:$0xf0]  ;;  %v5456_v37 = vld [vmem:[%s7884_s1 + $0x84] sm:$0xf]  ;;  %v4030_v38 = vor.u32 %v5446_v31, %v4027_v32 }
   0xa   :  { %302 = vmatpush.bf16.msra.mxu3 %v4038_v25  ;;  %v3967_v39 = vld [vmem:[%s7884_s1 + $0x88] sm:$0xf0]  ;;  %v4017_v40 = vld [vmem:[%s7884_s1 + $0x20] sm:$0xf]  ;;  %v5445_v41 = vld [vmem:[%s7884_s1 + $0x24] sm:$0xf0]  ;;  %v3966_v44 = vor.u32 %v5457_v36, %v3965_v35 }
   0xb   :  { %v5444_v42 = vld [vmem:[%s7884_s1 + $0x24] sm:$0xf]  ;;  %v4019_v43 = vld [vmem:[%s7884_s1 + $0x28] sm:$0xf0]  ;;  %v3957_v45 = vld [vmem:[%s7884_s1 + $0x70] sm:$0xf]  ;;  %v3970_v46 = vor.u32 %v5456_v37, %v3967_v39  ;;  %v4018_v47 = vor.u32 %v5445_v41, %v4017_v40 }
   0xc   :  { %182 = vmatpush.bf16.msra.mxu0 %v3974_v29  ;;  %v5455_v48 = vld [vmem:[%s7884_s1 + $0x74] sm:$0xf0]  ;;  %v5454_v49 = vld [vmem:[%s7884_s1 + $0x74] sm:$0xf]  ;;  %v3959_v50 = vld [vmem:[%s7884_s1 + $0x78] sm:$0xf0]  ;;  %v4022_v51 = vor.u32 %v5444_v42, %v4019_v43 }
   0xd   :  { %201 = vmatpush.bf16.msra.mxu1 %v3978_v33  ;;  %284 = vmatpush.bf16.msra.mxu2 %v4026_v34  ;;  %v4009_v52 = vld [vmem:[%s7884_s1 + $0x10] sm:$0xf]  ;;  %v5443_v53 = vld [vmem:[%s7884_s1 + $0x14] sm:$0xf0]  ;;  %v5442_v54 = vld [vmem:[%s7884_s1 + $0x14] sm:$0xf]  ;;  %v3958_v58 = vor.u32 %v5455_v48, %v3957_v45  ;;  %v3962_v63 = vor.u32 %v5454_v49, %v3959_v50 }
   0xe   :  { %303 = vmatpush.bf16.msra.mxu3 %v4030_v38  ;;  %v4011_v55 = vld [vmem:[%s7884_s1 + $0x18] sm:$0xf0]  ;;  %v3949_v56 = vld [vmem:[%s7884_s1 + $0x60] sm:$0xf]  ;;  %v5453_v57 = vld [vmem:[%s7884_s1 + $0x64] sm:$0xf0]  ;;  %v4010_v0 = vor.u32 %v5443_v53, %v4009_v52 }
   0xf   :  { %v5452_v59 = vld [vmem:[%s7884_s1 + $0x64] sm:$0xf]  ;;  %v3951_v60 = vld [vmem:[%s7884_s1 + $0x68] sm:$0xf0]  ;;  %v4001_v61 = vld [vmem:[%s7884_s1] sm:$0xf]  ;;  %v4014_v4 = vor.u32 %v5442_v54, %v4011_v55  ;;  %v3950_v15 = vor.u32 %v5453_v57, %v3949_v56 }
  0x10   :  { %183 = vmatpush.bf16.msra.mxu0 %v3966_v44  ;;  %v5441_v62 = vld [vmem:[%s7884_s1 + $0x4] sm:$0xf0]  ;;  %v52_v1 = vld [vmem:[%s7883_s0] sm:$0xff]  ;;  %v54_v3 = vld [vmem:[%s7883_s0 + $0x10] sm:$0xff]  ;;  %v3954_v22 = vor.u32 %v5452_v59, %v3951_v60 }
  0x11   :  { %202 = vmatpush.bf16.msra.mxu1 %v3970_v46  ;;  %285 = vmatpush.bf16.msra.mxu2 %v4018_v47  ;;  %v53_v2 = vld [vmem:[%s7883_s0 + $0x8] sm:$0xff]  ;;  %v5440_v5 = vld [vmem:[%s7884_s1 + $0x4] sm:$0xf]  ;;  %v55_v7 = vld [vmem:[%s7883_s0 + $0x18] sm:$0xff]  ;;  %v56_v8 = vpack.c.bf16 %v52_v1, %v52_v1  ;;  %v58_v10 = vpack.c.bf16 %v54_v3, %v54_v3  ;;  %v4002_v23 = vor.u32 %v5441_v62, %v4001_v61 }
  0x12   :  { %304 = vmatpush.bf16.msra.mxu3 %v4022_v51  ;;  %v4003_v6 = vld [vmem:[%s7884_s1 + $0x8] sm:$0xf0]  ;;  %v57_v9 = vpack.c.bf16 %v53_v2, %v53_v2  ;;  %v59_v11 = vpack.c.bf16 %v55_v7, %v55_v7  ;;  %v4105_v12 = vld [vmem:[%s7884_s1 + $0x110] sm:$0xf]  ;;  %v5475_v13 = vld [vmem:[%s7884_s1 + $0x114] sm:$0xf0] }
  0x13   :  { %v5474_v14 = vld [vmem:[%s7884_s1 + $0x114] sm:$0xf]  ;;  %v89_v16 = vunpack.c.l.b16 %v56_v8  ;;  %v91_v18 = vunpack.c.l.b16 %v58_v10  ;;  %v4107_v19 = vld [vmem:[%s7884_s1 + $0x118] sm:$0xf0]  ;;  %v4169_v20 = vld [vmem:[%s7884_s1 + $0x170] sm:$0xf]  ;;  %v4006_v27 = vor.u32 %v5440_v5, %v4003_v6  ;;  %v4106_v29 = vor.u32 %v5475_v13, %v4105_v12 }
  0x14   :  { %184 = vmatpush.bf16.msra.mxu0 %v3958_v58  ;;  %v90_v17 = vunpack.c.l.b16 %v57_v9  ;;  %v5487_v21 = vld [vmem:[%s7884_s1 + $0x174] sm:$0xf0]  ;;  %v92_v24 = vunpack.c.l.b16 %v59_v11  ;;  %v5486_v25 = vld [vmem:[%s7884_s1 + $0x174] sm:$0xf]  ;;  %v4171_v26 = vld [vmem:[%s7884_s1 + $0x178] sm:$0xf0]  ;;  %v4110_v31 = vor.u32 %v5474_v14, %v4107_v19 }
  0x15   :  { %203 = vmatpush.bf16.msra.mxu1 %v3962_v63  ;;  %286 = vmatpush.bf16.msra.mxu2 %v4010_v0  ;;  %v4170_v32 = vor.u32 %v5487_v21, %v4169_v20  ;;  %v4097_v33 = vld [vmem:[%s7884_s1 + $0x100] sm:$0xf]  ;;  %v5473_v34 = vld [vmem:[%s7884_s1 + $0x104] sm:$0xf0]  ;;  %v4174_v37 = vor.u32 %v5486_v25, %v4171_v26  ;;  %v5472_v38 = vld [vmem:[%s7884_s1 + $0x104] sm:$0xf] }
  0x16   :  { %305 = vmatpush.bf16.msra.mxu3 %v4014_v4  ;;  %v6094_v28 = vpack.c.b16 %v90_v17, %v89_v16  ;;  %v6096_v30 = vpack.c.b16 %v92_v24, %v91_v18  ;;  %v4099_v39 = vld [vmem:[%s7884_s1 + $0x108] sm:$0xf0]  ;;  %v4161_v41 = vld [vmem:[%s7884_s1 + $0x160] sm:$0xf]  ;;  %v5485_v42 = vld [vmem:[%s7884_s1 + $0x164] sm:$0xf0]  ;;  %v4098_v44 = vor.u32 %v5473_v34, %v4097_v33 }
  0x17   :  { %v5484_v45 = vld [vmem:[%s7884_s1 + $0x164] sm:$0xf]  ;;  %v4163_v46 = vld [vmem:[%s7884_s1 + $0x168] sm:$0xf0]  ;;  %v4089_v48 = vld [vmem:[%s7884_s1 + $0xf0] sm:$0xf]  ;;  %v4102_v51 = vor.u32 %v5472_v38, %v4099_v39  ;;  %v4162_v52 = vor.u32 %v5485_v42, %v4161_v41 }
  0x18   :  { %185 = vmatpush.bf16.msra.mxu0 %v3950_v15  ;;  %v97_v35 = vshrl.u32 %v6094_v28, 16  ;;  %v99_v36 = vshll.u32 %v6094_v28, 16  ;;  %v104_v40 = vshll.u32 %v6096_v30, 16  ;;  %v5471_v49 = vld [vmem:[%s7884_s1 + $0xf4] sm:$0xf0]  ;;  %v4166_v54 = vor.u32 %v5484_v45, %v4163_v46 }
  0x19   :  { %204 = vmatpush.bf16.msra.mxu1 %v3954_v22  ;;  %287 = vmatpush.bf16.msra.mxu2 %v4002_v23  ;;  %v5470_v53 = vld [vmem:[%s7884_s1 + $0xf4] sm:$0xf]  ;;  %v4091_v55 = vld [vmem:[%s7884_s1 + $0xf8] sm:$0xf0]  ;;  %v4153_v56 = vld [vmem:[%s7884_s1 + $0x150] sm:$0xf]  ;;  %v4090_v59 = vor.u32 %v5471_v49, %v4089_v48 }
  0x1a   :  { %306 = vmatpush.bf16.msra.mxu3 %v4006_v27  ;;  %v101_v43 = vrot.slane %v99_v36, 1  ;;  %v6129_v47 = vrot.slane %v104_v40, 1  ;;  %v5483_v57 = vld [vmem:[%s7884_s1 + $0x154] sm:$0xf0]  ;;  %v5482_v60 = vld [vmem:[%s7884_s1 + $0x154] sm:$0xf]  ;;  %v4094_v0 = vor.u32 %v5470_v53, %v4091_v55 }
  0x1b   :  { %v4155_v61 = vld [vmem:[%s7884_s1 + $0x158] sm:$0xf0]  ;;  %v4081_v62 = vld [vmem:[%s7884_s1 + $0xe0] sm:$0xf]  ;;  %v5469_v63 = vld [vmem:[%s7884_s1 + $0xe4] sm:$0xf0]  ;;  %v4154_v1 = vor.u32 %v5483_v57, %v4153_v56 }
  0x1c   :  { %403 = vmatpush.bf16.msrb.mxu0 %v4106_v29  ;;  %v102_v50 = vor.u32 %v101_v43, %v97_v35  ;;  %4047 = vmatmul.msk.bf16.vlgmr.msra.gmra.mxu2 %vm171_vm1, %v6094_v28  ;;  %v5468_v2 = vld [vmem:[%s7884_s1 + $0xe4] sm:$0xf]  ;;  %v4158_v3 = vor.u32 %v5482_v60, %v4155_v61  ;;  %v4083_v4 = vld [vmem:[%s7884_s1 + $0xe8] sm:$0xf0]  ;;  %v4145_v5 = vld [vmem:[%s7884_s1 + $0x140] sm:$0xf]  ;;  %v4082_v7 = vor.u32 %v5469_v63, %v4081_v62 }
  0x1d   :  { %422 = vmatpush.bf16.msrb.mxu1 %v4110_v31  ;;  %536 = vmatpush.bf16.msrb.mxu2 %v4170_v32  ;;  %v5481_v6 = vld [vmem:[%s7884_s1 + $0x144] sm:$0xf0]  ;;  %v5480_v8 = vld [vmem:[%s7884_s1 + $0x144] sm:$0xf]  ;;  %v4147_v9 = vld [vmem:[%s7884_s1 + $0x148] sm:$0xf0]  ;;  %v4086_v13 = vor.u32 %v5468_v2, %v4083_v4 }
  0x1e   :  { %555 = vmatpush.bf16.msrb.mxu3 %v4174_v37  ;;  %v107_v58 = vsel %vm95_vm0, %v102_v50, %v6129_v47  ;;  %v4073_v10 = vld [vmem:[%s7884_s1 + $0xd0] sm:$0xf]  ;;  %v5467_v11 = vld [vmem:[%s7884_s1 + $0xd4] sm:$0xf0]  ;;  %v108_v12 = vshrl.u32 %v6096_v30, 16  ;;  %v4146_v14 = vor.u32 %v5481_v6, %v4145_v5  ;;  %v4150_v17 = vor.u32 %v5480_v8, %v4147_v9 }
  0x1f   :  { %4049 = vmatmul.msk.bf16.vlgmr.msra.gmra.mxu3 %vm171_vm1, %v6094_v28  ;;  %3995 = vmatmul.msk.bf16.vlgmr.msra.gmra.mxu0 %vm171_vm1, %v107_v58  ;;  %v5466_v15 = vld [vmem:[%s7884_s1 + $0xd4] sm:$0xf]  ;;  %v4075_v16 = vld [vmem:[%s7884_s1 + $0xd8] sm:$0xf0]  ;;  %v4137_v18 = vld [vmem:[%s7884_s1 + $0x130] sm:$0xf]  ;;  %v4074_v21 = vor.u32 %v5467_v11, %v4073_v10 }
  0x20   :  { %404 = vmatpush.bf16.msrb.mxu0 %v4098_v44  ;;  %3997 = vmatmul.msk.bf16.vlgmr.msra.gmra.mxu1 %vm171_vm1, %v107_v58  ;;  %v5479_v19 = vld [vmem:[%s7884_s1 + $0x134] sm:$0xf0]  ;;  %v5478_v20 = vld [vmem:[%s7884_s1 + $0x134] sm:$0xf]  ;;  %v4139_v22 = vld [vmem:[%s7884_s1 + $0x138] sm:$0xf0]  ;;  %v4078_v26 = vor.u32 %v5466_v15, %v4075_v16 }
  0x21   :  { %423 = vmatpush.bf16.msrb.mxu1 %v4102_v51  ;;  %537 = vmatpush.bf16.msrb.mxu2 %v4162_v52  ;;  %v4065_v23 = vld [vmem:[%s7884_s1 + $0xc0] sm:$0xf]  ;;  %v5465_v24 = vld [vmem:[%s7884_s1 + $0xc4] sm:$0xf0]  ;;  %v5464_v25 = vld [vmem:[%s7884_s1 + $0xc4] sm:$0xf] }
  0x22   :  { %556 = vmatpush.bf16.msrb.mxu3 %v4166_v54  ;;  %v4067_v27 = vld [vmem:[%s7884_s1 + $0xc8] sm:$0xf0] }
  0x24   :  { %405 = vmatpush.bf16.msrb.mxu0 %v4090_v59 }
  0x25   :  { %424 = vmatpush.bf16.msrb.mxu1 %v4094_v0  ;;  %538 = vmatpush.bf16.msrb.mxu2 %v4154_v1 }
  0x26   :  { %557 = vmatpush.bf16.msrb.mxu3 %v4158_v3 }
  0x28   :  { %406 = vmatpush.bf16.msrb.mxu0 %v4082_v7 }
  0x29   :  { %425 = vmatpush.bf16.msrb.mxu1 %v4086_v13  ;;  %539 = vmatpush.bf16.msrb.mxu2 %v4146_v14 }
  0x2a   :  { %20 = vsyncpa [#allocation4], 0  ;;  %558 = vmatpush.bf16.msrb.mxu3 %v4150_v17  ;;  %v4138_v29 = vor.u32 %v5479_v19, %v4137_v18  ;;  %v4129_v31 = vld [vmem:[%s7884_s1 + $0x120] sm:$0xf]  ;;  %v4233_v32 = vld [vmem:[%s7884_s1 + $0x1d0] sm:$0xf]  ;;  %v4142_v34 = vor.u32 %v5478_v20, %v4139_v22  ;;  %v4066_v37 = vor.u32 %v5465_v24, %v4065_v23  ;;  %v110_v42 = vor.u32 %v108_v12, %v6129_v47 }
  0x2b   :  { %v5499_v33 = vld [vmem:[%s7884_s1 + $0x1d4] sm:$0xf0]  ;;  %v5477_v38 = vld [vmem:[%s7884_s1 + $0x124] sm:$0xf0]  ;;  %v5498_v39 = vld [vmem:[%s7884_s1 + $0x1d4] sm:$0xf]  ;;  %v4070_v45 = vor.u32 %v5464_v25, %v4067_v27 }
  0x2c   :  { %407 = vmatpush.bf16.msrb.mxu0 %v4074_v21  ;;  %v4235_v41 = vld [vmem:[%s7884_s1 + $0x1d8] sm:$0xf0]  ;;  %v5476_v43 = vld [vmem:[%s7884_s1 + $0x124] sm:$0xf]  ;;  %v4131_v44 = vld [vmem:[%s7884_s1 + $0x128] sm:$0xf0]  ;;  %4048 = vmatmul.msk.bf16.gmra.mxu2 %vm171_vm1, %v6096_v30  ;;  %v4234_v46 = vor.u32 %v5499_v33, %v4233_v32  ;;  %v4130_v48 = vor.u32 %v5477_v38, %v4129_v31 }
  0x2d   :  { %426 = vmatpush.bf16.msrb.mxu1 %v4078_v26  ;;  %540 = vmatpush.bf16.msrb.mxu2 %v4138_v29  ;;  %v4238_v47 = vor.u32 %v5498_v39, %v4235_v41  ;;  %v4225_v49 = vld [vmem:[%s7884_s1 + $0x1c0] sm:$0xf]  ;;  %v5497_v50 = vld [vmem:[%s7884_s1 + $0x1c4] sm:$0xf0]  ;;  %v4134_v51 = vor.u32 %v5476_v43, %v4131_v44  ;;  %v5496_v52 = vld [vmem:[%s7884_s1 + $0x1c4] sm:$0xf] }
  0x2e   :  { %559 = vmatpush.bf16.msrb.mxu3 %v4142_v34  ;;  %v4227_v53 = vld [vmem:[%s7884_s1 + $0x1c8] sm:$0xf0]  ;;  %v464_v54 = vrot.slane %v108_v12, 1  ;;  %v461_v55 = vrot.slane %v97_v35, 1  ;;  %v4226_v56 = vor.u32 %v5497_v50, %v4225_v49  ;;  %v462_v57 = vrot.slane %v99_v36, 2  ;;  %s5831_s28 = smov 127  }
  0x2f   :  { %4050 = vmatmul.msk.bf16.gmra.mxu3 %vm171_vm1, %v6096_v30  ;;  %3996 = vmatmul.msk.bf16.gmra.mxu0 %vm171_vm1, %v110_v42  ;;  %v465_v58 = vrot.slane %v104_v40, 2  ;;  %v4230_v59 = vor.u32 %v5496_v52, %v4227_v53  ;;  %v4217_v60 = vld [vmem:[%s7884_s1 + $0x1b0] sm:$0xf]  ;;  %v5495_v61 = vld [vmem:[%s7884_s1 + $0x1b4] sm:$0xf0]  ;;  %vm593_vm2 = vcmask 1045504  }
  0x30   :  { %408 = vmatpush.bf16.msrb.mxu0 %v4066_v37  ;;  %3998 = vmatmul.msk.bf16.gmra.mxu1 %vm171_vm1, %v110_v42  ;;  %v5494_v35 = vld [vmem:[%s7884_s1 + $0x1b4] sm:$0xf]  ;;  %v4219_v36 = vld [vmem:[%s7884_s1 + $0x1b8] sm:$0xf0]  ;;  %v594_v40 = vrot.slane %v6094_v28, 2  ;;  %v4218_v62 = vor.u32 %v5495_v61, %v4217_v60  ;;  %v595_v63 = vrot.slane %v6096_v30, 2  ;;  %v463_v0 = vor.u32 %v462_v57, %v461_v55 }
  0x31   :  { %427 = vmatpush.bf16.msrb.mxu1 %v4070_v45  ;;  %541 = vmatpush.bf16.msrb.mxu2 %v4130_v48  ;;  %v466_v1 = vor.u32 %v465_v58, %v464_v54  ;;  %v4222_v2 = vor.u32 %v5494_v35, %v4219_v36  ;;  %v4209_v3 = vld [vmem:[%s7884_s1 + $0x1a0] sm:$0xf]  ;;  %v5493_v4 = vld [vmem:[%s7884_s1 + $0x1a4] sm:$0xf0]  ;;  %vm460_vm3 = vsmask.f32 6400 }
  0x32   :  { %560 = vmatpush.bf16.msrb.mxu3 %v4134_v51  ;;  %v5492_v5 = vld [vmem:[%s7884_s1 + $0x1a4] sm:$0xf]  ;;  %v4211_v6 = vld [vmem:[%s7884_s1 + $0x1a8] sm:$0xf0]  ;;  %v596_v7 = vsel %vm593_vm2, %v594_v40, %v595_v63  ;;  %v332_v8 = vrot.slane %v6094_v28, 1  ;;  %v333_v9 = vrot.slane %v6096_v30, 1  ;;  %v4210_v10 = vor.u32 %v5493_v4, %v4209_v3 }
  0x33   :  { %vm331_vm4 = vcmask 1046528   ;;  %v467_v11 = vsel %vm460_vm3, %v463_v0, %v466_v1  ;;  %v4214_v12 = vor.u32 %v5492_v5, %v4211_v6  ;;  %v4201_v13 = vld [vmem:[%s7884_s1 + $0x190] sm:$0xf]  ;;  %v5491_v14 = vld [vmem:[%s7884_s1 + $0x194] sm:$0xf0]  ;;  %vm830_vm5 = vcmask 1044480  }
  0x34   :  { %665 = vmatpush.bf16.msra.mxu0 %v4234_v46  ;;  %v5490_v28 = vld [vmem:[%s7884_s1 + $0x194] sm:$0xf]  ;;  %v4203_v30 = vld [vmem:[%s7884_s1 + $0x198] sm:$0xf0]  ;;  %v334_v15 = vsel %vm331_vm4, %v332_v8, %v333_v9  ;;  %v4202_v16 = vor.u32 %v5491_v14, %v4201_v13  ;;  %v4193_v18 = vld [vmem:[%s7884_s1 + $0x180] sm:$0xf] }
  0x35   :  { %684 = vmatpush.bf16.msra.mxu1 %v4238_v47  ;;  %v4206_v17 = vor.u32 %v5490_v28, %v4203_v30  ;;  %v5489_v19 = vld [vmem:[%s7884_s1 + $0x184] sm:$0xf0]  ;;  %v5488_v20 = vld [vmem:[%s7884_s1 + $0x184] sm:$0xf]  ;;  %v4195_v21 = vld [vmem:[%s7884_s1 + $0x188] sm:$0xf0] }
  0x36   :  { %v4194_v22 = vor.u32 %v5489_v19, %v4193_v18  ;;  %v4198_v23 = vor.u32 %v5488_v20, %v4195_v21  ;;  %v709_v36 = vld [vmem:[%s7885_s2] sm:$0x3]  ;;  %vm794_vm6 = vcmask 1039360   ;;  %vm826_vm7 = vcmask 220160  }
  0x37   :  { %v712_v4 = vperm.slane %v709_v36, 1  ;;  %v711_v21 = vperm.slane %v709_v36, 0  ;;  %vm958_vm8 = vcmask 1042432   ;;  %vm959_vm9 = vcmask 1043456  }
  0x38   :  { %666 = vmatpush.bf16.msra.mxu0 %v4226_v56  ;;  %vm1089_vm10 = vcmask 1041408   ;;  %vm954_vm11 = vcmask 318464   ;;  %vm1085_vm12 = vcmask 687104   ;;  %vm1724_vm13 = vcmask 1047552  }
  0x39   :  { %685 = vmatpush.bf16.msra.mxu1 %v4230_v59  ;;  %vm1601_vm14 = vcmask 72704   ;;  %vm1720_vm15 = vcmask 252928  }
  0x3c   :  { %667 = vmatpush.bf16.msra.mxu0 %v4218_v62  ;;  %4175 = vmatmul.msk.bf16.vlgmr.msrb.gmra.mxu2 %vm171_vm1, %v467_v11 }
  0x3d   :  { %686 = vmatpush.bf16.msra.mxu1 %v4222_v2 }
  0x3f   :  { %4177 = vmatmul.msk.bf16.vlgmr.msrb.gmra.mxu3 %vm171_vm1, %v467_v11  ;;  %4111 = vmatmul.msk.bf16.vlgmr.msrb.gmra.mxu0 %vm171_vm1, %v334_v15 }
  0x40   :  { %668 = vmatpush.bf16.msra.mxu0 %v4210_v10  ;;  %4113 = vmatmul.msk.bf16.vlgmr.msrb.gmra.mxu1 %vm171_vm1, %v334_v15 }
  0x41   :  { %687 = vmatpush.bf16.msra.mxu1 %v4214_v12 }
  0x44   :  { %669 = vmatpush.bf16.msra.mxu0 %v4202_v16 }
  0x45   :  { %688 = vmatpush.bf16.msra.mxu1 %v4206_v17 }
  0x48   :  { %670 = vmatpush.bf16.msra.mxu0 %v4194_v22 }
  0x49   :  { %689 = vmatpush.bf16.msra.mxu1 %v4198_v23 }
  0x4c   :  { %4176 = vmatmul.msk.bf16.gmra.mxu2 %vm171_vm1, %v466_v1 }
  0x4f   :  { %4178 = vmatmul.msk.bf16.gmra.mxu3 %vm171_vm1, %v466_v1  ;;  %4112 = vmatmul.msk.bf16.gmra.mxu0 %vm171_vm1, %v333_v9 }
  0x50   :  { %4114 = vmatmul.msk.bf16.gmra.mxu1 %vm171_vm1, %v333_v9 }
  0x5f   :  { %4239 = vmatmul.msk.bf16.vlgmr.msra.gmra.mxu0 %vm171_vm1, %v596_v7 }
  0x60   :  { %4241 = vmatmul.msk.bf16.vlgmr.msra.gmra.mxu1 %vm171_vm1, %v596_v7 }
  0x6f   :  { %4240 = vmatmul.msk.bf16.gmra.mxu0 %vm171_vm1, %v595_v63 }
  0x70   :  { %4242 = vmatmul.msk.bf16.gmra.mxu1 %vm171_vm1, %v595_v63 }
  0x9c   :  { %v187_v24 = vpop.f32.mrf.mxu0 }
  0x9d   :  { %v206_v25 = vpop.f32.mrf.mxu1 }
  0x9f   :  { %v289_v29 = vpop.f32.mrf.mxu2 }
  0xa0   :  { %v290_v6 = vadd.f32 %v289_v29, %v187_v24 }
  0xa2   :  { %v308_v31 = vpop.f32.mrf.mxu3 }
  0xa3   :  { %v309_v59 = vadd.f32 %v308_v31, %v206_v25 }
  0xa4   :  { %v189_v26 = vpop.f32.mrf.mxu0 }
  0xa5   :  { %v208_v27 = vpop.f32.mrf.mxu1 }
  0xa7   :  { %v291_v34 = vpop.f32.mrf.mxu2 }
  0xa8   :  { %v292_v1 = vadd.f32 %v291_v34, %v189_v26 }
  0xaa   :  { %v310_v37 = vpop.f32.mrf.mxu3 }
  0xab   :  { %v311_v60 = vadd.f32 %v310_v37, %v208_v27 }
  0xac   :  { %v192_v32 = vpop.f32.mrf.mxu0 }
  0xad   :  { %v211_v33 = vpop.f32.mrf.mxu1 }
  0xaf   :  { %v294_v43 = vpop.f32.mrf.mxu2 }
  0xb0   :  { %v295_v8 = vadd.f32 %v294_v43, %v192_v32 }
  0xb2   :  { %v313_v44 = vpop.f32.mrf.mxu3 }
  0xb3   :  { %v314_v9 = vadd.f32 %v313_v44, %v211_v33 }
  0xb4   :  { %v194_v38 = vpop.f32.mrf.mxu0 }
  0xb5   :  { %v213_v39 = vpop.f32.mrf.mxu1 }
  0xb7   :  { %v296_v48 = vpop.f32.mrf.mxu2 }
  0xb8   :  { %v297_v27 = vadd.f32 %v296_v48, %v194_v38 }
  0xba   :  { %v315_v47 = vpop.f32.mrf.mxu3 }
  0xbb   :  { %v316_v29 = vadd.f32 %v315_v47, %v213_v39 }
  0xbc   :  { %v410_v41 = vpop.f32.mrf.mxu0 }
  0xbd   :  { %v429_v42 = vpop.f32.mrf.mxu1  ;;  %v439_v12 = vadd.f32 %v410_v41, %v290_v6 }
  0xbe   :  { %v440_v61 = vadd.f32 %v429_v42, %v309_v59 }
  0xbf   :  { %v543_v51 = vpop.f32.mrf.mxu2 }
  0xc0   :  { %v572_v15 = vadd.f32 %v543_v51, %v439_v12 }
  0xc2   :  { %v562_v52 = vpop.f32.mrf.mxu3 }
  0xc3   :  { %v573_v40 = vadd.f32 %v562_v52, %v440_v61 }
  0xc4   :  { %v412_v45 = vpop.f32.mrf.mxu0 }
  0xc5   :  { %v431_v46 = vpop.f32.mrf.mxu1  ;;  %v441_v10 = vadd.f32 %v412_v45, %v292_v1 }
  0xc6   :  { %v442_v35 = vadd.f32 %v431_v46, %v311_v60 }
  0xc7   :  { %v545_v55 = vpop.f32.mrf.mxu2 }
  0xc8   :  { %v574_v13 = vadd.f32 %v545_v55, %v441_v10 }
  0xca   :  { %v564_v56 = vpop.f32.mrf.mxu3 }
  0xcb   :  { %v575_v62 = vadd.f32 %v564_v56, %v442_v35 }
  0xcc   :  { %v415_v49 = vpop.f32.mrf.mxu0 }
  0xcd   :  { %v434_v50 = vpop.f32.mrf.mxu1  ;;  %v443_v14 = vadd.f32 %v415_v49, %v295_v8 }
  0xce   :  { %v444_v28 = vadd.f32 %v434_v50, %v314_v9 }
  0xcf   :  { %v548_v2 = vpop.f32.mrf.mxu2 }
  0xd0   :  { %v576_v16 = vadd.f32 %v548_v2, %v443_v14 }
  0xd2   :  { %v567_v7 = vpop.f32.mrf.mxu3 }
  0xd3   :  { %v577_v17 = vadd.f32 %v567_v7, %v444_v28  ;;  %v5508_v28 = vld [vmem:[%s7887_s4 + $0x38] sm:$0xff] }
  0xd4   :  { %v417_v53 = vpop.f32.mrf.mxu0  ;;  %965 = vmatpush.bf16.msrb.mxu0 %v5508_v28  ;;  %v4335_v28 = vld [vmem:[%s7888_s5 + $0x98] sm:$0xf] }
  0xd5   :  { %v436_v54 = vpop.f32.mrf.mxu1  ;;  %v445_v41 = vadd.f32 %v417_v53, %v297_v27 }
  0xd6   :  { %v446_v44 = vadd.f32 %v436_v54, %v316_v29 }
  0xd7   :  { %v550_v31 = vpop.f32.mrf.mxu2 }
  0xd8   :  { %v578_v50 = vadd.f32 %v550_v31, %v445_v41 }
  0xda   :  { %v569_v42 = vpop.f32.mrf.mxu3 }
  0xdb   :  { %v579_v51 = vadd.f32 %v569_v42, %v446_v44  ;;  %v4245_v44 = vld [vmem:[%s7886_s3] sm:$0xf] }
  0xdc   :  { %v672_v57 = vpop.f32.mrf.mxu0 }
  0xdd   :  { %v691_v58 = vpop.f32.mrf.mxu1  ;;  %v701_v20 = vadd.f32 %v672_v57, %v572_v15 }
  0xde   :  { %v702_v3 = vadd.f32 %v691_v58, %v573_v40 }
  0xdf   :  { %v715_v43 = vadd.f32 %v711_v21, %v701_v20 }
  0xe0   :  { %v716_v30 = vadd.f32 %v712_v4, %v702_v3 }
  0xe1   :  { %v723_v38 = vmax.f32 %v715_v43, 0.0 }
  0xe2   :  { %v724_v24 = vmax.f32 %v716_v30, 0.0  ;;  %v5507_v30 = vld [vmem:[%s7887_s4 + $0x30] sm:$0xff] }
  0xe3   :  { %v740_v40 = vrot.slane %v723_v38, 1  ;;  %966 = vmatpush.bf16.msrb.mxu0 %v5507_v30  ;;  %v5530_v30 = vld [vmem:[%s7888_s5 + $0x9c] sm:$0xf0] }
  0xe4   :  { %v674_v63 = vpop.f32.mrf.mxu0  ;;  %v743_v45 = vrot.slane %v724_v24, 1 }
  0xe5   :  { %v693_v0 = vpop.f32.mrf.mxu1  ;;  %v703_v18 = vadd.f32 %v674_v63, %v574_v13 }
  0xe6   :  { %v704_v5 = vadd.f32 %v693_v0, %v575_v62 }
  0xe7   :  { %v717_v32 = vadd.f32 %v711_v21, %v703_v18  ;;  %v5832_v18 = vmov 65535  }
  0xe8   :  { %v718_v11 = vadd.f32 %v712_v4, %v704_v5 }
  0xe9   :  { %v725_v52 = vmax.f32 %v717_v32, 0.0 }
  0xea   :  { %v726_v19 = vmax.f32 %v718_v11, 0.0 }
  0xeb   :  { %v741_v54 = vrot.slane %v725_v52, 1 }
  0xec   :  { %v677_v22 = vpop.f32.mrf.mxu0  ;;  %v744_v33 = vrot.slane %v726_v19, 1 }
  0xed   :  { %v696_v23 = vpop.f32.mrf.mxu1  ;;  %v705_v25 = vadd.f32 %v677_v22, %v576_v16  ;;  %v742_v2 = vsel %vm331_vm4, %v740_v40, %v741_v54  ;;  %v5506_v16 = vld [vmem:[%s7887_s4 + $0x28] sm:$0xff] }
  0xee   :  { %v706_v26 = vadd.f32 %v696_v23, %v577_v17  ;;  %v745_v56 = vsel %vm331_vm4, %v743_v45, %v744_v33  ;;  %967 = vmatpush.bf16.msrb.mxu0 %v5506_v16  ;;  %v5500_v45 = vld [vmem:[%s7886_s3] sm:$0x70]  ;;  %v5510_v40 = vld [vmem:[%s7887_s4 + $0x48] sm:$0xff] }
  0xef   :  { %v719_v34 = vadd.f32 %v711_v21, %v705_v25  ;;  %v763_v59 = vmax.f32 %v724_v24, %v745_v56 }
  0xf0   :  { %v720_v37 = vadd.f32 %v712_v4, %v706_v26 }
  0xf1   :  { %v727_v46 = vmax.f32 %v719_v34, 0.0 }
  0xf2   :  { %v728_v49 = vmax.f32 %v720_v37, 0.0 }
  0xf3   :  { %v746_v47 = vrot.slane %v727_v46, 1 }
  0xf4   :  { %v748_v55 = vrot.slane %v728_v49, 1  ;;  %v679_v39 = vpop.f32.mrf.mxu0 }
  0xf5   :  { %v698_v48 = vpop.f32.mrf.mxu1  ;;  %v707_v57 = vadd.f32 %v679_v39, %v578_v50  ;;  %v747_v0 = vsel %vm331_vm4, %v741_v54, %v746_v47  ;;  %v960_v54 = vsel %vm958_vm8, 4294967295, %v5832_v18 }
  0xf6   :  { %v708_v58 = vadd.f32 %v698_v48, %v579_v51  ;;  %v749_v53 = vsel %vm331_vm4, %v744_v33, %v748_v55  ;;  %v6350_v3 = vmax.f32 %v725_v52, %v747_v0  ;;  %v5503_v0 = vld [vmem:[%s7887_s4 + $0x10] sm:$0xff] }
  0xf7   :  { %v765_v60 = vmax.f32 %v726_v19, %v749_v53  ;;  %v721_v61 = vadd.f32 %v711_v21, %v707_v57  ;;  %v832_v19 = vsel %vm830_vm5, 4294967295, %v5832_v18  ;;  %v890_v53 = vld [vmem:[%s7887_s4 + $0x50] sm:$0xf] }
  0xf8   :  { %v722_v35 = vadd.f32 %v712_v4, %v708_v58  ;;  %v762_v4 = vmax.f32 %v723_v38, %v742_v2  ;;  %v6370_v26 = vsel %vm593_vm2, %v832_v19, 0  ;;  %v5501_v2 = vld [vmem:[%s7887_s4] sm:$0xff]  ;;  %v4430_v19 = vld [vmem:[%s7888_s5 + $0xf0] sm:$0xf] }
  0xf9   :  { %v5752_v36 = vpack.i.bf16 %v765_v60, %v763_v59  ;;  %v729_v62 = vmax.f32 %v721_v61, 0.0  ;;  %v6392_v61 = vsel %vm959_vm9, %v960_v54, 0  ;;  %v4321_v54 = vld [vmem:[%s7888_s5 + $0x80] sm:$0xf0] }
  0xfa   :  { %v730_v63 = vmax.f32 %v722_v35, 0.0  ;;  %v5757_v10 = vpack.i.bf16 %v6350_v3, %v762_v4 }
  0xfb   :  { %5753 = vrot.lane.b32.xlu1 %v5752_v36, %s5831_s28  ;;  %v750_v5 = vrot.slane %v729_v62, 1  ;;  %v5505_v36 = vld [vmem:[%s7887_s4 + $0x20] sm:$0xff] }
  0xfc   :  { %v752_v1 = vrot.slane %v730_v63, 1  ;;  %968 = vmatpush.bf16.msrb.mxu0 %v5505_v36  ;;  %v5536_v36 = vld [vmem:[%s7888_s5 + $0xd4] sm:$0xf0] }
  0xfd   :  { %v751_v11 = vsel %vm331_vm4, %v746_v47, %v750_v5  ;;  %v768_v13 = vmax.f32 %v729_v62, %v750_v5  ;;  %v5504_v62 = vld [vmem:[%s7887_s4 + $0x18] sm:$0xff]  ;;  %v4300_v5 = vld [vmem:[%s7888_s5 + $0xa8] sm:$0x33] }
  0xfe   :  { %v753_v6 = vsel %vm331_vm4, %v748_v55, %v752_v1  ;;  %v769_v7 = vmax.f32 %v730_v63, %v752_v1  ;;  %v766_v12 = vmax.f32 %v727_v46, %v751_v11  ;;  %v4246_v55 = vor.u32 %v5500_v45, %v4245_v44  ;;  %v5509_v63 = vld [vmem:[%s7887_s4 + $0x40] sm:$0xff]  ;;  %v5502_v1 = vld [vmem:[%s7887_s4 + $0x8] sm:$0xff]  ;;  %v5518_v44 = vld [vmem:[%s7888_s5 + $0x34] sm:$0xf0] }
  0xff   :  { %v767_v8 = vmax.f32 %v728_v49, %v753_v6  ;;  %v5520_v11 = vld [vmem:[%s7888_s5 + $0x44] sm:$0xf0] }
 0x100   :  { %v5747_v14 = vpack.i.bf16 %v768_v13, %v766_v12  ;;  %969 = vmatpush.bf16.msrb.mxu0 %v5504_v62 }
 0x101   :  { %v5742_v9 = vpack.i.bf16 %v769_v7, %v767_v8 }
 0x103   :  { %5743 = vrot.lane.b32.xlu0 %v5742_v9, %s5831_s28  ;;  %5758 = vrot.lane.b32.xlu1 %v5757_v10, %s5831_s28  ;;  %v4377_v10 = vld [vmem:[%s7888_s5 + $0x40] sm:$0xf] }
 0x104   :  { %970 = vmatpush.bf16.msrb.mxu0 %v5503_v0  ;;  %v5514_v0 = vld [vmem:[%s7888_s5 + $0x14] sm:$0xf0] }
 0x108   :  { %971 = vmatpush.bf16.msrb.mxu0 %v5502_v1 }
 0x10b   :  { %5748 = vrot.lane.b32.xlu0 %v5747_v14, %s5831_s28 }
 0x10c   :  { %972 = vmatpush.bf16.msrb.mxu0 %v5501_v2  ;;  %v4311_v2 = vld [vmem:[%s7888_s5 + $0x68] sm:$0xf] }
 0x16d   :  { %v5754_v15 = vpop.permute.xlu1 %5753 }
 0x16e   :  { %v5756_v22 = vunpack.i.h.bf16 %v5754_v15  ;;  %v5755_v23 = vunpack.i.l.bf16 %v5754_v15  ;;  %v5529_v15 = vld [vmem:[%s7888_s5 + $0x9c] sm:$0xf] }
 0x170   :  { %v810_v31 = vmax.f32 %v765_v60, %v5756_v22  ;;  %v808_v32 = vmax.f32 %v763_v59, %v5755_v23  ;;  %v932_v59 = vunpack.c.l.b16 %v890_v53  ;;  %v5526_v53 = vld [vmem:[%s7888_s5 + $0x7c] sm:$0xf0] }
 0x172   :  { %v816_v50 = vpack.c.bf16 %v810_v31, %v808_v32  ;;  %v943_v60 = vpack.c.b16 %v932_v59, %v932_v59  ;;  %v5525_v59 = vld [vmem:[%s7888_s5 + $0x7c] sm:$0xf] }
 0x174   :  { %v963_v35 = vand.u32 %v6392_v61, %v943_v60 }
 0x175   :  { %v5744_v17 = vpop.permute.xlu0 %5743  ;;  %v5759_v29 = vpop.permute.xlu1 %5758 }
 0x176   :  { %v5746_v20 = vunpack.i.h.bf16 %v5744_v17  ;;  %v5745_v21 = vunpack.i.l.bf16 %v5744_v17  ;;  %v5761_v37 = vunpack.i.h.bf16 %v5759_v29  ;;  %v5760_v41 = vunpack.i.l.bf16 %v5759_v29  ;;  %v4337_v17 = vld [vmem:[%s7888_s5 + $0xa0] sm:$0xf0] }
 0x177   :  { %v4340_v29 = vor.u32 %v5529_v15, %v4337_v17  ;;  %v6549_v17 = vld [vmem:[%s7888_s5 + $0x1b0] sm:$0x33] }
 0x178   :  { %v814_v24 = vmax.f32 %v769_v7, %v5746_v20  ;;  %v812_v25 = vmax.f32 %v767_v8, %v5745_v21  ;;  %v796_v56 = vsel %vm794_vm6, %v5761_v37, %v5756_v22  ;;  %v795_v38 = vsel %vm794_vm6, %v5760_v41, %v5755_v23 }
 0x179   :  { %v807_v47 = vmax.f32 %v762_v4, %v795_v38  ;;  %v809_v57 = vmax.f32 %v6350_v3, %v796_v56  ;;  %v6419_v3 = vld [vmem:[%s7888_s5 + $0x50] sm:$0x33]  ;;  %v1061_v7 = vunpack.c.l.b16 %v4300_v5  ;;  %v1062_v8 = vunpack.c.h.b16 %v4300_v5  ;;  %v6428_v4 = vld [vmem:[%s7888_s5 + $0x100] sm:$0x33]  ;;  %v5538_v56 = vld [vmem:[%s7888_s5 + $0xe4] sm:$0xf0] }
 0x17a   :  { %v818_v27 = vpack.c.bf16 %v814_v24, %v812_v25  ;;  %v1155_v6 = vunpack.c.l.b16 %v6419_v3  ;;  %v1259_v9 = vunpack.c.l.b16 %v6428_v4  ;;  %v4378_v25 = vor.u32 %v5520_v11, %v4377_v10  ;;  %v5524_v5 = vld [vmem:[%s7888_s5 + $0x6c] sm:$0xf0]  ;;  %v5534_v10 = vld [vmem:[%s7888_s5 + $0xc4] sm:$0xf0] }
 0x17b   :  { %v815_v58 = vpack.c.bf16 %v809_v57, %v807_v47  ;;  %v1074_v14 = vpack.c.b16 %v1062_v8, %v1062_v8  ;;  %v5516_v47 = vld [vmem:[%s7888_s5 + $0x24] sm:$0xf0]  ;;  %v4313_v8 = vld [vmem:[%s7888_s5 + $0x70] sm:$0xf0]  ;;  %v1156_v15 = vunpack.c.h.b16 %v6419_v3  ;;  %v5521_v3 = vld [vmem:[%s7888_s5 + $0x5c] sm:$0xf] }
 0x17c   :  { %v838_v33 = vand.u32 %v6370_v26, %v818_v27  ;;  %v1271_v16 = vpack.c.b16 %v1259_v9, %v1259_v9  ;;  %v4336_v27 = vor.u32 %v5530_v30, %v4335_v28  ;;  %v4406_v9 = vld [vmem:[%s7888_s5 + $0xc0] sm:$0xf]  ;;  %v5512_v28 = vld [vmem:[%s7888_s5 + $0x4] sm:$0xf0] }
 0x17d   :  { %v5749_v34 = vpop.permute.xlu0 %5748  ;;  %v1094_v23 = vsel %vm1089_vm10, %v1074_v14, 0  ;;  %v4345_v14 = vld [vmem:[%s7888_s5] sm:$0xf] }
 0x17e   :  { %v5751_v42 = vunpack.i.h.bf16 %v5749_v34  ;;  %v5750_v43 = vunpack.i.l.bf16 %v5749_v34  ;;  %860 = vmatpush.bf16.msra.mxu3 %v838_v33  ;;  %v1287_v24 = vsel %vm1089_vm10, %v1271_v16, 0  ;;  %1112 = vmatpush.bf16.msrb.mxu1 %v1094_v23  ;;  %v1260_v16 = vunpack.c.h.b16 %v6428_v4  ;;  %v4305_v23 = vld [vmem:[%s7888_s5 + $0x60] sm:$0xf0] }
 0x17f   :  { %1294 = vmatpush.bf16.msra.mxu0 %v1287_v24  ;;  %v1479_v4 = vunpack.c.l.b16 %v6549_v17 }
 0x180   :  { %v798_v46 = vsel %vm794_vm6, %v5751_v42, %v5746_v20  ;;  %v797_v49 = vsel %vm794_vm6, %v5750_v43, %v5745_v21  ;;  %v5540_v20 = vld [vmem:[%s7888_s5 + $0xf4] sm:$0xf0]  ;;  %v4369_v43 = vld [vmem:[%s7888_s5 + $0x30] sm:$0xf] }
 0x181   :  { %v813_v51 = vmax.f32 %v768_v13, %v798_v46  ;;  %v811_v52 = vmax.f32 %v766_v12, %v797_v49  ;;  %v1167_v12 = vpack.c.b16 %v1155_v6, %v1155_v6  ;;  %v1073_v13 = vpack.c.b16 %v1061_v7, %v1061_v7  ;;  %v4327_v46 = vld [vmem:[%s7888_s5 + $0x88] sm:$0xf]  ;;  %v5528_v49 = vld [vmem:[%s7888_s5 + $0x8c] sm:$0xf0]  ;;  %v5523_v6 = vld [vmem:[%s7888_s5 + $0x6c] sm:$0xf] }
 0x182   :  { %861 = vmatpush.bf16.msra.mxu3 %v816_v50  ;;  %v4431_v31 = vor.u32 %v5540_v20, %v4430_v19  ;;  %1113 = vmatpush.bf16.msrb.mxu1 %v4340_v29  ;;  %v4370_v45 = vor.u32 %v5518_v44, %v4369_v43  ;;  %v5527_v50 = vld [vmem:[%s7888_s5 + $0x8c] sm:$0xf]  ;;  %v4312_v7 = vor.u32 %v5524_v5, %v4311_v2  ;;  %v4303_v20 = vld [vmem:[%s7888_s5 + $0x58] sm:$0xf]  ;;  %v4483_v44 = vld [vmem:[%s7888_s5 + $0x148] sm:$0xf] }
 0x183   :  { %v817_v39 = vpack.c.bf16 %v813_v51, %v811_v52  ;;  %v1182_v21 = vsel %vm1089_vm10, %v1167_v12, 0  ;;  %v1091_v22 = vsel %vm1089_vm10, %v1073_v13, 0  ;;  %v4328_v51 = vor.u32 %v5528_v49, %v4327_v46  ;;  %v4329_v52 = vld [vmem:[%s7888_s5 + $0x90] sm:$0xf0]  ;;  %v6535_v13 = vld [vmem:[%s7888_s5 + $0x158] sm:$0x33] }
 0x184   :  { %1295 = vmatpush.bf16.msra.mxu0 %v4431_v31  ;;  %v4332_v38 = vor.u32 %v5527_v50, %v4329_v52  ;;  %v4316_v11 = vor.u32 %v5523_v6, %v4313_v8  ;;  %v4407_v12 = vor.u32 %v5534_v10, %v4406_v9  ;;  %v1370_v30 = vunpack.c.l.b16 %v6535_v13  ;;  %v5532_v29 = vld [vmem:[%s7888_s5 + $0xb4] sm:$0xf0]  ;;  %v5519_v49 = vld [vmem:[%s7888_s5 + $0x44] sm:$0xf]  ;;  %v4379_v50 = vld [vmem:[%s7888_s5 + $0x48] sm:$0xf0] }
 0x185   :  { %4248 = vmatmul.msk.bf16.vlgmr.msra.gmra.mxu3 %vm826_vm7, %v4246_v55  ;;  %v835_v48 = vand.u32 %v6370_v26, %v817_v39  ;;  %v4346_v19 = vor.u32 %v5512_v28, %v4345_v14  ;;  %v1272_v31 = vpack.c.b16 %v1260_v16, %v1260_v16  ;;  %v4382_v52 = vor.u32 %v5519_v49, %v4379_v50  ;;  %v5515_v5 = vld [vmem:[%s7888_s5 + $0x24] sm:$0xf]  ;;  %v4363_v6 = vld [vmem:[%s7888_s5 + $0x28] sm:$0xf0]  ;;  %v4416_v9 = vld [vmem:[%s7888_s5 + $0xd8] sm:$0xf0] }
 0x186   :  { %1098 = vmatpush.bf16.msrb.mxu3 %v1091_v22  ;;  %1114 = vmatpush.bf16.msrb.mxu1 %v4332_v38  ;;  %v1382_v24 = vpack.c.b16 %v1370_v30, %v1370_v30  ;;  %v5560_v38 = vld [vmem:[%s7888_s5 + $0x1a4] sm:$0xf0]  ;;  %v4366_v8 = vor.u32 %v5515_v5, %v4363_v6  ;;  %v4520_v10 = vld [vmem:[%s7888_s5 + $0x180] sm:$0xf]  ;;  %v4459_v28 = vld [vmem:[%s7888_s5 + $0x118] sm:$0xf] }
 0x187   :  { %846 = vmatpush.bf16.msra.mxu2 %v835_v48  ;;  %v4361_v48 = vld [vmem:[%s7888_s5 + $0x20] sm:$0xf]  ;;  %v5547_v5 = vld [vmem:[%s7888_s5 + $0x13c] sm:$0xf]  ;;  %v4477_v6 = vld [vmem:[%s7888_s5 + $0x140] sm:$0xf0] }
 0x188   :  { %v4362_v57 = vor.u32 %v5516_v47, %v4361_v48  ;;  %v4475_v47 = vld [vmem:[%s7888_s5 + $0x138] sm:$0xf]  ;;  %v5544_v30 = vld [vmem:[%s7888_s5 + $0x11c] sm:$0xf0] }
 0x189   :  { %v4460_v16 = vor.u32 %v5544_v30, %v4459_v28  ;;  %v4469_v28 = vld [vmem:[%s7888_s5 + $0x130] sm:$0xf0]  ;;  %v5555_v30 = vld [vmem:[%s7888_s5 + $0x184] sm:$0xf] }
 0x18a   :  { %1099 = vmatpush.bf16.msrb.mxu3 %v4336_v27  ;;  %v4398_v27 = vld [vmem:[%s7888_s5 + $0xb0] sm:$0xf] }
 0x18b   :  { %847 = vmatpush.bf16.msra.mxu2 %v815_v58  ;;  %v4319_v58 = vld [vmem:[%s7888_s5 + $0x78] sm:$0xf] }
 0x18c   :  { %v4320_v60 = vor.u32 %v5526_v53, %v4319_v58  ;;  %v5517_v53 = vld [vmem:[%s7888_s5 + $0x34] sm:$0xf] }
 0x18e   :  { %4247 = vmatmul.msk.bf16.vlgmr.msra.gmra.mxu2 %vm826_vm7, %v4246_v55  ;;  %v4422_v55 = vld [vmem:[%s7888_s5 + $0xe0] sm:$0xf]  ;;  %1100 = vmatpush.bf16.msrb.mxu3 %v4328_v51  ;;  %v5539_v51 = vld [vmem:[%s7888_s5 + $0xf4] sm:$0xf] }
 0x18f   :  { %984 = vmatpush.bf16.msrb.mxu2 %v963_v35  ;;  %v4423_v39 = vor.u32 %v5538_v56, %v4422_v55  ;;  %v4414_v35 = vld [vmem:[%s7888_s5 + $0xd0] sm:$0xf]  ;;  %v4432_v55 = vld [vmem:[%s7888_s5 + $0xf8] sm:$0xf0]  ;;  %v4536_v56 = vld [vmem:[%s7888_s5 + $0x1a0] sm:$0xf] }
 0x190   :  { %v4415_v62 = vor.u32 %v5536_v36, %v4414_v35  ;;  %v4537_v48 = vor.u32 %v5560_v38, %v4536_v56  ;;  %v4424_v35 = vld [vmem:[%s7888_s5 + $0xe8] sm:$0xf0]  ;;  %v4528_v36 = vld [vmem:[%s7888_s5 + $0x190] sm:$0xf]  ;;  %v1371_v38 = vunpack.c.h.b16 %v6535_v13 }
 0x191   :  { %1296 = vmatpush.bf16.msra.mxu0 %v4423_v39  ;;  %v4435_v39 = vor.u32 %v5539_v51, %v4432_v55 }
 0x192   :  { %1101 = vmatpush.bf16.msrb.mxu3 %v4320_v60  ;;  %v5537_v60 = vld [vmem:[%s7888_s5 + $0xe4] sm:$0xf] }
 0x193   :  { %985 = vmatpush.bf16.msrb.mxu2 %v5510_v40  ;;  %v4324_v40 = vor.u32 %v5525_v59, %v4321_v54  ;;  %v4371_v59 = vld [vmem:[%s7888_s5 + $0x38] sm:$0xf0] }
 0x194   :  { %v4374_v54 = vor.u32 %v5517_v53, %v4371_v59 }
 0x195   :  { %1115 = vmatpush.bf16.msrb.mxu1 %v4324_v40  ;;  %1297 = vmatpush.bf16.msra.mxu0 %v4415_v62  ;;  %v5558_v40 = vld [vmem:[%s7888_s5 + $0x194] sm:$0xf0]  ;;  %v4427_v62 = vor.u32 %v5537_v60, %v4424_v35 }
 0x196   :  { %1102 = vmatpush.bf16.msrb.mxu3 %v4312_v7  ;;  %v5535_v7 = vld [vmem:[%s7888_s5 + $0xd4] sm:$0xf] }
 0x197   :  { %986 = vmatpush.bf16.msrb.mxu2 %v5509_v63  ;;  %v4353_v63 = vld [vmem:[%s7888_s5 + $0x10] sm:$0xf] }
 0x198   :  { %v4354_v1 = vor.u32 %v5514_v0, %v4353_v63  ;;  %v4529_v63 = vor.u32 %v5558_v40, %v4528_v36  ;;  %v4467_v0 = vld [vmem:[%s7888_s5 + $0x128] sm:$0xf]  ;;  %v5549_v36 = vld [vmem:[%s7888_s5 + $0x14c] sm:$0xf] }
 0x199   :  { %1116 = vmatpush.bf16.msrb.mxu1 %v4316_v11  ;;  %1298 = vmatpush.bf16.msra.mxu0 %v4407_v12  ;;  %v5556_v11 = vld [vmem:[%s7888_s5 + $0x184] sm:$0xf0]  ;;  %v4419_v12 = vor.u32 %v5535_v7, %v4416_v9  ;;  %v5557_v7 = vld [vmem:[%s7888_s5 + $0x194] sm:$0xf] }
 0x19a   :  { %v4521_v14 = vor.u32 %v5556_v11, %v4520_v10  ;;  %v4480_v11 = vor.u32 %v5547_v5, %v4477_v6 }
 0x19b   :  { %1189 = vmatpush.bf16.msra.mxu2 %v1182_v21  ;;  %v5522_v21 = vld [vmem:[%s7888_s5 + $0x5c] sm:$0xf0] }
 0x19c   :  { %v4304_v22 = vor.u32 %v5522_v21, %v4303_v20  ;;  %v5533_v20 = vld [vmem:[%s7888_s5 + $0xc4] sm:$0xf]  ;;  %v4408_v21 = vld [vmem:[%s7888_s5 + $0xc8] sm:$0xf0] }
 0x19e   :  { %1103 = vmatpush.bf16.msrb.mxu3 %v4304_v22  ;;  %v4512_v22 = vld [vmem:[%s7888_s5 + $0x170] sm:$0xf] }
 0x19f   :  { %1190 = vmatpush.bf16.msra.mxu2 %v4378_v25  ;;  %v1168_v25 = vpack.c.b16 %v1156_v15, %v1156_v15  ;;  %v5513_v15 = vld [vmem:[%s7888_s5 + $0x14] sm:$0xf] }
 0x1a3   :  { %1191 = vmatpush.bf16.msra.mxu2 %v4370_v45  ;;  %v5550_v45 = vld [vmem:[%s7888_s5 + $0x14c] sm:$0xf0] }
 0x1a4   :  { %v4484_v46 = vor.u32 %v5550_v45, %v4483_v44 }
 0x1a7   :  { %1192 = vmatpush.bf16.msra.mxu2 %v4362_v57  ;;  %v5548_v57 = vld [vmem:[%s7888_s5 + $0x13c] sm:$0xf0] }
 0x1a8   :  { %v4476_v58 = vor.u32 %v5548_v57, %v4475_v47 }
 0x1ab   :  { %1193 = vmatpush.bf16.msra.mxu2 %v4354_v1  ;;  %v5546_v1 = vld [vmem:[%s7888_s5 + $0x12c] sm:$0xf0] }
 0x1ac   :  { %v4468_v2 = vor.u32 %v5546_v1, %v4467_v0  ;;  %v4538_v0 = vld [vmem:[%s7888_s5 + $0x1a8] sm:$0xf0] }
 0x1af   :  { %1194 = vmatpush.bf16.msra.mxu2 %v4346_v19  ;;  %v4355_v19 = vld [vmem:[%s7888_s5 + $0x18] sm:$0xf0] }
 0x208   :  { %v863_v32 = vpop.f32.mrf.mxu3 }
 0x210   :  { %v865_v33 = vpop.f32.mrf.mxu3 }
 0x211   :  { %v869_v34 = vpack.c.bf16 %v865_v33, %v863_v32  ;;  %v849_v37 = vpop.f32.mrf.mxu2  ;;  %v4308_v32 = vor.u32 %v5521_v3, %v4305_v23  ;;  %v4399_v33 = vor.u32 %v5532_v29, %v4398_v27  ;;  %v4358_v3 = vor.u32 %v5513_v15, %v4355_v19  ;;  %v5554_v23 = vld [vmem:[%s7888_s5 + $0x174] sm:$0xf0]  ;;  %v5542_v27 = vld [vmem:[%s7888_s5 + $0x10c] sm:$0xf0]  ;;  %v5511_v29 = vld [vmem:[%s7888_s5 + $0x4] sm:$0xf] }
 0x212   :  { %v4522_v15 = vld [vmem:[%s7888_s5 + $0x188] sm:$0xf0] }
 0x213   :  { %4289 = vmatmul.msk.bf16.vlgmr.msrb.gmra.mxu2 %vm954_vm11, %v869_v34  ;;  %v1491_v34 = vpack.c.b16 %v1479_v4, %v1479_v4  ;;  %1117 = vmatpush.bf16.msrb.mxu1 %v4308_v32  ;;  %v4411_v4 = vor.u32 %v5533_v20, %v4408_v21  ;;  %v4525_v20 = vor.u32 %v5555_v30, %v4522_v15  ;;  %v5543_v21 = vld [vmem:[%s7888_s5 + $0x11c] sm:$0xf] }
 0x214   :  { %1299 = vmatpush.bf16.msra.mxu0 %v4399_v33  ;;  %v5531_v33 = vld [vmem:[%s7888_s5 + $0xb4] sm:$0xf] }
 0x215   :  { %v1507_v43 = vsel %vm1089_vm10, %v1491_v34, 0  ;;  %v4400_v34 = vld [vmem:[%s7888_s5 + $0xb8] sm:$0xf0] }
 0x219   :  { %v851_v41 = vpop.f32.mrf.mxu2 }
 0x21a   :  { %v868_v42 = vpack.c.bf16 %v851_v41, %v849_v37  ;;  %v1398_v37 = vsel %vm1089_vm10, %v1382_v24, 0  ;;  %v1185_v41 = vsel %vm1089_vm10, %v1168_v25, 0  ;;  %v4451_v24 = vld [vmem:[%s7888_s5 + $0x108] sm:$0xf]  ;;  %v4513_v25 = vor.u32 %v5554_v23, %v4512_v22  ;;  %v5553_v22 = vld [vmem:[%s7888_s5 + $0x174] sm:$0xf] }
 0x21b   :  { %1405 = vmatpush.bf16.msrb.mxu2 %v1398_v37  ;;  %1203 = vmatpush.bf16.msra.mxu3 %v1185_v41  ;;  %v4452_v32 = vor.u32 %v5542_v27, %v4451_v24  ;;  %v4504_v41 = vld [vmem:[%s7888_s5 + $0x160] sm:$0xf]  ;;  %v4514_v23 = vld [vmem:[%s7888_s5 + $0x178] sm:$0xf0]  ;;  %v5541_v27 = vld [vmem:[%s7888_s5 + $0x10c] sm:$0xf] }
 0x21c   :  { %973 = vmatmul.bf16.vlgmr.msrb.gmra.mxu0 %v868_v42  ;;  %v1290_v42 = vsel %vm1089_vm10, %v1272_v31, 0  ;;  %v4347_v31 = vld [vmem:[%s7888_s5 + $0x8] sm:$0xf0] }
 0x21d   :  { %1308 = vmatpush.bf16.msra.mxu1 %v1290_v42  ;;  %1514 = vmatpush.bf16.msrb.mxu0 %v1507_v43  ;;  %v4350_v37 = vor.u32 %v5511_v29, %v4347_v31  ;;  %v5552_v42 = vld [vmem:[%s7888_s5 + $0x164] sm:$0xf0]  ;;  %v4403_v43 = vor.u32 %v5531_v33, %v4400_v34  ;;  %v4453_v29 = vld [vmem:[%s7888_s5 + $0x110] sm:$0xf0]  ;;  %v5551_v31 = vld [vmem:[%s7888_s5 + $0x164] sm:$0xf] }
 0x21e   :  { %v4505_v44 = vor.u32 %v5552_v42, %v4504_v41  ;;  %v4456_v33 = vor.u32 %v5541_v27, %v4453_v29 }
 0x21f   :  { %1406 = vmatpush.bf16.msrb.mxu2 %v4484_v46  ;;  %1204 = vmatpush.bf16.msra.mxu3 %v4382_v52 }
 0x221   :  { %1309 = vmatpush.bf16.msra.mxu1 %v4435_v39  ;;  %1515 = vmatpush.bf16.msrb.mxu0 %v4537_v48  ;;  %v1480_v39 = vunpack.c.h.b16 %v6549_v17 }
 0x223   :  { %1407 = vmatpush.bf16.msrb.mxu2 %v4476_v58  ;;  %1205 = vmatpush.bf16.msra.mxu3 %v4374_v54  ;;  %v1383_v58 = vpack.c.b16 %v1371_v38, %v1371_v38  ;;  %v1492_v53 = vpack.c.b16 %v1480_v39, %v1480_v39 }
 0x225   :  { %1310 = vmatpush.bf16.msra.mxu1 %v4427_v62  ;;  %1516 = vmatpush.bf16.msrb.mxu0 %v4529_v63  ;;  %v1401_v17 = vsel %vm1089_vm10, %v1383_v58, 0  ;;  %v1510_v35 = vsel %vm1089_vm10, %v1492_v53, 0  ;;  %v4485_v62 = vld [vmem:[%s7888_s5 + $0x150] sm:$0xf0]  ;;  %v5559_v63 = vld [vmem:[%s7888_s5 + $0x1a4] sm:$0xf] }
 0x226   :  { %v4488_v1 = vor.u32 %v5549_v36, %v4485_v62 }
 0x227   :  { %1408 = vmatpush.bf16.msrb.mxu2 %v4468_v2  ;;  %1206 = vmatpush.bf16.msra.mxu3 %v4366_v8  ;;  %v4541_v2 = vor.u32 %v5559_v63, %v4538_v0  ;;  %v4530_v8 = vld [vmem:[%s7888_s5 + $0x198] sm:$0xf0] }
 0x229   :  { %1311 = vmatpush.bf16.msra.mxu1 %v4419_v12  ;;  %1517 = vmatpush.bf16.msrb.mxu0 %v4521_v14  ;;  %v4533_v12 = vor.u32 %v5557_v7, %v4530_v8  ;;  %v5545_v14 = vld [vmem:[%s7888_s5 + $0x12c] sm:$0xf] }
 0x22a   :  { %v4472_v19 = vor.u32 %v5545_v14, %v4469_v28 }
 0x22b   :  { %1409 = vmatpush.bf16.msrb.mxu2 %v4460_v16  ;;  %1207 = vmatpush.bf16.msra.mxu3 %v4358_v3  ;;  %v4461_v3 = vld [vmem:[%s7888_s5 + $0x120] sm:$0xf0] }
 0x22c   :  { %v4464_v24 = vor.u32 %v5543_v21, %v4461_v3 }
 0x22d   :  { %1312 = vmatpush.bf16.msra.mxu1 %v4411_v4  ;;  %1518 = vmatpush.bf16.msrb.mxu0 %v4513_v25  ;;  %v4517_v25 = vor.u32 %v5553_v22, %v4514_v23 }
 0x22f   :  { %1410 = vmatpush.bf16.msrb.mxu2 %v4452_v32  ;;  %1208 = vmatpush.bf16.msra.mxu3 %v4350_v37  ;;  %v4506_v32 = vld [vmem:[%s7888_s5 + $0x168] sm:$0xf0] }
 0x230   :  { %v4509_v34 = vor.u32 %v5551_v31, %v4506_v32 }
 0x231   :  { %1313 = vmatpush.bf16.msra.mxu1 %v4403_v43  ;;  %1519 = vmatpush.bf16.msrb.mxu0 %v4505_v44 }
 0x296   :  { %v988_v45 = vpop.f32.mrf.mxu2 }
 0x299   :  { %v974_v46 = vpop.f32.mrf.mxu0 }
 0x29a   :  { %v989_v49 = vadd.f32 %v988_v45, %v974_v46 }
 0x29c   :  { %v993_v52 = vpack.c.bf16 %v989_v49, %v989_v49 }
 0x29e   :  { %v990_v50 = vpop.f32.mrf.mxu2  ;;  %v1020_v48 = vunpack.c.l.b16 %v993_v52 }
 0x2a1   :  { %v976_v51 = vpop.f32.mrf.mxu0 }
 0x2a2   :  { %v991_v55 = vadd.f32 %v990_v50, %v976_v51 }
 0x2a4   :  { %v994_v56 = vpack.c.bf16 %v991_v55, %v991_v55 }
 0x2a6   :  { %v1021_v47 = vunpack.c.l.b16 %v994_v56 }
 0x2a8   :  { %v6696_v57 = vpack.c.b16 %v1021_v47, %v1020_v48 }
 0x2aa   :  { %4383 = vmatmul.msk.bf16.vlgmr.msra.gmra.mxu2 %vm1085_vm12, %v6696_v57  ;;  %v1227_v59 = vrot.slane %v6696_v57, 1  ;;  %v1026_v60 = vshll.u32 %v6696_v57, 16  ;;  %v1024_v13 = vshrl.u32 %v6696_v57, 16  ;;  %v1447_v4 = vrot.slane %v6696_v57, 2 }
 0x2ac   :  { %4436 = vmatmul.msk.bf16.vlgmr.msra.gmra.mxu0 %vm1085_vm12, %v1227_v59  ;;  %v1028_v54 = vrot.slane %v1026_v60, 1  ;;  %v1336_v9 = vrot.slane %v1024_v13, 1  ;;  %v1337_v10 = vrot.slane %v1026_v60, 2 }
 0x2ae   :  { %v1029_v40 = vor.u32 %v1028_v54, %v1024_v13  ;;  %v1338_v16 = vor.u32 %v1337_v10, %v1336_v9 }
 0x2b0   :  { %4341 = vmatmul.msk.bf16.vlgmr.msrb.gmra.mxu3 %vm1085_vm12, %v1029_v40  ;;  %4342 = vmatmul.msk.bf16.vlgmr.msrb.gmra.mxu1 %vm1085_vm12, %v1029_v40 }
 0x2b1   :  { %1419 = vmatpush.bf16.msrb.mxu3 %v1401_v17  ;;  %1528 = vmatpush.bf16.msrb.mxu1 %v1510_v35  ;;  %v1544_v17 = vld [vmem:[%s7889_s6] sm:$0x3] }
 0x2b2   :  { %v1546_v0 = vperm.slane %v1544_v17, 0  ;;  %v1547_v6 = vperm.slane %v1544_v17, 1 }
 0x2b5   :  { %1420 = vmatpush.bf16.msrb.mxu3 %v4488_v1  ;;  %1529 = vmatpush.bf16.msrb.mxu1 %v4541_v2 }
 0x2b9   :  { %1421 = vmatpush.bf16.msrb.mxu3 %v4480_v11  ;;  %1530 = vmatpush.bf16.msrb.mxu1 %v4533_v12 }
 0x2ba   :  { %4489 = vmatmul.msk.bf16.vlgmr.msrb.gmra.mxu2 %vm1085_vm12, %v1338_v16 }
 0x2bc   :  { %4542 = vmatmul.msk.bf16.vlgmr.msrb.gmra.mxu0 %vm1085_vm12, %v1447_v4 }
 0x2bd   :  { %1422 = vmatpush.bf16.msrb.mxu3 %v4472_v19  ;;  %1531 = vmatpush.bf16.msrb.mxu1 %v4525_v20 }
 0x2c0   :  { %4384 = vmatmul.msk.bf16.vlgmr.msra.gmra.mxu3 %vm1085_vm12, %v6696_v57  ;;  %4437 = vmatmul.msk.bf16.vlgmr.msra.gmra.mxu1 %vm1085_vm12, %v1227_v59 }
 0x2c1   :  { %1423 = vmatpush.bf16.msrb.mxu3 %v4464_v24  ;;  %1532 = vmatpush.bf16.msrb.mxu1 %v4517_v25 }
 0x2c5   :  { %1424 = vmatpush.bf16.msrb.mxu3 %v4456_v33  ;;  %1533 = vmatpush.bf16.msrb.mxu1 %v4509_v34  ;;  %v5568_v33 = vld [vmem:[%s7891_s8 + $0x38] sm:$0xff] }
 0x2c6   :  { %1730 = vmatpush.bf16.msra.mxu0 %v5568_v33  ;;  %v5587_v33 = vld [vmem:[%s7884_s1 + $0x84] sm:$0xf] }
 0x2d0   :  { %4490 = vmatmul.msk.bf16.vlgmr.msrb.gmra.mxu3 %vm1085_vm12, %v1338_v16  ;;  %4543 = vmatmul.msk.bf16.vlgmr.msrb.gmra.mxu1 %vm1085_vm12, %v1447_v4 }
 0x329   :  { %v1301_v43 = vpop.f32.mrf.mxu0 }
 0x32d   :  { %v1119_v37 = vpop.f32.mrf.mxu1  ;;  %v1196_v41 = vpop.f32.mrf.mxu2 }
 0x331   :  { %v1303_v49 = vpop.f32.mrf.mxu0 }
 0x333   :  { %v1105_v42 = vpop.f32.mrf.mxu3 }
 0x334   :  { %v1197_v48 = vadd.f32 %v1196_v41, %v1105_v42 }
 0x335   :  { %v1121_v44 = vpop.f32.mrf.mxu1  ;;  %v1198_v45 = vpop.f32.mrf.mxu2 }
 0x336   :  { %v1320_v53 = vadd.f32 %v1301_v43, %v1197_v48  ;;  %v5566_v43 = vld [vmem:[%s7891_s8 + $0x28] sm:$0xff] }
 0x339   :  { %v1521_v55 = vpop.f32.mrf.mxu0 }
 0x33b   :  { %v1107_v46 = vpop.f32.mrf.mxu3 }
 0x33c   :  { %v1199_v38 = vadd.f32 %v1198_v45, %v1107_v46  ;;  %v1605_v45 = vsel %vm959_vm9, 4294967295, %v5832_v18 }
 0x33d   :  { %v1315_v50 = vpop.f32.mrf.mxu1  ;;  %v1412_v51 = vpop.f32.mrf.mxu2 }
 0x33e   :  { %v1322_v58 = vadd.f32 %v1303_v49, %v1199_v38  ;;  %v1431_v60 = vadd.f32 %v1412_v51, %v1320_v53  ;;  %v5593_v51 = vld [vmem:[%s7884_s1 + $0xb4] sm:$0xf]  ;;  %v5565_v38 = vld [vmem:[%s7891_s8 + $0x20] sm:$0xff] }
 0x33f   :  { %v4587_v53 = vld [vmem:[%s7883_s0 + $0x20] sm:$0xff] }
 0x340   :  { %v1540_v63 = vadd.f32 %v1521_v55, %v1431_v60  ;;  %v4590_v55 = vld [vmem:[%s7883_s0 + $0x38] sm:$0xff] }
 0x341   :  { %v1523_v13 = vpop.f32.mrf.mxu0 }
 0x342   :  { %v1550_v7 = vadd.f32 %v1546_v0, %v1540_v63  ;;  %v5564_v63 = vld [vmem:[%s7891_s8 + $0x18] sm:$0xff] }
 0x343   :  { %v1210_v52 = vpop.f32.mrf.mxu3 }
 0x344   :  { %v1211_v57 = vadd.f32 %v1210_v52, %v1119_v37  ;;  %v1554_v28 = vmax.f32 %v1550_v7, 0.0  ;;  %v5567_v37 = vld [vmem:[%s7891_s8 + $0x30] sm:$0xff] }
 0x345   :  { %v1317_v56 = vpop.f32.mrf.mxu1  ;;  %v1414_v47 = vpop.f32.mrf.mxu2  ;;  %1731 = vmatpush.bf16.msra.mxu0 %v5567_v37  ;;  %v4589_v52 = vld [vmem:[%s7883_s0 + $0x30] sm:$0xff]  ;;  %v4621_v37 = vld [vmem:[%s7884_s1 + $0x80] sm:$0xf] }
 0x346   :  { %v1433_v59 = vadd.f32 %v1414_v47, %v1322_v58  ;;  %v1321_v54 = vadd.f32 %v1315_v50, %v1211_v57  ;;  %v1562_v20 = vrot.slane %v1554_v28, 1  ;;  %v6814_v58 = vsel %vm830_vm5, %v1605_v45, 0  ;;  %v4613_v45 = vld [vmem:[%s7884_s1 + $0x70] sm:$0xf] }
 0x347   :  { %v1770_v17 = vpack.c.bf16 %v4589_v52, %v4589_v52  ;;  %v5561_v52 = vld [vmem:[%s7891_s8] sm:$0xff]  ;;  %vm3828_vm5 = vcmask 982016  }
 0x348   :  { %v1542_v40 = vadd.f32 %v1523_v13, %v1433_v59  ;;  %v4588_v59 = vld [vmem:[%s7883_s0 + $0x28] sm:$0xff] }
 0x349   :  { %1732 = vmatpush.bf16.msra.mxu0 %v5566_v43 }
 0x34a   :  { %v1552_v2 = vadd.f32 %v1546_v0, %v1542_v40 }
 0x34b   :  { %v1212_v39 = vpop.f32.mrf.mxu3 }
 0x34c   :  { %v1213_v1 = vadd.f32 %v1212_v39, %v1121_v44  ;;  %v1556_v10 = vmax.f32 %v1552_v2, 0.0  ;;  %v1725_v39 = vsel %vm331_vm4, 4294967295, %v5832_v18  ;;  %v4645_v18 = vld [vmem:[%s7884_s1 + $0xb0] sm:$0xf]  ;;  %v1768_v2 = vpack.c.bf16 %v4587_v53, %v4587_v53  ;;  %v5581_v53 = vld [vmem:[%s7884_s1 + $0x54] sm:$0xf] }
 0x34d   :  { %v1535_v35 = vpop.f32.mrf.mxu1  ;;  %1733 = vmatpush.bf16.msra.mxu0 %v5565_v38  ;;  %v6835_v0 = vsel %vm1724_vm13, %v1725_v39, 0  ;;  %v5585_v38 = vld [vmem:[%s7884_s1 + $0x74] sm:$0xf]  ;;  %v4615_v39 = vld [vmem:[%s7884_s1 + $0x78] sm:$0xf0] }
 0x34e   :  { %v1323_v8 = vadd.f32 %v1317_v56, %v1213_v1  ;;  %v1563_v15 = vrot.slane %v1556_v10, 1  ;;  %v4647_v56 = vld [vmem:[%s7884_s1 + $0xb8] sm:$0xf0] }
 0x350   :  { %v1564_v22 = vsel %vm331_vm4, %v1562_v20, %v1563_v15  ;;  %v1574_v31 = vmax.f32 %v1556_v10, %v1563_v15  ;;  %v4639_v10 = vld [vmem:[%s7884_s1 + $0xa8] sm:$0xf0]  ;;  %v1600_v15 = vld [vmem:[%s7890_s7] sm:$0x7]  ;;  %v1800_v20 = vunpack.c.l.b16 %v1768_v2  ;;  %v4763_v2 = vld [vmem:[%s7884_s1 + $0x118] sm:$0xf0] }
 0x351   :  { %v1572_v24 = vmax.f32 %v1554_v28, %v1564_v22  ;;  %v1802_v28 = vunpack.c.l.b16 %v1770_v17  ;;  %1734 = vmatpush.bf16.msra.mxu0 %v5564_v63  ;;  %v4631_v22 = vld [vmem:[%s7884_s1 + $0x98] sm:$0xf0]  ;;  %v5584_v63 = vld [vmem:[%s7884_s1 + $0x64] sm:$0xf0] }
 0x353   :  { %v1426_v36 = vpop.f32.mrf.mxu3 }
 0x354   :  { %v1432_v62 = vadd.f32 %v1426_v36, %v1321_v54  ;;  %v5594_v54 = vld [vmem:[%s7884_s1 + $0xb4] sm:$0xf0]  ;;  %v5570_v36 = vld [vmem:[%s7891_s8 + $0x48] sm:$0xff] }
 0x355   :  { %v1537_v14 = vpop.f32.mrf.mxu1 }
 0x356   :  { %v1541_v5 = vadd.f32 %v1535_v35, %v1432_v62  ;;  %v1771_v35 = vpack.c.bf16 %v4590_v55, %v4590_v55  ;;  %v4650_v62 = vor.u32 %v5593_v51, %v4647_v56  ;;  %v5569_v51 = vld [vmem:[%s7891_s8 + $0x40] sm:$0xff]  ;;  %v5586_v56 = vld [vmem:[%s7884_s1 + $0x74] sm:$0xf0] }
 0x358   :  { %v1551_v11 = vadd.f32 %v1547_v6, %v1541_v5  ;;  %v1769_v5 = vpack.c.bf16 %v4588_v59, %v4588_v59 }
 0x35a   :  { %v1555_v16 = vmax.f32 %v1551_v11, 0.0 }
 0x35b   :  { %v1428_v9 = vpop.f32.mrf.mxu3 }
 0x35c   :  { %v1434_v12 = vadd.f32 %v1428_v9, %v1323_v8  ;;  %v1565_v3 = vrot.slane %v1555_v16, 1  ;;  %v4646_v8 = vor.u32 %v5594_v54, %v4645_v18  ;;  %v5591_v9 = vld [vmem:[%s7884_s1 + $0xa4] sm:$0xf] }
 0x35e   :  { %v1543_v30 = vadd.f32 %v1537_v14, %v1434_v12  ;;  %v4637_v12 = vld [vmem:[%s7884_s1 + $0xa0] sm:$0xf]  ;;  %v5592_v14 = vld [vmem:[%s7884_s1 + $0xa4] sm:$0xf0] }
 0x360   :  { %v1553_v19 = vadd.f32 %v1547_v6, %v1543_v30  ;;  %v1728_v6 = vand.u32 %v5570_v36, %v6835_v0  ;;  %v1803_v30 = vunpack.c.l.b16 %v1771_v35  ;;  %v4614_v35 = vor.u32 %v5586_v56, %v4613_v45  ;;  %v4605_v36 = vld [vmem:[%s7884_s1 + $0x60] sm:$0xf]  ;;  %v4731_v56 = vld [vmem:[%s7884_s1 + $0xd8] sm:$0xf0] }
 0x362   :  { %v1557_v21 = vmax.f32 %v1553_v19, 0.0  ;;  %1749 = vmatpush.bf16.msra.mxu1 %v1728_v6  ;;  %v4642_v19 = vor.u32 %v5591_v9, %v4639_v10  ;;  %v5606_v6 = vld [vmem:[%s7884_s1 + $0x114] sm:$0xf0]  ;;  %v4606_v10 = vor.u32 %v5584_v63, %v4605_v36  ;;  %v4673_v63 = vld [vmem:[%s7884_s1 + $0x20] sm:$0xf] }
 0x364   :  { %v1566_v4 = vrot.slane %v1557_v21, 1 }
 0x366   :  { %v1567_v23 = vsel %vm331_vm4, %v1565_v3, %v1566_v4  ;;  %v1575_v29 = vmax.f32 %v1557_v21, %v1566_v4  ;;  %v1801_v21 = vunpack.c.l.b16 %v1769_v5  ;;  %v4638_v3 = vor.u32 %v5592_v14, %v4637_v12  ;;  %v5589_v4 = vld [vmem:[%s7884_s1 + $0x94] sm:$0xf]  ;;  %1750 = vmatpush.bf16.msra.mxu1 %v5569_v51  ;;  %v4761_v5 = vld [vmem:[%s7884_s1 + $0x110] sm:$0xf]  ;;  %v5603_v14 = vld [vmem:[%s7884_s1 + $0x104] sm:$0xf] }
 0x367   :  { %v1573_v25 = vmax.f32 %v1555_v16, %v1567_v23  ;;  %v5563_v16 = vld [vmem:[%s7891_s8 + $0x10] sm:$0xff]  ;;  %v4762_v12 = vor.u32 %v5606_v6, %v4761_v5 }
 0x368   :  { %v5767_v32 = vpack.i.bf16 %v1575_v29, %v1574_v31  ;;  %v4629_v23 = vld [vmem:[%s7884_s1 + $0x90] sm:$0xf]  ;;  %1735 = vmatpush.bf16.msra.mxu0 %v5563_v16 }
 0x369   :  { %v5762_v27 = vpack.i.bf16 %v1573_v25, %v1572_v24 }
 0x36b   :  { %5763 = vrot.lane.b32.xlu2 %v5762_v27, %s5831_s28  ;;  %v5562_v27 = vld [vmem:[%s7891_s8 + $0x8] sm:$0xff] }
 0x36c   :  { %1736 = vmatpush.bf16.msra.mxu0 %v5562_v27  ;;  %v5599_v27 = vld [vmem:[%s7884_s1 + $0xe4] sm:$0xf] }
 0x370   :  { %1737 = vmatpush.bf16.msra.mxu0 %v5561_v52  ;;  %v5598_v52 = vld [vmem:[%s7884_s1 + $0xd4] sm:$0xf0] }
 0x373   :  { %5768 = vrot.lane.b32.xlu2 %v5767_v32, %s5831_s28 }
 0x3c5   :  { %v5764_v34 = vpop.permute.xlu2 %5763 }
 0x3c6   :  { %v5766_v41 = vunpack.i.h.bf16 %v5764_v34  ;;  %v5765_v42 = vunpack.i.l.bf16 %v5764_v34  ;;  %v4623_v34 = vld [vmem:[%s7884_s1 + $0x88] sm:$0xf0] }
 0x3c8   :  { %v1588_v46 = vsel %vm794_vm6, %v5765_v42, %v5766_v41  ;;  %v1595_v48 = vmax.f32 %v1573_v25, %v5766_v41  ;;  %v6871_v25 = vpack.c.b16 %v1803_v30, %v1802_v28  ;;  %v5588_v41 = vld [vmem:[%s7884_s1 + $0x84] sm:$0xf0]  ;;  %v4755_v28 = vld [vmem:[%s7884_s1 + $0x108] sm:$0xf0]  ;;  %v4753_v30 = vld [vmem:[%s7884_s1 + $0x100] sm:$0xf] }
 0x3c9   :  { %v1594_v60 = vmax.f32 %v1572_v24, %v1588_v46  ;;  %v5590_v24 = vld [vmem:[%s7884_s1 + $0x94] sm:$0xf0]  ;;  %v4622_v55 = vor.u32 %v5588_v41, %v4621_v37 }
 0x3ca   :  { %v4630_v32 = vor.u32 %v5590_v24, %v4629_v23  ;;  %v1814_v42 = vshll.u32 %v6871_v25, 16  ;;  %v1818_v43 = vshrl.u32 %v6871_v25, 16  ;;  %v2040_v5 = vrot.slane %v6871_v25, 1 }
 0x3cc   :  { %v1816_v9 = vrot.slane %v1814_v42, 1 }
 0x3cd   :  { %v5769_v44 = vpop.permute.xlu2 %5768 }
 0x3ce   :  { %v5771_v49 = vunpack.i.h.bf16 %v5769_v44  ;;  %v5770_v50 = vunpack.i.l.bf16 %v5769_v44  ;;  %v4626_v44 = vor.u32 %v5587_v33, %v4623_v34  ;;  %v5600_v33 = vld [vmem:[%s7884_s1 + $0xe4] sm:$0xf0]  ;;  %v1820_v41 = vor.u32 %v1818_v43, %v1816_v9 }
 0x3d0   :  { %v1597_v47 = vmax.f32 %v1575_v29, %v5771_v49  ;;  %v1589_v57 = vsel %vm794_vm6, %v5770_v50, %v5771_v49  ;;  %v4634_v29 = vor.u32 %v5589_v4, %v4631_v22  ;;  %v2169_v49 = vrot.slane %v1818_v43, 1  ;;  %v4745_v4 = vld [vmem:[%s7884_s1 + $0xf0] sm:$0xf]  ;;  %v5602_v22 = vld [vmem:[%s7884_s1 + $0xf4] sm:$0xf0] }
 0x3d1   :  { %v1596_v13 = vmax.f32 %v1574_v31, %v1589_v57  ;;  %v6877_v31 = vpack.c.b16 %v1801_v21, %v1800_v20  ;;  %v2170_v50 = vrot.slane %v1814_v42, 2  ;;  %v5582_v57 = vld [vmem:[%s7884_s1 + $0x54] sm:$0xf0]  ;;  %v5601_v21 = vld [vmem:[%s7884_s1 + $0xf4] sm:$0xf]  ;;  %v4746_v24 = vor.u32 %v5602_v22, %v4745_v4 }
 0x3d2   :  { %v1599_v40 = vpack.c.bf16 %v1597_v47, %v1595_v48  ;;  %v4697_v47 = vld [vmem:[%s7884_s1 + $0x50] sm:$0xf]  ;;  %v4689_v42 = vld [vmem:[%s7884_s1 + $0x40] sm:$0xf]  ;;  %v4691_v43 = vld [vmem:[%s7884_s1 + $0x48] sm:$0xf0] }
 0x3d3   :  { %v1598_v1 = vpack.c.bf16 %v1596_v13, %v1594_v60  ;;  %v1809_v46 = vshll.u32 %v6877_v31, 16  ;;  %v6914_v48 = vor.u32 %v2170_v50, %v2169_v49  ;;  %v4698_v59 = vor.u32 %v5582_v57, %v4697_v47  ;;  %v4699_v60 = vld [vmem:[%s7884_s1 + $0x58] sm:$0xf0]  ;;  %v5579_v49 = vld [vmem:[%s7884_s1 + $0x44] sm:$0xf] }
 0x3d4   :  { %v1611_v7 = vand.u32 %v6814_v58, %v1599_v40  ;;  %v4618_v13 = vor.u32 %v5585_v38, %v4615_v39  ;;  %v1807_v18 = vshrl.u32 %v6877_v31, 16  ;;  %v4702_v17 = vor.u32 %v5581_v53, %v4699_v60  ;;  %v5583_v40 = vld [vmem:[%s7884_s1 + $0x64] sm:$0xf]  ;;  %v4729_v50 = vld [vmem:[%s7884_s1 + $0xd0] sm:$0xf] }
 0x3d5   :  { %v1608_v11 = vand.u32 %v6814_v58, %v1598_v1  ;;  %v1811_v54 = vrot.slane %v1809_v46, 1  ;;  %1991 = vmatpush.bf16.msrb.mxu1 %v4698_v59  ;;  %v5605_v1 = vld [vmem:[%s7884_s1 + $0x114] sm:$0xf]  ;;  %v4694_v51 = vor.u32 %v5579_v49, %v4691_v43  ;;  %v4730_v38 = vor.u32 %v5598_v52, %v4729_v50  ;;  %v4681_v47 = vld [vmem:[%s7884_s1 + $0x30] sm:$0xf] }
 0x3d6   :  { %1633 = vmatpush.bf16.msra.mxu3 %v1611_v7  ;;  %2010 = vmatpush.bf16.msrb.mxu0 %v4702_v17  ;;  %v5578_v57 = vld [vmem:[%s7884_s1 + $0x34] sm:$0xf0]  ;;  %v5577_v59 = vld [vmem:[%s7884_s1 + $0x34] sm:$0xf]  ;;  %v4683_v60 = vld [vmem:[%s7884_s1 + $0x38] sm:$0xf0] }
 0x3d7   :  { %1620 = vmatpush.bf16.msra.mxu2 %v1608_v11  ;;  %v4766_v11 = vor.u32 %v5605_v1, %v4763_v2  ;;  %v4682_v53 = vor.u32 %v5578_v57, %v4681_v47  ;;  %v5596_v17 = vld [vmem:[%s7884_s1 + $0xc4] sm:$0xf0]  ;;  %v2039_v2 = vrot.slane %v6877_v31, 1  ;;  %v4889_v22 = vld [vmem:[%s7884_s1 + $0x1d0] sm:$0xf] }
 0x3d8   :  { %v5576_v1 = vld [vmem:[%s7884_s1 + $0x24] sm:$0xf0]  ;;  %v5626_v49 = vld [vmem:[%s7884_s1 + $0x1b4] sm:$0xf0]  ;;  %v5625_v43 = vld [vmem:[%s7884_s1 + $0x1b4] sm:$0xf] }
 0x3d9   :  { %4545 = vmatmul.msk.bf16.vlgmr.msra.gmra.mxu3 %vm1601_vm14, %v1600_v15  ;;  %v4674_v6 = vor.u32 %v5576_v1, %v4673_v63  ;;  %v4875_v50 = vld [vmem:[%s7884_s1 + $0x1b8] sm:$0xf0] }
 0x3da   :  { %1908 = vmatpush.bf16.msrb.mxu3 %v4650_v62  ;;  %4544 = vmatmul.msk.bf16.vlgmr.msra.gmra.mxu2 %vm1601_vm14, %v1600_v15  ;;  %v4607_v62 = vld [vmem:[%s7884_s1 + $0x68] sm:$0xf0]  ;;  %v5604_v15 = vld [vmem:[%s7884_s1 + $0x104] sm:$0xf0]  ;;  %v4878_v52 = vor.u32 %v5625_v43, %v4875_v50 }
 0x3db   :  { %1889 = vmatpush.bf16.msrb.mxu2 %v4646_v8  ;;  %v4610_v7 = vor.u32 %v5583_v40, %v4607_v62  ;;  %v1812_v8 = vor.u32 %v1811_v54, %v1807_v18  ;;  %v4754_v20 = vor.u32 %v5604_v15, %v4753_v30  ;;  %2011 = vmatpush.bf16.msrb.mxu0 %v4694_v51  ;;  %v4721_v54 = vld [vmem:[%s7884_s1 + $0xc0] sm:$0xf]  ;;  %v4723_v40 = vld [vmem:[%s7884_s1 + $0xc8] sm:$0xf0]  ;;  %v4667_v30 = vld [vmem:[%s7884_s1 + $0x18] sm:$0xf0] }
 0x3dc   :  { %v4722_v36 = vor.u32 %v5596_v17, %v4721_v54  ;;  %v4657_v15 = vld [vmem:[%s7884_s1] sm:$0xf]  ;;  %v4857_v54 = vld [vmem:[%s7884_s1 + $0x190] sm:$0xf]  ;;  %v5622_v17 = vld [vmem:[%s7884_s1 + $0x194] sm:$0xf0] }
 0x3dd   :  { %v1817_v16 = vsel %vm95_vm0, %v1812_v8, %v1816_v9  ;;  %v4675_v8 = vld [vmem:[%s7884_s1 + $0x28] sm:$0xf0]  ;;  %vm1757_vm0 = vcmask 649216  }
 0x3de   :  { %1909 = vmatpush.bf16.msrb.mxu3 %v4642_v19  ;;  %v4758_v19 = vor.u32 %v5603_v14, %v4755_v28  ;;  %v5573_v14 = vld [vmem:[%s7884_s1 + $0x14] sm:$0xf] }
 0x3df   :  { %1890 = vmatpush.bf16.msrb.mxu2 %v4638_v3  ;;  %v4747_v3 = vld [vmem:[%s7884_s1 + $0xf8] sm:$0xf0] }
 0x3e0   :  { %v4750_v23 = vor.u32 %v5601_v21, %v4747_v3  ;;  %v4659_v21 = vld [vmem:[%s7884_s1 + $0x8] sm:$0xf0] }
 0x3e2   :  { %1910 = vmatpush.bf16.msrb.mxu3 %v4634_v29  ;;  %v4739_v29 = vld [vmem:[%s7884_s1 + $0xe8] sm:$0xf0] }
 0x3e3   :  { %1891 = vmatpush.bf16.msrb.mxu2 %v4630_v32  ;;  %v4737_v32 = vld [vmem:[%s7884_s1 + $0xe0] sm:$0xf]  ;;  %v4742_v34 = vor.u32 %v5599_v27, %v4739_v29  ;;  %v4891_v29 = vld [vmem:[%s7884_s1 + $0x1d8] sm:$0xf0] }
 0x3e4   :  { %v4738_v37 = vor.u32 %v5600_v33, %v4737_v32  ;;  %v4881_v33 = vld [vmem:[%s7884_s1 + $0x1c0] sm:$0xf] }
 0x3e6   :  { %1911 = vmatpush.bf16.msrb.mxu3 %v4626_v44  ;;  %v5580_v44 = vld [vmem:[%s7884_s1 + $0x44] sm:$0xf0] }
 0x3e7   :  { %1892 = vmatpush.bf16.msrb.mxu2 %v4622_v55  ;;  %v4690_v45 = vor.u32 %v5580_v44, %v4689_v42  ;;  %v5597_v55 = vld [vmem:[%s7884_s1 + $0xd4] sm:$0xf]  ;;  %v4883_v42 = vld [vmem:[%s7884_s1 + $0x1c8] sm:$0xf0] }
 0x3e8   :  { %v4734_v39 = vor.u32 %v5597_v55, %v4731_v56  ;;  %v4865_v55 = vld [vmem:[%s7884_s1 + $0x1a0] sm:$0xf]  ;;  %v5624_v56 = vld [vmem:[%s7884_s1 + $0x1a4] sm:$0xf0] }
 0x3e9   :  { %1992 = vmatpush.bf16.msrb.mxu1 %v4690_v45  ;;  %v4873_v45 = vld [vmem:[%s7884_s1 + $0x1b0] sm:$0xf]  ;;  %v4866_v47 = vor.u32 %v5624_v56, %v4865_v55  ;;  %v5609_v55 = vld [vmem:[%s7884_s1 + $0x134] sm:$0xf]  ;;  %v4795_v56 = vld [vmem:[%s7884_s1 + $0x138] sm:$0xf0] }
 0x3ea   :  { %1912 = vmatpush.bf16.msrb.mxu3 %v4618_v13  ;;  %v4686_v13 = vor.u32 %v5577_v59, %v4683_v60  ;;  %v4874_v51 = vor.u32 %v5626_v49, %v4873_v45  ;;  %v5618_v59 = vld [vmem:[%s7884_s1 + $0x174] sm:$0xf0]  ;;  %v5617_v60 = vld [vmem:[%s7884_s1 + $0x174] sm:$0xf] }
 0x3eb   :  { %1893 = vmatpush.bf16.msrb.mxu2 %v4614_v35  ;;  %v5595_v35 = vld [vmem:[%s7884_s1 + $0xc4] sm:$0xf] }
 0x3ec   :  { %2012 = vmatpush.bf16.msrb.mxu0 %v4686_v13  ;;  %v4726_v62 = vor.u32 %v5595_v35, %v4723_v40  ;;  %v4827_v13 = vld [vmem:[%s7884_s1 + $0x178] sm:$0xf0]  ;;  %v5621_v35 = vld [vmem:[%s7884_s1 + $0x194] sm:$0xf] }
 0x3ed   :  { %1993 = vmatpush.bf16.msrb.mxu1 %v4682_v53  ;;  %v4825_v53 = vld [vmem:[%s7884_s1 + $0x170] sm:$0xf]  ;;  %v4859_v40 = vld [vmem:[%s7884_s1 + $0x198] sm:$0xf0] }
 0x3ee   :  { %1913 = vmatpush.bf16.msrb.mxu3 %v4610_v7  ;;  %v5575_v7 = vld [vmem:[%s7884_s1 + $0x24] sm:$0xf]  ;;  %v4826_v63 = vor.u32 %v5618_v59, %v4825_v53  ;;  %v4862_v1 = vor.u32 %v5621_v35, %v4859_v40  ;;  %v4787_v59 = vld [vmem:[%s7884_s1 + $0x128] sm:$0xf0] }
 0x3ef   :  { %1894 = vmatpush.bf16.msrb.mxu2 %v4606_v10  ;;  %v4678_v9 = vor.u32 %v5575_v7, %v4675_v8  ;;  %v2041_v10 = vsel %vm331_vm4, %v2039_v2, %v2040_v5  ;;  %v4817_v7 = vld [vmem:[%s7884_s1 + $0x160] sm:$0xf]  ;;  %v5616_v8 = vld [vmem:[%s7884_s1 + $0x164] sm:$0xf0]  ;;  %v5607_v53 = vld [vmem:[%s7884_s1 + $0x124] sm:$0xf] }
 0x3f1   :  { %4653 = vmatmul.msk.bf16.vlgmr.msrb.gmra.mxu3 %vm171_vm1, %v1817_v16  ;;  %1994 = vmatpush.bf16.msrb.mxu1 %v4674_v6  ;;  %v4830_v6 = vor.u32 %v5617_v60, %v4827_v13  ;;  %v4790_v13 = vor.u32 %v5607_v53, %v4787_v59 }
 0x3f2   :  { %2129 = vmatpush.bf16.msra.mxu3 %v4766_v11  ;;  %4651 = vmatmul.msk.bf16.vlgmr.msrb.gmra.mxu2 %vm171_vm1, %v1817_v16  ;;  %v4665_v11 = vld [vmem:[%s7884_s1 + $0x10] sm:$0xf]  ;;  %v5572_v16 = vld [vmem:[%s7884_s1 + $0x4] sm:$0xf0] }
 0x3f3   :  { %2110 = vmatpush.bf16.msra.mxu2 %v4762_v12  ;;  %2013 = vmatpush.bf16.msrb.mxu0 %v4678_v9  ;;  %v5574_v12 = vld [vmem:[%s7884_s1 + $0x14] sm:$0xf0]  ;;  %v4658_v3 = vor.u32 %v5572_v16, %v4657_v15  ;;  %v4818_v15 = vor.u32 %v5616_v8, %v4817_v7 }
 0x3f4   :  { %v4666_v28 = vor.u32 %v5574_v12, %v4665_v11  ;;  %v4819_v11 = vld [vmem:[%s7884_s1 + $0x168] sm:$0xf0]  ;;  %v4849_v12 = vld [vmem:[%s7884_s1 + $0x180] sm:$0xf] }
 0x3f6   :  { %2130 = vmatpush.bf16.msra.mxu3 %v4758_v19  ;;  %v4670_v19 = vor.u32 %v5573_v14, %v4667_v30  ;;  %1995 = vmatpush.bf16.msrb.mxu1 %v4666_v28  ;;  %v5620_v14 = vld [vmem:[%s7884_s1 + $0x184] sm:$0xf0]  ;;  %v5619_v28 = vld [vmem:[%s7884_s1 + $0x184] sm:$0xf]  ;;  %v4851_v30 = vld [vmem:[%s7884_s1 + $0x188] sm:$0xf0] }
 0x3f7   :  { %2111 = vmatpush.bf16.msra.mxu2 %v4754_v20  ;;  %v5571_v20 = vld [vmem:[%s7884_s1 + $0x4] sm:$0xf]  ;;  %v4850_v16 = vor.u32 %v5620_v14, %v4849_v12 }
 0x3f8   :  { %2014 = vmatpush.bf16.msrb.mxu0 %v4670_v19  ;;  %v4662_v4 = vor.u32 %v5571_v20, %v4659_v21  ;;  %v4854_v19 = vor.u32 %v5619_v28, %v4851_v30  ;;  %v4809_v21 = vld [vmem:[%s7884_s1 + $0x150] sm:$0xf] }
 0x3fa   :  { %2131 = vmatpush.bf16.msra.mxu3 %v4750_v23  ;;  %v5630_v23 = vld [vmem:[%s7884_s1 + $0x1d4] sm:$0xf0]  ;;  %1996 = vmatpush.bf16.msrb.mxu1 %v4658_v3 }
 0x3fb   :  { %2112 = vmatpush.bf16.msra.mxu2 %v4746_v24  ;;  %v5629_v24 = vld [vmem:[%s7884_s1 + $0x1d4] sm:$0xf]  ;;  %v4890_v27 = vor.u32 %v5630_v23, %v4889_v22  ;;  %v5614_v3 = vld [vmem:[%s7884_s1 + $0x154] sm:$0xf0]  ;;  %v2298_v22 = vrot.slane %v6871_v25, 2  ;;  %v2166_v23 = vrot.slane %v1807_v18, 1 }
 0x3fc   :  { %v4894_v32 = vor.u32 %v5629_v24, %v4891_v29  ;;  %2015 = vmatpush.bf16.msrb.mxu0 %v4662_v4  ;;  %v2297_v4 = vrot.slane %v6877_v31, 2  ;;  %v5613_v24 = vld [vmem:[%s7884_s1 + $0x154] sm:$0xf] }
 0x3fe   :  { %2132 = vmatpush.bf16.msra.mxu3 %v4742_v34  ;;  %v5628_v34 = vld [vmem:[%s7884_s1 + $0x1c4] sm:$0xf0]  ;;  %v2299_v29 = vsel %vm593_vm2, %v2297_v4, %v2298_v22  ;;  %vm1758_vm2 = vsmask.f32 2304 }
 0x3ff   :  { %2113 = vmatpush.bf16.msra.mxu2 %v4738_v37  ;;  %v5627_v37 = vld [vmem:[%s7884_s1 + $0x1c4] sm:$0xf] }
 0x400   :  { %v4886_v44 = vor.u32 %v5627_v37, %v4883_v42  ;;  %v5612_v42 = vld [vmem:[%s7884_s1 + $0x144] sm:$0xf0] }
 0x401   :  { %4654 = vmatmul.msk.bf16.gmra.mxu3 %vm171_vm1, %v1820_v41 }
 0x402   :  { %4652 = vmatmul.msk.bf16.gmra.mxu2 %vm171_vm1, %v1820_v41  ;;  %2133 = vmatpush.bf16.msra.mxu3 %v4734_v39  ;;  %v4882_v41 = vor.u32 %v5628_v34, %v4881_v33  ;;  %v4867_v39 = vld [vmem:[%s7884_s1 + $0x1a8] sm:$0xf0]  ;;  %v4810_v33 = vor.u32 %v5614_v3, %v4809_v21  ;;  %v2167_v34 = vrot.slane %v1809_v46, 2 }
 0x403   :  { %2114 = vmatpush.bf16.msra.mxu2 %v4730_v38  ;;  %v5623_v38 = vld [vmem:[%s7884_s1 + $0x1a4] sm:$0xf]  ;;  %v4803_v46 = vld [vmem:[%s7884_s1 + $0x148] sm:$0xf0] }
 0x404   :  { %v4870_v57 = vor.u32 %v5623_v38, %v4867_v39  ;;  %v2168_v45 = vor.u32 %v2167_v34, %v2166_v23  ;;  %v4798_v39 = vor.u32 %v5609_v55, %v4795_v56 }
 0x406   :  { %2134 = vmatpush.bf16.msra.mxu3 %v4726_v62  ;;  %v2172_v43 = vsel %vm460_vm3, %v2168_v45, %v6914_v48  ;;  %vm7267_vm3 = vmand %vm1757_vm0, %vm1758_vm2 }
 0x407   :  { %2115 = vmatpush.bf16.msra.mxu2 %v4722_v36  ;;  %v4858_v36 = vor.u32 %v5622_v17, %v4857_v54 }
 0x40a   :  { %2387 = vmatpush.bf16.msrb.mxu3 %v4894_v32 }
 0x40b   :  { %2368 = vmatpush.bf16.msrb.mxu2 %v4890_v27  ;;  %v4811_v27 = vld [vmem:[%s7884_s1 + $0x158] sm:$0xf0] }
 0x40c   :  { %v4814_v18 = vor.u32 %v5613_v24, %v4811_v27 }
 0x40e   :  { %2388 = vmatpush.bf16.msrb.mxu3 %v4886_v44  ;;  %v5611_v44 = vld [vmem:[%s7884_s1 + $0x144] sm:$0xf] }
 0x40f   :  { %2369 = vmatpush.bf16.msrb.mxu2 %v4882_v41  ;;  %v4801_v41 = vld [vmem:[%s7884_s1 + $0x140] sm:$0xf]  ;;  %v4806_v50 = vor.u32 %v5611_v44, %v4803_v46 }
 0x410   :  { %v4802_v49 = vor.u32 %v5612_v42, %v4801_v41  ;;  %v2412_v44 = vld [vmem:[%s7885_s2] sm:$0x3] }
 0x411   :  { %4769 = vmatmul.msk.bf16.vlgmr.msra.gmra.mxu3 %vm171_vm1, %v2041_v10 }
 0x412   :  { %4767 = vmatmul.msk.bf16.vlgmr.msra.gmra.mxu2 %vm171_vm1, %v2041_v10  ;;  %2389 = vmatpush.bf16.msrb.mxu3 %v4878_v52  ;;  %v5615_v10 = vld [vmem:[%s7884_s1 + $0x164] sm:$0xf]  ;;  %v5610_v52 = vld [vmem:[%s7884_s1 + $0x134] sm:$0xf0] }
 0x413   :  { %2370 = vmatpush.bf16.msrb.mxu2 %v4874_v51  ;;  %v4822_v20 = vor.u32 %v5615_v10, %v4819_v11  ;;  %v4793_v51 = vld [vmem:[%s7884_s1 + $0x130] sm:$0xf] }
 0x414   :  { %v4794_v38 = vor.u32 %v5610_v52, %v4793_v51  ;;  %v2415_v52 = vperm.slane %v2412_v44, 1 }
 0x416   :  { %2390 = vmatpush.bf16.msrb.mxu3 %v4870_v57  ;;  %v5608_v57 = vld [vmem:[%s7884_s1 + $0x124] sm:$0xf0] }
 0x417   :  { %2371 = vmatpush.bf16.msrb.mxu2 %v4866_v47  ;;  %v4785_v47 = vld [vmem:[%s7884_s1 + $0x120] sm:$0xf] }
 0x418   :  { %v4786_v60 = vor.u32 %v5608_v57, %v4785_v47 }
 0x41a   :  { %2391 = vmatpush.bf16.msrb.mxu3 %v4862_v1 }
 0x41b   :  { %2372 = vmatpush.bf16.msrb.mxu2 %v4858_v36 }
 0x41e   :  { %2392 = vmatpush.bf16.msrb.mxu3 %v4854_v19 }
 0x41f   :  { %2373 = vmatpush.bf16.msrb.mxu2 %v4850_v16 }
 0x421   :  { %4770 = vmatmul.msk.bf16.gmra.mxu3 %vm171_vm1, %v2040_v5 }
 0x422   :  { %4768 = vmatmul.msk.bf16.gmra.mxu2 %vm171_vm1, %v2040_v5 }
 0x431   :  { %4897 = vmatmul.msk.bf16.vlgmr.msrb.gmra.mxu3 %vm171_vm1, %v2299_v29 }
 0x432   :  { %4895 = vmatmul.msk.bf16.vlgmr.msrb.gmra.mxu2 %vm171_vm1, %v2299_v29 }
 0x441   :  { %4898 = vmatmul.msk.bf16.gmra.mxu3 %vm171_vm1, %v2298_v22 }
 0x442   :  { %4896 = vmatmul.msk.bf16.gmra.mxu2 %vm171_vm1, %v2298_v22 }
 0x45c   :  { %v1635_v62 = vpop.f32.mrf.mxu3 }
 0x45d   :  { %v1640_v2 = vpack.c.bf16 %v1635_v62, %v1635_v62  ;;  %v1622_v5 = vpop.f32.mrf.mxu2 }
 0x45e   :  { %v1639_v9 = vpack.c.bf16 %v1622_v5, %v1622_v5 }
 0x45f   :  { %4586 = vmatmul.msk.bf16.vlgmr.msra.gmra.mxu1 %vm1720_vm15, %v1640_v2 }
 0x460   :  { %1738 = vmatmul.bf16.vlgmr.msra.gmra.mxu0 %v1639_v9  ;;  %2241 = vmatpush.bf16.msra.mxu1 %v4826_v63 }
 0x461   :  { %2260 = vmatpush.bf16.msra.mxu0 %v4830_v6 }
 0x464   :  { %v1637_v32 = vpop.f32.mrf.mxu3  ;;  %2242 = vmatpush.bf16.msra.mxu1 %v4818_v15 }
 0x465   :  { %v1624_v37 = vpop.f32.mrf.mxu2  ;;  %2261 = vmatpush.bf16.msra.mxu0 %v4822_v20 }
 0x468   :  { %2243 = vmatpush.bf16.msra.mxu1 %v4810_v33 }
 0x469   :  { %2262 = vmatpush.bf16.msra.mxu0 %v4814_v18 }
 0x46c   :  { %2244 = vmatpush.bf16.msra.mxu1 %v4802_v49 }
 0x46d   :  { %2263 = vmatpush.bf16.msra.mxu0 %v4806_v50  ;;  %v2414_v50 = vperm.slane %v2412_v44, 0 }
 0x46f   :  { %4703 = vmatmul.msk.bf16.vlgmr.msrb.gmra.mxu1 %vm171_vm1, %v6877_v31 }
 0x470   :  { %4705 = vmatmul.msk.bf16.vlgmr.msrb.gmra.mxu0 %vm171_vm1, %v6877_v31  ;;  %2245 = vmatpush.bf16.msra.mxu1 %v4794_v38 }
 0x471   :  { %2264 = vmatpush.bf16.msra.mxu0 %v4798_v39 }
 0x474   :  { %2246 = vmatpush.bf16.msra.mxu1 %v4786_v60  ;;  %v1915_v54 = vpop.f32.mrf.mxu3 }
 0x475   :  { %2265 = vmatpush.bf16.msra.mxu0 %v4790_v13  ;;  %v1896_v31 = vpop.f32.mrf.mxu2 }
 0x47c   :  { %v1917_v35 = vpop.f32.mrf.mxu3 }
 0x47d   :  { %v1898_v17 = vpop.f32.mrf.mxu2 }
 0x47f   :  { %4704 = vmatmul.msk.bf16.gmra.mxu1 %vm171_vm1, %v6871_v25 }
 0x480   :  { %4706 = vmatmul.msk.bf16.gmra.mxu0 %vm171_vm1, %v6871_v25 }
 0x484   :  { %v1920_v40 = vpop.f32.mrf.mxu3 }
 0x485   :  { %v1901_v36 = vpop.f32.mrf.mxu2 }
 0x48c   :  { %v7265_v63 = vpop.f32.mrf.mxu3 }
 0x48d   :  { %v7263_v62 = vpop.f32.mrf.mxu2 }
 0x48f   :  { %4831 = vmatmul.msk.bf16.vlgmr.msra.gmra.mxu1 %vm171_vm1, %v2172_v43 }
 0x490   :  { %4833 = vmatmul.msk.bf16.vlgmr.msra.gmra.mxu0 %vm171_vm1, %v2172_v43 }
 0x494   :  { %v2136_v8 = vpop.f32.mrf.mxu3 }
 0x495   :  { %v2117_v7 = vpop.f32.mrf.mxu2 }
 0x49c   :  { %v2138_v14 = vpop.f32.mrf.mxu3 }
 0x49d   :  { %v2119_v12 = vpop.f32.mrf.mxu2 }
 0x49f   :  { %4832 = vmatmul.msk.bf16.gmra.mxu1 %vm171_vm1, %v6914_v48 }
 0x4a0   :  { %4834 = vmatmul.msk.bf16.gmra.mxu0 %vm171_vm1, %v6914_v48  ;;  %v1760_v48 = vld [vmem:[#allocation2] sm:$0x7]  ;;  %vm3461_vm1 = vcmask 1041409  }
 0x4a4   :  { %v2141_v20 = vpop.f32.mrf.mxu3 }
 0x4a5   :  { %v2122_v16 = vpop.f32.mrf.mxu2 }
 0x4ac   :  { %v7273_v22 = vpop.f32.mrf.mxu3 }
 0x4ad   :  { %v2124_v4 = vpop.f32.mrf.mxu2 }
 0x4b4   :  { %v2394_v33 = vpop.f32.mrf.mxu3 }
 0x4b5   :  { %v2375_v32 = vpop.f32.mrf.mxu2 }
 0x4bc   :  { %v2396_v56 = vpop.f32.mrf.mxu3 }
 0x4bd   :  { %v2377_v55 = vpop.f32.mrf.mxu2 }
 0x4dc   :  { %v1752_v25 = vpop.f32.mrf.mxu1 }
 0x4dd   :  { %v1739_v1 = vpop.f32.mrf.mxu0 }
 0x4de   :  { %v1753_v2 = vadd.f32 %v1752_v25, %v1739_v1 }
 0x4e0   :  { %v1756_v6 = vpack.c.bf16 %v1753_v2, %v1753_v2 }
 0x4e2   :  { %v1761_v9 = vsel %vm7267_vm3, %v1756_v6, %v1760_v48 }
 0x4e3   :  { %1762 = vst [vmem:[#allocation2] sm:$0x7] %v1761_v9  ;;  %v2380_v9 = vpop.f32.mrf.mxu2 }
 0x4e4   :  { %v1754_v10 = vpop.f32.mrf.mxu1 }
 0x4e5   :  { %v1741_v11 = vpop.f32.mrf.mxu0 }
 0x4ec   :  { %v1998_v28 = vpop.f32.mrf.mxu1 }
 0x4ed   :  { %v2017_v30 = vpop.f32.mrf.mxu0  ;;  %v1999_v27 = vadd.f32 %v1998_v28, %v1896_v31  ;;  %v2399_v28 = vpop.f32.mrf.mxu3 }
 0x4ee   :  { %v2018_v29 = vadd.f32 %v2017_v30, %v1915_v54 }
 0x4ef   :  { %v2146_v34 = vadd.f32 %v2117_v7, %v1999_v27 }
 0x4f0   :  { %v2147_v18 = vadd.f32 %v2136_v8, %v2018_v29 }
 0x4f4   :  { %v2000_v15 = vpop.f32.mrf.mxu1 }
 0x4f5   :  { %v2019_v19 = vpop.f32.mrf.mxu0  ;;  %v2001_v45 = vadd.f32 %v2000_v15, %v1898_v17 }
 0x4f6   :  { %v2020_v49 = vadd.f32 %v2019_v19, %v1917_v35 }
 0x4f7   :  { %v2148_v38 = vadd.f32 %v2119_v12, %v2001_v45 }
 0x4f8   :  { %v2149_v47 = vadd.f32 %v2138_v14, %v2020_v49 }
 0x4fc   :  { %v2003_v21 = vpop.f32.mrf.mxu1 }
 0x4fd   :  { %v2022_v3 = vpop.f32.mrf.mxu0  ;;  %v2004_v31 = vadd.f32 %v2003_v21, %v1901_v36 }
 0x4fe   :  { %v2023_v25 = vadd.f32 %v2022_v3, %v1920_v40 }
 0x4ff   :  { %v2150_v7 = vadd.f32 %v2122_v16, %v2004_v31 }
 0x500   :  { %v2151_v11 = vadd.f32 %v2141_v20, %v2023_v25 }
 0x504   :  { %v2005_v23 = vpop.f32.mrf.mxu1 }
 0x505   :  { %v2024_v24 = vpop.f32.mrf.mxu0  ;;  %v2006_v40 = vadd.f32 %v2005_v23, %v7263_v62 }
 0x506   :  { %v2025_v27 = vadd.f32 %v2024_v24, %v7265_v63  ;;  %v2382_v24 = vpop.f32.mrf.mxu2 }
 0x50c   :  { %v2248_v37 = vpop.f32.mrf.mxu1 }
 0x50d   :  { %v2277_v41 = vadd.f32 %v2248_v37, %v2146_v34  ;;  %v2267_v42 = vpop.f32.mrf.mxu0  ;;  %v2152_v34 = vadd.f32 %v2124_v4, %v2006_v40 }
 0x50e   :  { %v2278_v46 = vadd.f32 %v2267_v42, %v2147_v18 }
 0x50f   :  { %v2404_v43 = vadd.f32 %v2375_v32, %v2277_v41  ;;  %v2153_v41 = vadd.f32 %v7273_v22, %v2025_v27 }
 0x510   :  { %v2405_v51 = vadd.f32 %v2394_v33, %v2278_v46  ;;  %v2401_v46 = vpop.f32.mrf.mxu3 }
 0x511   :  { %v2418_v57 = vadd.f32 %v2414_v50, %v2404_v43 }
 0x512   :  { %v2419_v60 = vadd.f32 %v2415_v52, %v2405_v51 }
 0x513   :  { %v2426_v17 = vmax.f32 %v2418_v57, 0.0 }
 0x514   :  { %v2250_v39 = vpop.f32.mrf.mxu1  ;;  %v2427_v2 = vmax.f32 %v2419_v60, 0.0 }
 0x515   :  { %v2279_v53 = vadd.f32 %v2250_v39, %v2148_v38  ;;  %v2269_v59 = vpop.f32.mrf.mxu0  ;;  %v2442_v12 = vrot.slane %v2426_v17, 1 }
 0x516   :  { %v2280_v13 = vadd.f32 %v2269_v59, %v2149_v47  ;;  %v2445_v19 = vrot.slane %v2427_v2, 1 }
 0x517   :  { %v2406_v54 = vadd.f32 %v2377_v55, %v2279_v53 }
 0x518   :  { %v2407_v1 = vadd.f32 %v2396_v56, %v2280_v13 }
 0x519   :  { %v2420_v35 = vadd.f32 %v2414_v50, %v2406_v54 }
 0x51a   :  { %v2421_v48 = vadd.f32 %v2415_v52, %v2407_v1 }
 0x51b   :  { %v2428_v6 = vmax.f32 %v2420_v35, 0.0 }
 0x51c   :  { %v2429_v8 = vmax.f32 %v2421_v48, 0.0  ;;  %v2253_v10 = vpop.f32.mrf.mxu1  ;;  %v5639_v48 = vld [vmem:[%s7887_s4 + $0x38] sm:$0xff] }
 0x51d   :  { %v2443_v14 = vrot.slane %v2428_v6, 1  ;;  %v2281_v30 = vadd.f32 %v2253_v10, %v2150_v7  ;;  %v2272_v15 = vpop.f32.mrf.mxu0  ;;  %2656 = vmatpush.bf16.msra.mxu2 %v5639_v48  ;;  %v5638_v7 = vld [vmem:[%s7887_s4 + $0x30] sm:$0xff]  ;;  %v4991_v48 = vld [vmem:[%s7888_s5 + $0x98] sm:$0xf] }
 0x51e   :  { %v2446_v36 = vrot.slane %v2429_v8, 1  ;;  %v2282_v21 = vadd.f32 %v2272_v15, %v2151_v11 }
 0x51f   :  { %v2444_v3 = vsel %vm331_vm4, %v2442_v12, %v2443_v14  ;;  %v2408_v32 = vadd.f32 %v2380_v9, %v2281_v30  ;;  %v5637_v9 = vld [vmem:[%s7887_s4 + $0x28] sm:$0xff]  ;;  %v5635_v30 = vld [vmem:[%s7887_s4 + $0x18] sm:$0xff] }
 0x520   :  { %v2447_v16 = vsel %vm331_vm4, %v2445_v19, %v2446_v36  ;;  %v7282_v29 = vmax.f32 %v2426_v17, %v2444_v3  ;;  %v2409_v33 = vadd.f32 %v2399_v28, %v2282_v21 }
 0x521   :  { %v7284_v20 = vmax.f32 %v2427_v2, %v2447_v16  ;;  %v2422_v62 = vadd.f32 %v2414_v50, %v2408_v32  ;;  %2657 = vmatpush.bf16.msra.mxu2 %v5638_v7  ;;  %v5661_v7 = vld [vmem:[%s7888_s5 + $0x9c] sm:$0xf0] }
 0x522   :  { %v2423_v63 = vadd.f32 %v2415_v52, %v2409_v33 }
 0x523   :  { %v5777_v37 = vpack.i.bf16 %v7284_v20, %v7282_v29  ;;  %v2430_v43 = vmax.f32 %v2422_v62, 0.0 }
 0x524   :  { %v2255_v18 = vpop.f32.mrf.mxu1  ;;  %v2431_v4 = vmax.f32 %v2423_v63, 0.0 }
 0x525   :  { %v2283_v23 = vadd.f32 %v2255_v18, %v2152_v34  ;;  %v2274_v42 = vpop.f32.mrf.mxu0  ;;  %5778 = vrot.lane.b32.xlu2 %v5777_v37, %s5831_s28  ;;  %v2448_v39 = vrot.slane %v2430_v43, 1  ;;  %2658 = vmatpush.bf16.msra.mxu2 %v5637_v9  ;;  %v5660_v9 = vld [vmem:[%s7888_s5 + $0x9c] sm:$0xf] }
 0x526   :  { %v2284_v44 = vadd.f32 %v2274_v42, %v2153_v41  ;;  %v2450_v22 = vrot.slane %v2431_v4, 1 }
 0x527   :  { %v2410_v45 = vadd.f32 %v2382_v24, %v2283_v23 }
 0x528   :  { %v2411_v49 = vadd.f32 %v2401_v46, %v2284_v44  ;;  %v4901_v46 = vld [vmem:[%s7886_s3] sm:$0xf] }
 0x529   :  { %v2424_v51 = vadd.f32 %v2414_v50, %v2410_v45  ;;  %v2449_v50 = vsel %vm331_vm4, %v2443_v14, %v2448_v39  ;;  %v5631_v45 = vld [vmem:[%s7886_s3] sm:$0x70]  ;;  %s3926_s3 = sshll.u32 %s7898_s15, 4  ;;  %s3927_s3 = int_to_ptr.hbm [resolvable:$true] %s3926_s3 }
 0x52a   :  { %v2425_v55 = vadd.f32 %v2415_v52, %v2411_v49  ;;  %v2451_v52 = vsel %vm331_vm4, %v2446_v36, %v2450_v22  ;;  %v2466_v17 = vmax.f32 %v2428_v6, %v2449_v50  ;;  %v5636_v6 = vld [vmem:[%s7887_s4 + $0x20] sm:$0xff] }
 0x52b   :  { %v2432_v56 = vmax.f32 %v2424_v51, 0.0  ;;  %v2467_v35 = vmax.f32 %v2429_v8, %v2451_v52  ;;  %2659 = vmatpush.bf16.msra.mxu2 %v5636_v6  ;;  %v4993_v6 = vld [vmem:[%s7888_s5 + $0xa0] sm:$0xf0] }
 0x52c   :  { %v2433_v38 = vmax.f32 %v2425_v55, 0.0 }
 0x52d   :  { %v2452_v47 = vrot.slane %v2432_v56, 1  ;;  %v5787_v2 = vpack.i.bf16 %v2467_v35, %v2466_v17 }
 0x52e   :  { %v2454_v57 = vrot.slane %v2433_v38, 1 }
 0x52f   :  { %v2470_v53 = vmax.f32 %v2432_v56, %v2452_v47  ;;  %v2453_v59 = vsel %vm331_vm4, %v2448_v39, %v2452_v47  ;;  %2660 = vmatpush.bf16.msra.mxu2 %v5635_v30  ;;  %v5633_v39 = vld [vmem:[%s7887_s4 + $0x8] sm:$0xff]  ;;  %v4992_v30 = vor.u32 %v5661_v7, %v4991_v48 }
 0x530   :  { %v2471_v60 = vmax.f32 %v2433_v38, %v2454_v57  ;;  %v2455_v13 = vsel %vm331_vm4, %v2450_v22, %v2454_v57  ;;  %v2468_v31 = vmax.f32 %v2430_v43, %v2453_v59  ;;  %v5641_v47 = vld [vmem:[%s7887_s4 + $0x48] sm:$0xff]  ;;  %v5632_v22 = vld [vmem:[%s7887_s4] sm:$0xff]  ;;  %v2696_v57 = vld [vmem:[%s7888_s5 + $0x50] sm:$0x33] }
 0x531   :  { %v2469_v54 = vmax.f32 %v2431_v4, %v2455_v13  ;;  %v4902_v4 = vor.u32 %v5631_v45, %v4901_v46  ;;  %v2843_v59 = vunpack.c.l.b16 %v2696_v57  ;;  %v5647_v46 = vld [vmem:[%s7888_s5 + $0x24] sm:$0xf0]  ;;  %v5646_v45 = vld [vmem:[%s7888_s5 + $0x24] sm:$0xf] }
 0x532   :  { %v5772_v25 = vpack.i.bf16 %v2471_v60, %v2470_v53 }
 0x533   :  { %v5782_v1 = vpack.i.bf16 %v2469_v54, %v2468_v31 }
 0x534   :  { %5773 = vrot.lane.b32.xlu1 %v5772_v25, %s5831_s28  ;;  %v5651_v25 = vld [vmem:[%s7888_s5 + $0x44] sm:$0xf0] }
 0x535   :  { %5783 = vrot.lane.b32.xlu0 %v5782_v1, %s5831_s28  ;;  %v2855_v1 = vpack.c.b16 %v2843_v59, %v2843_v59 }
 0x53d   :  { %5788 = vrot.lane.b32.xlu0 %v5787_v2, %s5831_s28  ;;  %v5035_v2 = vld [vmem:[%s7888_s5 + $0x48] sm:$0xf0] }
 0x57f   :  { %v5779_v15 = vpop.permute.xlu2 %5778 }
 0x580   :  { %v5781_v16 = vunpack.i.h.bf16 %v5779_v15  ;;  %v5780_v32 = vunpack.i.l.bf16 %v5779_v15  ;;  %v4996_v15 = vor.u32 %v5660_v9, %v4993_v6  ;;  %v5003_v6 = vld [vmem:[%s7888_s5 + $0x8] sm:$0xf0] }
 0x582   :  { %v2496_v62 = vsel %vm794_vm6, %v5780_v32, %v5781_v16  ;;  %v2509_v63 = vmax.f32 %v7284_v20, %v5781_v16  ;;  %v2586_v20 = vld [vmem:[%s7887_s4 + $0x50] sm:$0xf]  ;;  %v5649_v32 = vld [vmem:[%s7888_s5 + $0x34] sm:$0xf0] }
 0x583   :  { %v2628_v55 = vunpack.c.l.b16 %v2586_v20  ;;  %v5025_v16 = vld [vmem:[%s7888_s5 + $0x30] sm:$0xf] }
 0x585   :  { %v2639_v56 = vpack.c.b16 %v2628_v55, %v2628_v55  ;;  %v5656_v55 = vld [vmem:[%s7888_s5 + $0x7c] sm:$0xf] }
 0x587   :  { %v2654_v38 = vand.u32 %v2639_v56, %v6392_v61  ;;  %v5640_v61 = vld [vmem:[%s7887_s4 + $0x40] sm:$0xff] }
 0x588   :  { %v4977_v56 = vld [vmem:[%s7888_s5 + $0x80] sm:$0xf0] }
 0x5a6   :  { %v5774_v8 = vpop.permute.xlu1 %5773 }
 0x5a7   :  { %v5776_v10 = vunpack.i.h.bf16 %v5774_v8  ;;  %v5775_v11 = vunpack.i.l.bf16 %v5774_v8  ;;  %v5784_v12 = vpop.permute.xlu0 %5783  ;;  %v2870_v8 = vsel %vm1089_vm10, %v2855_v1, 0 }
 0x5a8   :  { %v5786_v14 = vunpack.i.h.bf16 %v5784_v12  ;;  %v5785_v28 = vunpack.i.l.bf16 %v5784_v12 }
 0x5a9   :  { %v2515_v19 = vmax.f32 %v2471_v60, %v5776_v10  ;;  %v2499_v36 = vsel %vm794_vm6, %v5775_v11, %v5776_v10  ;;  %v2844_v60 = vunpack.c.h.b16 %v2696_v57  ;;  %v4967_v57 = vld [vmem:[%s7888_s5 + $0x68] sm:$0xf] }
 0x5aa   :  { %v2514_v21 = vmax.f32 %v2470_v53, %v2499_v36  ;;  %v2513_v40 = vmax.f32 %v2469_v54, %v5786_v14  ;;  %v2498_v3 = vsel %vm794_vm6, %v5785_v28, %v5786_v14  ;;  %v4956_v53 = vld [vmem:[%s7888_s5 + $0xa8] sm:$0x33]  ;;  %v5033_v54 = vld [vmem:[%s7888_s5 + $0x40] sm:$0xf] }
 0x5ab   :  { %v2512_v27 = vmax.f32 %v2468_v31, %v2498_v3  ;;  %v2751_v13 = vunpack.c.l.b16 %v4956_v53  ;;  %v2752_v31 = vunpack.c.h.b16 %v4956_v53  ;;  %v2856_v50 = vpack.c.b16 %v2844_v60, %v2844_v60  ;;  %v5655_v53 = vld [vmem:[%s7888_s5 + $0x6c] sm:$0xf0] }
 0x5ac   :  { %v2519_v33 = vpack.c.bf16 %v2515_v19, %v2513_v40  ;;  %v5034_v14 = vor.u32 %v5651_v25, %v5033_v54  ;;  %v4968_v60 = vor.u32 %v5655_v53, %v4967_v57  ;;  %v5104_v54 = vld [vmem:[%s7888_s5 + $0x158] sm:$0x33] }
 0x5ad   :  { %v2518_v34 = vpack.c.bf16 %v2514_v21, %v2512_v27  ;;  %v2763_v52 = vpack.c.b16 %v2751_v13, %v2751_v13  ;;  %v2873_v10 = vsel %vm1089_vm10, %v2856_v50, 0  ;;  %v5654_v13 = vld [vmem:[%s7888_s5 + $0x6c] sm:$0xf]  ;;  %v3056_v1 = vunpack.c.l.b16 %v5104_v54 }
 0x5ae   :  { %v2534_v37 = vand.u32 %v2519_v33, %v6370_v26  ;;  %v5648_v33 = vld [vmem:[%s7888_s5 + $0x34] sm:$0xf]  ;;  %v3057_v50 = vunpack.c.h.b16 %v5104_v54  ;;  %v5072_v54 = vld [vmem:[%s7888_s5 + $0xd8] sm:$0xf0] }
 0x5af   :  { %v5789_v18 = vpop.permute.xlu0 %5788  ;;  %v2531_v41 = vand.u32 %v2518_v34, %v6370_v26  ;;  %v2508_v26 = vmax.f32 %v7282_v29, %v2496_v62  ;;  %v5634_v29 = vld [vmem:[%s7887_s4 + $0x10] sm:$0xff]  ;;  %v2779_v11 = vsel %vm1089_vm10, %v2763_v52, 0  ;;  %v5026_v34 = vor.u32 %v5649_v32, %v5025_v16  ;;  %v5051_v52 = vld [vmem:[%s7888_s5 + $0x100] sm:$0x33]  ;;  %v5139_v32 = vld [vmem:[%s7888_s5 + $0x148] sm:$0xf] }
 0x5b0   :  { %v5791_v23 = vunpack.i.h.bf16 %v5789_v18  ;;  %v5790_v42 = vunpack.i.l.bf16 %v5789_v18  ;;  %2556 = vmatpush.bf16.msrb.mxu0 %v2534_v37  ;;  %2661 = vmatpush.bf16.msra.mxu2 %v5634_v29  ;;  %v5027_v37 = vld [vmem:[%s7888_s5 + $0x38] sm:$0xf0]  ;;  %v4983_v18 = vld [vmem:[%s7888_s5 + $0x88] sm:$0xf]  ;;  %v5009_v29 = vld [vmem:[%s7888_s5 + $0x10] sm:$0xf]  ;;  %v2946_v48 = vunpack.c.l.b16 %v5051_v52  ;;  %v2947_v7 = vunpack.c.h.b16 %v5051_v52 }
 0x5b1   :  { %2542 = vmatpush.bf16.msrb.mxu1 %v2531_v41  ;;  %2786 = vmatpush.bf16.msra.mxu3 %v2779_v11  ;;  %v5659_v41 = vld [vmem:[%s7888_s5 + $0x8c] sm:$0xf0]  ;;  %v5030_v62 = vor.u32 %v5648_v33, %v5027_v37  ;;  %v3068_v11 = vpack.c.b16 %v3056_v1, %v3056_v1  ;;  %v5115_v1 = vld [vmem:[%s7888_s5 + $0x118] sm:$0xf]  ;;  %v5674_v52 = vld [vmem:[%s7888_s5 + $0x11c] sm:$0xf] }
 0x5b2   :  { %v2511_v24 = vmax.f32 %v2467_v35, %v5791_v23  ;;  %v2497_v44 = vsel %vm794_vm6, %v5790_v42, %v5791_v23  ;;  %v5650_v35 = vld [vmem:[%s7888_s5 + $0x44] sm:$0xf]  ;;  %v4984_v23 = vor.u32 %v5659_v41, %v4983_v18  ;;  %v5658_v42 = vld [vmem:[%s7888_s5 + $0x8c] sm:$0xf]  ;;  %v5681_v33 = vld [vmem:[%s7888_s5 + $0x14c] sm:$0xf0] }
 0x5b3   :  { %v2510_v49 = vmax.f32 %v2466_v17, %v2497_v44  ;;  %v2764_v17 = vpack.c.b16 %v2752_v31, %v2752_v31  ;;  %v5038_v28 = vor.u32 %v5650_v35, %v5035_v2  ;;  %v5017_v44 = vld [vmem:[%s7888_s5 + $0x20] sm:$0xf]  ;;  %v4969_v31 = vld [vmem:[%s7888_s5 + $0x70] sm:$0xf0]  ;;  %v5643_v35 = vld [vmem:[%s7888_s5 + $0x4] sm:$0xf0]  ;;  %v5140_v37 = vor.u32 %v5681_v33, %v5139_v32 }
 0x5b4   :  { %v2517_v43 = vpack.c.bf16 %v2511_v24, %v2509_v63  ;;  %2662 = vmatpush.bf16.msra.mxu2 %v5633_v39  ;;  %v4985_v63 = vld [vmem:[%s7888_s5 + $0x90] sm:$0xf0]  ;;  %v5645_v39 = vld [vmem:[%s7888_s5 + $0x14] sm:$0xf0]  ;;  %v4972_v25 = vor.u32 %v5654_v13, %v4969_v31  ;;  %v5642_v2 = vld [vmem:[%s7888_s5 + $0x4] sm:$0xf] }
 0x5b5   :  { %v2516_v51 = vpack.c.bf16 %v2510_v49, %v2508_v26  ;;  %v2782_v12 = vsel %vm1089_vm10, %v2764_v17, 0  ;;  %2787 = vmatpush.bf16.msra.mxu3 %v4992_v30  ;;  %v4988_v24 = vor.u32 %v5658_v42, %v4985_v63  ;;  %v5018_v26 = vor.u32 %v5647_v46, %v5017_v44  ;;  %v5019_v49 = vld [vmem:[%s7888_s5 + $0x28] sm:$0xf0]  ;;  %v5001_v17 = vld [vmem:[%s7888_s5] sm:$0xf]  ;;  %s5833_s4 = smov [#allocation3]  }
 0x5b6   :  { %2557 = vmatpush.bf16.msrb.mxu0 %v2517_v43  ;;  %v4975_v43 = vld [vmem:[%s7888_s5 + $0x78] sm:$0xf]  ;;  %v5002_v9 = vor.u32 %v5643_v35, %v5001_v17  ;;  %v5652_v30 = vld [vmem:[%s7888_s5 + $0x5c] sm:$0xf]  ;;  %v5141_v18 = vld [vmem:[%s7888_s5 + $0x150] sm:$0xf0] }
 0x5b7   :  { %2543 = vmatpush.bf16.msrb.mxu1 %v2516_v51  ;;  %v5657_v51 = vld [vmem:[%s7888_s5 + $0x7c] sm:$0xf0]  ;;  %v5086_v41 = vld [vmem:[%s7888_s5 + $0xf0] sm:$0xf]  ;;  %v5670_v63 = vld [vmem:[%s7888_s5 + $0xf4] sm:$0xf] }
 0x5b8   :  { %2663 = vmatpush.bf16.msra.mxu2 %v5632_v22  ;;  %v4976_v20 = vor.u32 %v5657_v51, %v4975_v43  ;;  %v5011_v22 = vld [vmem:[%s7888_s5 + $0x18] sm:$0xf0]  ;;  %v5131_v46 = vld [vmem:[%s7888_s5 + $0x138] sm:$0xf]  ;;  %v5133_v43 = vld [vmem:[%s7888_s5 + $0x140] sm:$0xf0] }
 0x5b9   :  { %4904 = vmatmul.msk.bf16.vlgmr.msrb.gmra.mxu0 %vm826_vm7, %v4902_v4  ;;  %2788 = vmatpush.bf16.msra.mxu3 %v4984_v23  ;;  %v5078_v51 = vld [vmem:[%s7888_s5 + $0xe0] sm:$0xf]  ;;  %v5666_v13 = vld [vmem:[%s7888_s5 + $0xd4] sm:$0xf]  ;;  %v5117_v35 = vld [vmem:[%s7888_s5 + $0x120] sm:$0xf0] }
 0x5ba   :  { %4903 = vmatmul.msk.bf16.vlgmr.msrb.gmra.mxu1 %vm826_vm7, %v4902_v4  ;;  %2800 = vmatpush.bf16.msra.mxu0 %v2782_v12  ;;  %v5022_v4 = vor.u32 %v5646_v45, %v5019_v49  ;;  %v3069_v12 = vpack.c.b16 %v3057_v50, %v3057_v50  ;;  %v5679_v45 = vld [vmem:[%s7888_s5 + $0x13c] sm:$0xf0]  ;;  %s3924_s1 = sshll.u32 %s5833_s4, 4  ;;  %s3925_s1 = int_to_ptr.vmem [resolvable:$true] %s3924_s1 }
 0x5bb   :  { %2675 = vmatpush.bf16.msra.mxu1 %v2654_v38  ;;  %v4980_v38 = vor.u32 %v5656_v55, %v4977_v56  ;;  %v5132_v49 = vor.u32 %v5679_v45, %v5131_v46  ;;  %v5668_v56 = vld [vmem:[%s7888_s5 + $0xe4] sm:$0xf]  ;;  %v5675_v50 = vld [vmem:[%s7888_s5 + $0x11c] sm:$0xf0] }
 0x5bc   :  { %2891 = vmatpush.bf16.msrb.mxu2 %v2873_v10  ;;  %v5653_v10 = vld [vmem:[%s7888_s5 + $0x5c] sm:$0xf0]  ;;  %v5116_v17 = vor.u32 %v5675_v50, %v5115_v1  ;;  %v5687_v1 = vld [vmem:[%s7888_s5 + $0x184] sm:$0xf0]  ;;  %v5686_v50 = vld [vmem:[%s7888_s5 + $0x184] sm:$0xf] }
 0x5bd   :  { %2789 = vmatpush.bf16.msra.mxu3 %v4976_v20 }
 0x5be   :  { %2801 = vmatpush.bf16.msra.mxu0 %v4996_v15  ;;  %v4961_v15 = vld [vmem:[%s7888_s5 + $0x60] sm:$0xf0] }
 0x5bf   :  { %2676 = vmatpush.bf16.msra.mxu1 %v5641_v47  ;;  %v5644_v47 = vld [vmem:[%s7888_s5 + $0x14] sm:$0xf] }
 0x5c0   :  { %2892 = vmatpush.bf16.msrb.mxu2 %v5038_v28  ;;  %v5014_v59 = vor.u32 %v5644_v47, %v5011_v22  ;;  %v5677_v47 = vld [vmem:[%s7888_s5 + $0x12c] sm:$0xf0]  ;;  %v5125_v22 = vld [vmem:[%s7888_s5 + $0x130] sm:$0xf0] }
 0x5c1   :  { %2790 = vmatpush.bf16.msra.mxu3 %v4968_v60  ;;  %v5667_v60 = vld [vmem:[%s7888_s5 + $0xd4] sm:$0xf0] }
 0x5c2   :  { %2802 = vmatpush.bf16.msra.mxu0 %v4988_v24  ;;  %v5088_v24 = vld [vmem:[%s7888_s5 + $0xf8] sm:$0xf0] }
 0x5c3   :  { %2677 = vmatpush.bf16.msra.mxu1 %v5640_v61  ;;  %v5010_v61 = vor.u32 %v5645_v39, %v5009_v29  ;;  %v5091_v44 = vor.u32 %v5670_v63, %v5088_v24  ;;  %v5123_v29 = vld [vmem:[%s7888_s5 + $0x128] sm:$0xf] }
 0x5c4   :  { %2893 = vmatpush.bf16.msrb.mxu2 %v5030_v62  ;;  %v5671_v62 = vld [vmem:[%s7888_s5 + $0xf4] sm:$0xf0]  ;;  %v5124_v57 = vor.u32 %v5677_v47, %v5123_v29  ;;  %v5690_v29 = vld [vmem:[%s7888_s5 + $0x1a4] sm:$0xf] }
 0x5c5   :  { %v5087_v42 = vor.u32 %v5671_v62, %v5086_v41  ;;  %v5157_v62 = vld [vmem:[%s7888_s5 + $0x1b0] sm:$0x33] }
 0x5c6   :  { %2803 = vmatpush.bf16.msra.mxu0 %v4980_v38  ;;  %v5080_v38 = vld [vmem:[%s7888_s5 + $0xe8] sm:$0xf0]  ;;  %v3165_v63 = vunpack.c.h.b16 %v5157_v62 }
 0x5c7   :  { %2877 = vmatpush.bf16.msrb.mxu1 %v2870_v8  ;;  %v4959_v8 = vld [vmem:[%s7888_s5 + $0x58] sm:$0xf]  ;;  %v5083_v39 = vor.u32 %v5668_v56, %v5080_v38  ;;  %v5691_v38 = vld [vmem:[%s7888_s5 + $0x1a4] sm:$0xf0] }
 0x5c8   :  { %2894 = vmatpush.bf16.msrb.mxu2 %v5022_v4  ;;  %v4960_v28 = vor.u32 %v5653_v10, %v4959_v8  ;;  %v5669_v4 = vld [vmem:[%s7888_s5 + $0xe4] sm:$0xf0]  ;;  %v5064_v8 = vld [vmem:[%s7888_s5 + $0xc8] sm:$0xf0] }
 0x5c9   :  { %v5079_v55 = vor.u32 %v5669_v4, %v5078_v51  ;;  %v5107_v10 = vld [vmem:[%s7888_s5 + $0x108] sm:$0xf] }
 0x5ca   :  { %2804 = vmatpush.bf16.msra.mxu0 %v4972_v25  ;;  %2791 = vmatpush.bf16.msra.mxu3 %v4960_v28  ;;  %v5075_v25 = vor.u32 %v5666_v13, %v5072_v54  ;;  %v5109_v28 = vld [vmem:[%s7888_s5 + $0x110] sm:$0xf0] }
 0x5cb   :  { %2878 = vmatpush.bf16.msrb.mxu1 %v5034_v14  ;;  %v5006_v14 = vor.u32 %v5642_v2, %v5003_v6  ;;  %v5062_v2 = vld [vmem:[%s7888_s5 + $0xc0] sm:$0xf]  ;;  %v5664_v6 = vld [vmem:[%s7888_s5 + $0xc4] sm:$0xf] }
 0x5cc   :  { %2895 = vmatpush.bf16.msrb.mxu2 %v5014_v59  ;;  %v5070_v59 = vld [vmem:[%s7888_s5 + $0xd0] sm:$0xf] }
 0x5cd   :  { %v5071_v31 = vor.u32 %v5667_v60, %v5070_v59  ;;  %v5186_v59 = vld [vmem:[%s7888_s5 + $0x198] sm:$0xf0] }
 0x5cf   :  { %2879 = vmatpush.bf16.msrb.mxu1 %v5026_v34  ;;  %v5680_v34 = vld [vmem:[%s7888_s5 + $0x14c] sm:$0xf] }
 0x5d0   :  { %2896 = vmatpush.bf16.msrb.mxu2 %v5006_v14  ;;  %v5144_v23 = vor.u32 %v5680_v34, %v5141_v18  ;;  %v5672_v14 = vld [vmem:[%s7888_s5 + $0x10c] sm:$0xf] }
 0x5d3   :  { %2880 = vmatpush.bf16.msrb.mxu1 %v5018_v26  ;;  %v5678_v26 = vld [vmem:[%s7888_s5 + $0x13c] sm:$0xf] }
 0x5d4   :  { %v5136_v20 = vor.u32 %v5678_v26, %v5133_v43  ;;  %v3177_v26 = vpack.c.b16 %v3165_v63, %v3165_v63 }
 0x5d7   :  { %2881 = vmatpush.bf16.msrb.mxu1 %v5010_v61  ;;  %v5676_v61 = vld [vmem:[%s7888_s5 + $0x12c] sm:$0xf] }
 0x5d8   :  { %v5128_v53 = vor.u32 %v5676_v61, %v5125_v22  ;;  %v5184_v22 = vld [vmem:[%s7888_s5 + $0x190] sm:$0xf] }
 0x5db   :  { %2882 = vmatpush.bf16.msrb.mxu1 %v5002_v9 }
 0x636   :  { %v2559_v19 = vpop.f32.mrf.mxu0 }
 0x637   :  { %v2545_v36 = vpop.f32.mrf.mxu1 }
 0x63e   :  { %v2561_v21 = vpop.f32.mrf.mxu0 }
 0x63f   :  { %v2547_v40 = vpop.f32.mrf.mxu1  ;;  %v2565_v3 = vpack.c.bf16 %v2561_v21, %v2559_v19  ;;  %v2958_v19 = vpack.c.b16 %v2946_v48, %v2946_v48  ;;  %v4964_v21 = vor.u32 %v5652_v30, %v4961_v15  ;;  %v5665_v48 = vld [vmem:[%s7888_s5 + $0xc4] sm:$0xf0]  ;;  %v5054_v15 = vld [vmem:[%s7888_s5 + $0xb0] sm:$0xf] }
 0x640   :  { %v2564_v27 = vpack.c.bf16 %v2547_v40, %v2545_v36  ;;  %v2959_v36 = vpack.c.b16 %v2947_v7, %v2947_v7  ;;  %v3084_v40 = vsel %vm1089_vm10, %v3068_v11, 0  ;;  %v5120_v7 = vor.u32 %v5674_v52, %v5117_v35  ;;  %v5178_v52 = vld [vmem:[%s7888_s5 + $0x188] sm:$0xf0] }
 0x641   :  { %4945 = vmatmul.msk.bf16.vlgmr.msra.gmra.mxu1 %vm954_vm11, %v2565_v3  ;;  %v3087_v3 = vsel %vm1089_vm10, %v3069_v12, 0  ;;  %2805 = vmatpush.bf16.msra.mxu0 %v4964_v21  ;;  %v5063_v9 = vor.u32 %v5665_v48, %v5062_v2  ;;  %v5067_v11 = vor.u32 %v5664_v6, %v5064_v8  ;;  %v5673_v12 = vld [vmem:[%s7888_s5 + $0x10c] sm:$0xf0]  ;;  %v5112_v21 = vor.u32 %v5672_v14, %v5109_v28  ;;  %v5170_v6 = vld [vmem:[%s7888_s5 + $0x178] sm:$0xf0] }
 0x642   :  { %2664 = vmatmul.bf16.vlgmr.msra.gmra.mxu2 %v2564_v27  ;;  %v2974_v27 = vsel %vm1089_vm10, %v2958_v19, 0  ;;  %v2977_v16 = vsel %vm1089_vm10, %v2959_v36, 0  ;;  %3091 = vmatpush.bf16.msra.mxu1 %v3084_v40  ;;  %v5108_v30 = vor.u32 %v5673_v12, %v5107_v10  ;;  %v5663_v19 = vld [vmem:[%s7888_s5 + $0xb4] sm:$0xf0]  ;;  %v5662_v36 = vld [vmem:[%s7888_s5 + $0xb4] sm:$0xf]  ;;  %v5181_v2 = vor.u32 %v5686_v50, %v5178_v52 }
 0x643   :  { %3105 = vmatpush.bf16.msra.mxu2 %v3087_v3  ;;  %2981 = vmatpush.bf16.msrb.mxu3 %v2974_v27  ;;  %v5055_v40 = vor.u32 %v5663_v19, %v5054_v15  ;;  %v5056_v3 = vld [vmem:[%s7888_s5 + $0xb8] sm:$0xf0]  ;;  %v5168_v48 = vld [vmem:[%s7888_s5 + $0x170] sm:$0xf]  ;;  %v5683_v12 = vld [vmem:[%s7888_s5 + $0x164] sm:$0xf0] }
 0x644   :  { %v5059_v27 = vor.u32 %v5662_v36, %v5056_v3  ;;  %v5682_v28 = vld [vmem:[%s7888_s5 + $0x164] sm:$0xf] }
 0x645   :  { %2995 = vmatpush.bf16.msrb.mxu0 %v2977_v16 }
 0x646   :  { %3092 = vmatpush.bf16.msra.mxu1 %v5140_v37 }
 0x647   :  { %3106 = vmatpush.bf16.msra.mxu2 %v5144_v23  ;;  %2982 = vmatpush.bf16.msrb.mxu3 %v5087_v42  ;;  %v3164_v42 = vunpack.c.l.b16 %v5157_v62 }
 0x649   :  { %2996 = vmatpush.bf16.msrb.mxu0 %v5091_v44  ;;  %v3176_v45 = vpack.c.b16 %v3164_v42, %v3164_v42 }
 0x64a   :  { %3093 = vmatpush.bf16.msra.mxu1 %v5132_v49 }
 0x64b   :  { %3107 = vmatpush.bf16.msra.mxu2 %v5136_v20  ;;  %2983 = vmatpush.bf16.msrb.mxu3 %v5079_v55  ;;  %v3192_v4 = vsel %vm1089_vm10, %v3176_v45, 0  ;;  %v3195_v20 = vsel %vm1089_vm10, %v3177_v26, 0  ;;  %v5192_v55 = vld [vmem:[%s7888_s5 + $0x1a0] sm:$0xf] }
 0x64c   :  { %v5193_v47 = vor.u32 %v5691_v38, %v5192_v55 }
 0x64d   :  { %2997 = vmatpush.bf16.msrb.mxu0 %v5083_v39  ;;  %v5194_v39 = vld [vmem:[%s7888_s5 + $0x1a8] sm:$0xf0] }
 0x64e   :  { %3094 = vmatpush.bf16.msra.mxu1 %v5124_v57  ;;  %v5197_v61 = vor.u32 %v5690_v29, %v5194_v39  ;;  %v5689_v57 = vld [vmem:[%s7888_s5 + $0x194] sm:$0xf0] }
 0x64f   :  { %3108 = vmatpush.bf16.msra.mxu2 %v5128_v53  ;;  %2984 = vmatpush.bf16.msrb.mxu3 %v5071_v31  ;;  %v5688_v53 = vld [vmem:[%s7888_s5 + $0x194] sm:$0xf]  ;;  %v5185_v31 = vor.u32 %v5689_v57, %v5184_v22 }
 0x650   :  { %v5189_v54 = vor.u32 %v5688_v53, %v5186_v59 }
 0x651   :  { %2998 = vmatpush.bf16.msrb.mxu0 %v5075_v25  ;;  %v5176_v25 = vld [vmem:[%s7888_s5 + $0x180] sm:$0xf] }
 0x652   :  { %3095 = vmatpush.bf16.msra.mxu1 %v5116_v17  ;;  %v5177_v35 = vor.u32 %v5687_v1, %v5176_v25 }
 0x653   :  { %3109 = vmatpush.bf16.msra.mxu2 %v5120_v7  ;;  %2985 = vmatpush.bf16.msrb.mxu3 %v5063_v9  ;;  %v5685_v7 = vld [vmem:[%s7888_s5 + $0x174] sm:$0xf0]  ;;  %v5684_v9 = vld [vmem:[%s7888_s5 + $0x174] sm:$0xf] }
 0x654   :  { %v5169_v8 = vor.u32 %v5685_v7, %v5168_v48  ;;  %v5173_v10 = vor.u32 %v5684_v9, %v5170_v6 }
 0x655   :  { %2999 = vmatpush.bf16.msrb.mxu0 %v5067_v11  ;;  %v5160_v11 = vld [vmem:[%s7888_s5 + $0x160] sm:$0xf] }
 0x656   :  { %3096 = vmatpush.bf16.msra.mxu1 %v5108_v30  ;;  %v5162_v30 = vld [vmem:[%s7888_s5 + $0x168] sm:$0xf0]  ;;  %v5161_v15 = vor.u32 %v5683_v12, %v5160_v11 }
 0x657   :  { %3110 = vmatpush.bf16.msra.mxu2 %v5112_v21  ;;  %2986 = vmatpush.bf16.msrb.mxu3 %v5055_v40  ;;  %v5165_v19 = vor.u32 %v5682_v28, %v5162_v30 }
 0x659   :  { %3000 = vmatpush.bf16.msrb.mxu0 %v5059_v27 }
 0x6be   :  { %v2679_v16 = vpop.f32.mrf.mxu1 }
 0x6c5   :  { %v2665_v32 = vpop.f32.mrf.mxu2 }
 0x6c6   :  { %v2680_v33 = vadd.f32 %v2679_v16, %v2665_v32  ;;  %v2681_v34 = vpop.f32.mrf.mxu1 }
 0x6c8   :  { %v2684_v18 = vpack.c.bf16 %v2680_v33, %v2680_v33 }
 0x6ca   :  { %v2710_v24 = vunpack.c.l.b16 %v2684_v18 }
 0x6cd   :  { %v2667_v37 = vpop.f32.mrf.mxu2 }
 0x6ce   :  { %v2682_v41 = vadd.f32 %v2681_v34, %v2667_v37 }
 0x6d0   :  { %v2685_v23 = vpack.c.bf16 %v2682_v41, %v2682_v41 }
 0x6d2   :  { %v2711_v44 = vunpack.c.l.b16 %v2685_v23 }
 0x6d4   :  { %v7611_v46 = vpack.c.b16 %v2711_v44, %v2710_v24 }
 0x6d6   :  { %5039 = vmatmul.msk.bf16.vlgmr.msrb.gmra.mxu1 %vm1085_vm12, %v7611_v46  ;;  %5040 = vmatmul.msk.bf16.vlgmr.msrb.gmra.mxu2 %vm1085_vm12, %v7611_v46  ;;  %v2716_v49 = vshll.u32 %v7611_v46, 16  ;;  %v2714_v43 = vshrl.u32 %v7611_v46, 16  ;;  %v2914_v14 = vrot.slane %v7611_v46, 1  ;;  %v3132_v36 = vrot.slane %v7611_v46, 2 }
 0x6d8   :  { %v2718_v51 = vrot.slane %v2716_v49, 1  ;;  %v3022_v60 = vrot.slane %v2714_v43, 1  ;;  %v3023_v13 = vrot.slane %v2716_v49, 2 }
 0x6da   :  { %v2719_v56 = vor.u32 %v2718_v51, %v2714_v43  ;;  %v3024_v17 = vor.u32 %v3023_v13, %v3022_v60  ;;  %v3229_v43 = vld [vmem:[%s7889_s6] sm:$0x3] }
 0x6db   :  { %v3231_v57 = vperm.slane %v3229_v43, 0 }
 0x6dc   :  { %4997 = vmatmul.msk.bf16.vlgmr.msra.gmra.mxu3 %vm1085_vm12, %v2719_v56  ;;  %4998 = vmatmul.msk.bf16.vlgmr.msra.gmra.mxu0 %vm1085_vm12, %v2719_v56 }
 0x6dd   :  { %3199 = vmatpush.bf16.msra.mxu3 %v3192_v4  ;;  %3213 = vmatpush.bf16.msra.mxu0 %v3195_v20  ;;  %v3232_v20 = vperm.slane %v3229_v43, 1  ;;  %v3285_v43 = vld [vmem:[%s7890_s7] sm:$0x7] }
 0x6e1   :  { %3200 = vmatpush.bf16.msra.mxu3 %v5193_v47  ;;  %3214 = vmatpush.bf16.msra.mxu0 %v5197_v61 }
 0x6e5   :  { %3201 = vmatpush.bf16.msra.mxu3 %v5185_v31  ;;  %3215 = vmatpush.bf16.msra.mxu0 %v5189_v54 }
 0x6e6   :  { %5145 = vmatmul.msk.bf16.vlgmr.msra.gmra.mxu1 %vm1085_vm12, %v3024_v17  ;;  %5146 = vmatmul.msk.bf16.vlgmr.msra.gmra.mxu2 %vm1085_vm12, %v3024_v17 }
 0x6e9   :  { %3202 = vmatpush.bf16.msra.mxu3 %v5177_v35  ;;  %3216 = vmatpush.bf16.msra.mxu0 %v5181_v2 }
 0x6ec   :  { %5092 = vmatmul.msk.bf16.vlgmr.msrb.gmra.mxu3 %vm1085_vm12, %v2914_v14  ;;  %5093 = vmatmul.msk.bf16.vlgmr.msrb.gmra.mxu0 %vm1085_vm12, %v2914_v14 }
 0x6ed   :  { %3203 = vmatpush.bf16.msra.mxu3 %v5169_v8  ;;  %3217 = vmatpush.bf16.msra.mxu0 %v5173_v10 }
 0x6f1   :  { %3204 = vmatpush.bf16.msra.mxu3 %v5161_v15  ;;  %3218 = vmatpush.bf16.msra.mxu0 %v5165_v19  ;;  %v5699_v19 = vld [vmem:[%s7891_s8 + $0x38] sm:$0xff] }
 0x6f5   :  { %3408 = vmatpush.bf16.msrb.mxu3 %v5699_v19 }
 0x6fc   :  { %5198 = vmatmul.msk.bf16.vlgmr.msra.gmra.mxu3 %vm1085_vm12, %v3132_v36  ;;  %5199 = vmatmul.msk.bf16.vlgmr.msra.gmra.mxu0 %vm1085_vm12, %v3132_v36  ;;  %v5698_v36 = vld [vmem:[%s7891_s8 + $0x30] sm:$0xff] }
 0x6fd   :  { %3409 = vmatpush.bf16.msrb.mxu3 %v5698_v36 }
 0x753   :  { %v2884_v16 = vpop.f32.mrf.mxu1 }
 0x759   :  { %v2807_v21 = vpop.f32.mrf.mxu0  ;;  %v2898_v3 = vpop.f32.mrf.mxu2 }
 0x75a   :  { %v2899_v42 = vadd.f32 %v2898_v3, %v2807_v21  ;;  %v5697_v21 = vld [vmem:[%s7891_s8 + $0x28] sm:$0xff] }
 0x75b   :  { %v2886_v18 = vpop.f32.mrf.mxu1  ;;  %3410 = vmatpush.bf16.msrb.mxu3 %v5697_v21  ;;  %v3439_v21 = vld [vmem:[#allocation2] sm:$0x7] }
 0x75f   :  { %v2793_v40 = vpop.f32.mrf.mxu3 }
 0x760   :  { %v2885_v24 = vadd.f32 %v2884_v16, %v2793_v40  ;;  %v5696_v40 = vld [vmem:[%s7891_s8 + $0x20] sm:$0xff] }
 0x761   :  { %v2809_v27 = vpop.f32.mrf.mxu0  ;;  %v2900_v34 = vpop.f32.mrf.mxu2  ;;  %3411 = vmatpush.bf16.msrb.mxu3 %v5696_v40 }
 0x762   :  { %v2901_v44 = vadd.f32 %v2900_v34, %v2809_v27  ;;  %v5695_v27 = vld [vmem:[%s7891_s8 + $0x18] sm:$0xff] }
 0x763   :  { %v3098_v45 = vpop.f32.mrf.mxu1 }
 0x765   :  { %3412 = vmatpush.bf16.msrb.mxu3 %v5695_v27 }
 0x767   :  { %v2795_v32 = vpop.f32.mrf.mxu3 }
 0x768   :  { %v2887_v56 = vadd.f32 %v2886_v18, %v2795_v32 }
 0x769   :  { %v3002_v33 = vpop.f32.mrf.mxu0  ;;  %v3112_v62 = vpop.f32.mrf.mxu2 }
 0x76a   :  { %v3008_v46 = vadd.f32 %v3002_v33, %v2899_v42  ;;  %v5694_v33 = vld [vmem:[%s7891_s8 + $0x10] sm:$0xff] }
 0x76b   :  { %v3100_v13 = vpop.f32.mrf.mxu1  ;;  %3413 = vmatpush.bf16.msrb.mxu3 %v5694_v33 }
 0x76c   :  { %v3118_v51 = vadd.f32 %v3112_v62, %v3008_v46 }
 0x76f   :  { %v2988_v37 = vpop.f32.mrf.mxu3 }
 0x770   :  { %v3007_v26 = vadd.f32 %v2988_v37, %v2885_v24 }
 0x771   :  { %v3004_v41 = vpop.f32.mrf.mxu0  ;;  %v3114_v4 = vpop.f32.mrf.mxu2 }
 0x772   :  { %v3010_v49 = vadd.f32 %v3004_v41, %v2901_v44  ;;  %v3117_v39 = vadd.f32 %v3098_v45, %v3007_v26 }
 0x774   :  { %v3120_v38 = vadd.f32 %v3114_v4, %v3010_v49  ;;  %v5692_v4 = vld [vmem:[%s7891_s8] sm:$0xff] }
 0x777   :  { %v2990_v23 = vpop.f32.mrf.mxu3 }
 0x778   :  { %v3009_v61 = vadd.f32 %v2990_v23, %v2887_v56 }
 0x779   :  { %v3220_v63 = vpop.f32.mrf.mxu0 }
 0x77a   :  { %v3226_v29 = vadd.f32 %v3220_v63, %v3118_v51  ;;  %v3119_v25 = vadd.f32 %v3100_v13, %v3009_v61  ;;  %v5693_v63 = vld [vmem:[%s7891_s8 + $0x8] sm:$0xff]  ;;  %v5706_v61 = vld [vmem:[%s7892_s9 + $0x20] sm:$0xff]  ;;  %v5725_v13 = vld [vmem:[%s7892_s9 + $0xb8] sm:$0xff] }
 0x77b   :  { %3414 = vmatpush.bf16.msrb.mxu3 %v5693_v63  ;;  %v5701_v51 = vld [vmem:[%s7891_s8 + $0x48] sm:$0xff] }
 0x77c   :  { %v3236_v59 = vadd.f32 %v3232_v20, %v3226_v29 }
 0x77e   :  { %v3240_v50 = vmax.f32 %v3236_v59, 0.0  ;;  %v5705_v59 = vld [vmem:[%s7892_s9 + $0x18] sm:$0xff] }
 0x77f   :  { %v3206_v55 = vpop.f32.mrf.mxu3  ;;  %3415 = vmatpush.bf16.msrb.mxu3 %v5692_v4 }
 0x780   :  { %v3225_v22 = vadd.f32 %v3206_v55, %v3117_v39  ;;  %v3250_v48 = vrot.slane %v3240_v50, 1 }
 0x781   :  { %v3222_v47 = vpop.f32.mrf.mxu0 }
 0x782   :  { %v3228_v53 = vadd.f32 %v3222_v47, %v3120_v38  ;;  %v3235_v31 = vadd.f32 %v3231_v57, %v3225_v22  ;;  %v5716_v22 = vld [vmem:[%s7892_s9 + $0x70] sm:$0xff] }
 0x784   :  { %v3238_v60 = vadd.f32 %v3232_v20, %v3228_v53  ;;  %v3239_v17 = vmax.f32 %v3235_v31, 0.0  ;;  %v5700_v20 = vld [vmem:[%s7891_s8 + $0x40] sm:$0xff]  ;;  %v5709_v31 = vld [vmem:[%s7892_s9 + $0x38] sm:$0xff] }
 0x785   :  { %v5710_v53 = vld [vmem:[%s7892_s9 + $0x40] sm:$0xff] }
 0x786   :  { %v3242_v54 = vmax.f32 %v3238_v60, 0.0  ;;  %v3247_v9 = vrot.slane %v3239_v17, 1  ;;  %v5715_v60 = vld [vmem:[%s7892_s9 + $0x68] sm:$0xff] }
 0x787   :  { %v3208_v1 = vpop.f32.mrf.mxu3 }
 0x788   :  { %v3227_v52 = vadd.f32 %v3208_v1, %v3119_v25  ;;  %v3251_v35 = vrot.slane %v3242_v54, 1  ;;  %v5714_v25 = vld [vmem:[%s7892_s9 + $0x60] sm:$0xff]  ;;  %v5724_v1 = vld [vmem:[%s7892_s9 + $0xb0] sm:$0xff] }
 0x78a   :  { %v3237_v2 = vadd.f32 %v3231_v57, %v3227_v52  ;;  %v3252_v8 = vsel %vm331_vm4, %v3250_v48, %v3251_v35  ;;  %v3260_v10 = vmax.f32 %v3242_v54, %v3251_v35  ;;  %v5726_v57 = vld [vmem:[%s7892_s9 + $0xc0] sm:$0xff]  ;;  %v5704_v54 = vld [vmem:[%s7892_s9 + $0x10] sm:$0xff]  ;;  %v5703_v52 = vld [vmem:[%s7892_s9 + $0x8] sm:$0xff] }
 0x78b   :  { %v3258_v28 = vmax.f32 %v3240_v50, %v3252_v8  ;;  %3751 = vmatpush.bf16.msra.mxu3 %v5726_v57  ;;  %v5708_v50 = vld [vmem:[%s7892_s9 + $0x30] sm:$0xff]  ;;  %v5723_v35 = vld [vmem:[%s7892_s9 + $0xa8] sm:$0xff]  ;;  %v5702_v48 = vld [vmem:[%s7892_s9] sm:$0xff] }
 0x78c   :  { %v3241_v7 = vmax.f32 %v3237_v2, 0.0  ;;  %v5707_v2 = vld [vmem:[%s7892_s9 + $0x28] sm:$0xff]  ;;  %v5720_v8 = vld [vmem:[%s7892_s9 + $0x90] sm:$0xff]  ;;  %v5727_v57 = vld [vmem:[%s7894_s11] sm:$0xff] }
 0x78e   :  { %v3248_v6 = vrot.slane %v3241_v7, 1 }
 0x78f   :  { %3752 = vmatpush.bf16.msra.mxu3 %v5725_v13 }
 0x790   :  { %v3259_v11 = vmax.f32 %v3241_v7, %v3248_v6  ;;  %v3249_v12 = vsel %vm331_vm4, %v3247_v9, %v3248_v6  ;;  %v5712_v7 = vld [vmem:[%s7892_s9 + $0x50] sm:$0xff]  ;;  %v5721_v9 = vld [vmem:[%s7892_s9 + $0x98] sm:$0xff]  ;;  %v5722_v6 = vld [vmem:[%s7892_s9 + $0xa0] sm:$0xff]  ;;  %vm3494_vm4 = vcmask 654336  }
 0x791   :  { %v3257_v14 = vmax.f32 %v3239_v17, %v3249_v12  ;;  %v5713_v17 = vld [vmem:[%s7892_s9 + $0x58] sm:$0xff] }
 0x792   :  { %v5797_v30 = vpack.i.bf16 %v3260_v10, %v3259_v11 }
 0x793   :  { %v5792_v15 = vpack.i.bf16 %v3258_v28, %v3257_v14  ;;  %3753 = vmatpush.bf16.msra.mxu3 %v5724_v1 }
 0x794   :  { %5798 = vrot.lane.b32.xlu2 %v5797_v30, %s5831_s28  ;;  %v5717_v30 = vld [vmem:[%s7892_s9 + $0x78] sm:$0xff] }
 0x795   :  { %5793 = vrot.lane.b32.xlu1 %v5792_v15, %s5831_s28  ;;  %v3436_v15 = vld [vmem:[#allocation2 + $0x4] sm:$0x7] }
 0x797   :  { %3754 = vmatpush.bf16.msra.mxu3 %v5723_v35  ;;  %v5802_v35 = vld [vmem:[%s7893_s10] ss:$0 sm:$0xff] }
 0x79b   :  { %3755 = vmatpush.bf16.msra.mxu3 %v5722_v6 }
 0x7ee   :  { %v5799_v3 = vpop.permute.xlu2 %5798 }
 0x7ef   :  { %v5801_v16 = vunpack.i.h.bf16 %v5799_v3  ;;  %v5800_v32 = vunpack.i.l.bf16 %v5799_v3  ;;  %v3454_v3 = vunpack.c.l.b16 %v3439_v21  ;;  %v5803_v21 = vld [vmem:[%s7895_s12] ss:$0 sm:$0xff] }
 0x7f1   :  { %v3274_v37 = vsel %vm794_vm6, %v5800_v32, %v5801_v16  ;;  %v3282_v62 = vmax.f32 %v3260_v10, %v5801_v16  ;;  %v5719_v10 = vld [vmem:[%s7892_s9 + $0x88] sm:$0xff]  ;;  %v5243_v16 = vunpack.i.l.s16 %v3454_v3 }
 0x7f2   :  { %v3281_v24 = vmax.f32 %v3259_v11, %v3274_v37  ;;  %v5718_v11 = vld [vmem:[%s7892_s9 + $0x80] sm:$0xff] }
 0x7f3   :  { %v3526_v37 = vrot.slane %v5243_v16, 1 }
 0x807   :  { %v5794_v34 = vpop.permute.xlu1 %5793 }
 0x808   :  { %v5796_v18 = vunpack.i.h.bf16 %v5794_v34  ;;  %v5795_v41 = vunpack.i.l.bf16 %v5794_v34 }
 0x80a   :  { %v3280_v23 = vmax.f32 %v3258_v28, %v5796_v18  ;;  %v3273_v42 = vsel %vm794_vm6, %v5795_v41, %v5796_v18  ;;  %v3587_v18 = vrot.slane %v5243_v16, 2  ;;  %v3711_v41 = vrot.slane %v5243_v16, 4 }
 0x80b   :  { %v3279_v44 = vmax.f32 %v3257_v14, %v3273_v42  ;;  %vm3917_vm6 = vcmask 74752  }
 0x80c   :  { %v3284_v46 = vpack.c.bf16 %v3282_v62, %v3280_v23 }
 0x80d   :  { %v3283_v45 = vpack.c.bf16 %v3281_v24, %v3279_v44 }
 0x80e   :  { %v3293_v26 = vand.u32 %v3284_v46, %v6814_v58 }
 0x80f   :  { %v3290_v49 = vand.u32 %v3283_v45, %v6814_v58  ;;  %v3406_v58 = vand.u32 %v5701_v51, %v6835_v0  ;;  %v5711_v0 = vld [vmem:[%s7892_s9 + $0x48] sm:$0xff]  ;;  %v3649_v51 = vrot.slane %v5243_v16, 3 }
 0x810   :  { %3315 = vmatpush.bf16.msrb.mxu2 %v3293_v26  ;;  %3565 = vmatpush.bf16.msrb.mxu0 %v5711_v0  ;;  %v5730_v0 = vld [vmem:[%s7894_s11 + $0x18] sm:$0xff] }
 0x811   :  { %3302 = vmatpush.bf16.msrb.mxu1 %v3290_v49 }
 0x813   :  { %5201 = vmatmul.msk.bf16.vlgmr.msrb.gmra.mxu2 %vm1601_vm14, %v3285_v43 }
 0x814   :  { %5200 = vmatmul.msk.bf16.vlgmr.msrb.gmra.mxu1 %vm1601_vm14, %v3285_v43  ;;  %3501 = vmatpush.bf16.msra.mxu2 %v5706_v61  ;;  %v5729_v61 = vld [vmem:[%s7894_s11 + $0x10] sm:$0xff] }
 0x815   :  { %3427 = vmatpush.bf16.msra.mxu1 %v3406_v58  ;;  %3566 = vmatpush.bf16.msrb.mxu0 %v5710_v53 }
 0x818   :  { %3502 = vmatpush.bf16.msra.mxu2 %v5705_v59  ;;  %v3860_v59 = vld [vmem:[%s7896_s13 + $0x28] sm:$0x3] }
 0x819   :  { %3428 = vmatpush.bf16.msra.mxu1 %v5700_v20  ;;  %3567 = vmatpush.bf16.msrb.mxu0 %v5709_v31  ;;  %v3778_v20 = vld [vmem:[%s7894_s11 + $0x38] sm:$0xf]  ;;  %v3886_v13 = vunpack.c.l.b16 %v3860_v59 }
 0x81b   :  { %v3892_v31 = vpack.c.b16 %v3886_v13, %v3886_v13 }
 0x81c   :  { %3503 = vmatpush.bf16.msra.mxu2 %v5704_v54 }
 0x81d   :  { %3627 = vmatpush.bf16.msrb.mxu1 %v5716_v22  ;;  %3568 = vmatpush.bf16.msrb.mxu0 %v5708_v50  ;;  %v5728_v22 = vld [vmem:[%s7894_s11 + $0x8] sm:$0xff]  ;;  %v3902_v54 = vsel %vm1089_vm10, %v3892_v31, 0 }
 0x820   :  { %3504 = vmatpush.bf16.msra.mxu2 %v5703_v52 }
 0x821   :  { %3628 = vmatpush.bf16.msrb.mxu1 %v5715_v60  ;;  %3569 = vmatpush.bf16.msrb.mxu0 %v5707_v2  ;;  %v5737_v2 = vld [vmem:[%s7896_s13 + $0x18] sm:$0xff] }
 0x824   :  { %3505 = vmatpush.bf16.msra.mxu2 %v5702_v48 }
 0x825   :  { %3629 = vmatpush.bf16.msrb.mxu1 %v5714_v25  ;;  %v5738_v25 = vld [vmem:[%s7896_s13 + $0x20] sm:$0xff] }
 0x828   :  { %3689 = vmatpush.bf16.msrb.mxu2 %v5721_v9 }
 0x829   :  { %3630 = vmatpush.bf16.msrb.mxu1 %v5713_v17 }
 0x82c   :  { %3690 = vmatpush.bf16.msrb.mxu2 %v5720_v8 }
 0x82d   :  { %3631 = vmatpush.bf16.msrb.mxu1 %v5712_v7  ;;  %v5736_v7 = vld [vmem:[%s7896_s13 + $0x10] sm:$0xff] }
 0x830   :  { %3691 = vmatpush.bf16.msrb.mxu2 %v5719_v10 }
 0x834   :  { %3692 = vmatpush.bf16.msrb.mxu2 %v5718_v11 }
 0x838   :  { %3693 = vmatpush.bf16.msrb.mxu2 %v5717_v30 }
 0x891   :  { %v3304_v55 = vpop.f32.mrf.mxu1 }
 0x892   :  { %v3321_v56 = vpack.c.bf16 %v3304_v55, %v3304_v55  ;;  %v3812_v55 = vunpack.c.l.b16 %v3778_v20 }
 0x894   :  { %3416 = vmatmul.bf16.vlgmr.msrb.gmra.mxu3 %v3321_v56  ;;  %v3820_v56 = vpack.c.b16 %v3812_v55, %v3812_v55 }
 0x896   :  { %v3317_v38 = vpop.f32.mrf.mxu2 }
 0x897   :  { %v3322_v29 = vpack.c.bf16 %v3317_v38, %v3317_v38  ;;  %v3833_v38 = vsel %vm959_vm9, %v3820_v56, 0 }
 0x898   :  { %3835 = vmatpush.bf16.msra.mxu0 %v3833_v38 }
 0x899   :  { %5242 = vmatmul.msk.bf16.vlgmr.msra.gmra.mxu1 %vm1720_vm15, %v3322_v29  ;;  %v3306_v39 = vpop.f32.mrf.mxu1  ;;  %v5733_v29 = vld [vmem:[%s7894_s11 + $0x30] sm:$0xff] }
 0x89a   :  { %v5732_v39 = vld [vmem:[%s7894_s11 + $0x28] sm:$0xff]  ;;  %3906 = vmatpush.bf16.msra.mxu1 %v3902_v54 }
 0x89c   :  { %3836 = vmatpush.bf16.msra.mxu0 %v5733_v29 }
 0x89e   :  { %v3319_v47 = vpop.f32.mrf.mxu2  ;;  %3907 = vmatpush.bf16.msra.mxu1 %v5738_v25 }
 0x89f   :  { %v5731_v47 = vld [vmem:[%s7894_s11 + $0x20] sm:$0xff] }
 0x8a0   :  { %3837 = vmatpush.bf16.msra.mxu0 %v5732_v39 }
 0x8a2   :  { %3908 = vmatpush.bf16.msra.mxu1 %v5737_v2 }
 0x8a4   :  { %3838 = vmatpush.bf16.msra.mxu0 %v5731_v47 }
 0x8a6   :  { %3909 = vmatpush.bf16.msra.mxu1 %v5736_v7 }
 0x8a8   :  { %3839 = vmatpush.bf16.msra.mxu0 %v5730_v0 }
 0x8ac   :  { %3840 = vmatpush.bf16.msra.mxu0 %v5729_v61 }
 0x8b0   :  { %3841 = vmatpush.bf16.msra.mxu0 %v5728_v22 }
 0x8b4   :  { %3842 = vmatpush.bf16.msra.mxu0 %v5727_v57 }
 0x916   :  { %v3430_v12 = vpop.f32.mrf.mxu1 }
 0x917   :  { %v3417_v14 = vpop.f32.mrf.mxu3 }
 0x918   :  { %v3431_v28 = vadd.f32 %v3430_v12, %v3417_v14 }
 0x91a   :  { %v3434_v19 = vpack.c.bf16 %v3431_v28, %v3431_v28 }
 0x91c   :  { %v3437_v36 = vsel %vm7267_vm3, %v3434_v19, %v3436_v15  ;;  %v5735_v19 = vld [vmem:[%s7896_s13 + $0x8] sm:$0xff] }
 0x91d   :  { %3438 = vst [vmem:[#allocation2 + $0x4] sm:$0x7] %v3437_v36  ;;  %3910 = vmatpush.bf16.msra.mxu1 %v5735_v19  ;;  %v5734_v36 = vld [vmem:[%s7896_s13] sm:$0xff] }
 0x91e   :  { %v3432_v40 = vpop.f32.mrf.mxu1 }
 0x91f   :  { %v3419_v27 = vpop.f32.mrf.mxu3 }
 0x921   :  { %3911 = vmatpush.bf16.msra.mxu1 %v5734_v36 }
 0x924   :  { %v3440_v32 = vld [vmem:[#allocation2 + $0x4] sm:$0x7] }
 0x925   :  { %v3455_v33 = vunpack.c.l.b16 %v3440_v32 }
 0x927   :  { %v5244_v34 = vunpack.i.l.s16 %v3455_v33  ;;  %v5804_v33 = vld [vmem:[%s7897_s14] ss:$0 sm:$0xff] }
 0x929   :  { %v3527_v62 = vsel %vm3461_vm1, %v5244_v34, %v3526_v37  ;;  %v3460_v23 = vrot.slane %v5244_v34, 7  ;;  %v3588_v5 = vrot.slane %v5244_v34, 1  ;;  %v3712_v42 = vrot.slane %v5244_v34, 3 }
 0x92a   :  { %v3528_v63 = vpack.c.b16 %v3527_v62, %v3527_v62  ;;  %v3650_v43 = vrot.slane %v5244_v34, 2 }
 0x92b   :  { %v3462_v24 = vsel %vm3461_vm1, %v3460_v23, %v5243_v16  ;;  %v3589_v44 = vsel %vm3461_vm1, %v3588_v5, %v3587_v18  ;;  %v3713_v46 = vsel %vm3461_vm1, %v3712_v42, %v3711_v41 }
 0x92c   :  { %5296 = vmatmul.msk.bf16.vlgmr.msrb.gmra.mxu0 %vm3494_vm4, %v3528_v63  ;;  %v3463_v45 = vpack.c.b16 %v3462_v24, %v3462_v24  ;;  %v3590_v26 = vpack.c.b16 %v3589_v44, %v3589_v44  ;;  %v3714_v49 = vpack.c.b16 %v3713_v46, %v3713_v46  ;;  %v3651_v4 = vsel %vm3461_vm1, %v3650_v43, %v3649_v51 }
 0x92d   :  { %v3652_v58 = vpack.c.b16 %v3651_v4, %v3651_v4 }
 0x92e   :  { %5265 = vmatmul.msk.bf16.vlgmr.msra.gmra.mxu2 %vm3494_vm4, %v3463_v45  ;;  %5327 = vmatmul.msk.bf16.vlgmr.msrb.gmra.mxu1 %vm3494_vm4, %v3590_v26 }
 0x92f   :  { %5389 = vmatmul.msk.bf16.vlgmr.msra.gmra.mxu3 %vm3494_vm4, %v3714_v49 }
 0x93e   :  { %5358 = vmatmul.msk.bf16.vlgmr.msrb.gmra.mxu2 %vm3494_vm4, %v3652_v58 }
 0x9a9   :  { %v3571_v53 = vpop.f32.mrf.mxu0 }
 0x9ab   :  { %v3633_v60 = vpop.f32.mrf.mxu1 }
 0x9b1   :  { %v3507_v1 = vpop.f32.mrf.mxu2  ;;  %v3573_v50 = vpop.f32.mrf.mxu0 }
 0x9b2   :  { %v3757_v52 = vpop.f32.mrf.mxu3  ;;  %v3514_v48 = vadd.f32 %v5802_v35, %v3507_v1 }
 0x9b3   :  { %v3635_v17 = vpop.f32.mrf.mxu1 }
 0x9b4   :  { %v3575_v8 = vadd.f32 %v3571_v53, %v3514_v48 }
 0x9b6   :  { %v3637_v10 = vadd.f32 %v3633_v60, %v3575_v8 }
 0x9b9   :  { %v3509_v9 = vpop.f32.mrf.mxu2 }
 0x9ba   :  { %v3759_v6 = vpop.f32.mrf.mxu3 }
 0x9c1   :  { %v3695_v11 = vpop.f32.mrf.mxu2 }
 0x9c2   :  { %v3699_v12 = vadd.f32 %v3695_v11, %v3637_v10 }
 0x9c4   :  { %v3761_v14 = vadd.f32 %v3757_v52, %v3699_v12 }
 0x9c6   :  { %v3762_v28 = vmax.f32 %v3761_v14, 0.0 }
 0x9c8   :  { %v3763_v30 = vpack.c.bf16 %v3762_v28, %v3762_v28 }
 0x9c9   :  { %v3697_v15 = vpop.f32.mrf.mxu2 }
 0x9ca   :  { %5418 = vmatmul.msk.bf16.vlgmr.msra.gmra.mxu0 %vm3828_vm5, %v3763_v30 }
 0xa47   :  { %v3844_v40 = vpop.f32.mrf.mxu0 }
 0xa48   :  { %v3845_v3 = vadd.f32 %v5803_v21, %v3844_v40 }
 0xa4a   :  { %v3848_v27 = vmax.f32 %v3845_v3, 0.0 }
 0xa4c   :  { %v3849_v16 = vpack.c.bf16 %v3848_v27, %v3848_v27 }
 0xa4e   :  { %5439 = vmatmul.msk.bf16.vlgmr.msra.gmra.mxu1 %vm1085_vm12, %v3849_v16 }
 0xa4f   :  { %v3846_v32 = vpop.f32.mrf.mxu0 }
 0xacb   :  { %v3913_v34 = vpop.f32.mrf.mxu1 }
 0xacc   :  { %v3914_v37 = vadd.f32 %v5804_v33, %v3913_v34 }
 0xace   :  { %3918 = vst.msk [vmem:[#allocation3] sm:$0x3] %vm3917_vm6, %v3914_v37 }
 0xacf   :  { %3929 = dma.vmem_to_hbm [thread:$0]  %s3925_s1, 32, %s3927_s3, [#allocation4]  }
 0xad3   :  { %v3915_v18 = vpop.f32.mrf.mxu1 }
 0xad4   :  { %5829 = dma.done.wait [#allocation4], 32  }
 0xad5   :  { %5830 = vsyncadd [#allocation4], 4294967264 }
 0xad6   :  { %3934 = vsyncpa [#allocation4], 1 }

</bundles_post_ra>
